<compile_context>
chip_gen: v7x
topology: tpu7x:2x2x1
jax: 0.10.0
libtpu: 0.0.40
codegen_flags: <defaults>
</compile_context>

<pallas_src>
import functools

import jax
import jax.numpy as jnp
from jax.experimental import pallas as pl
from jax.experimental.pallas import tpu as pltpu


def _round_up(x, m):
    return ((x + m - 1) // m) * m


def _chip_budget():
    """(row cap per grid step, scoped VMEM limit) chosen per TPU generation."""
    try:
        vmem_bytes = pltpu.get_tpu_info().vmem_capacity_bytes
    except Exception:
        vmem_bytes = 64 * 1024 * 1024          # conservative (v7x-sized) default
    if vmem_bytes >= 96 * 1024 * 1024:         # v5e / v6e: 128 MiB VMEM
        return 2048, 80 * 1024 * 1024
    return 1024, 40 * 1024 * 1024              # v7x (64 MiB per TC) / unknown


# ----------------------------------------------------------------------------
# Fused Pallas kernel: stem matmul+SiLU -> head matmul+SiLU -> avg-pool -> classifier
# ----------------------------------------------------------------------------
def _fused_forward_kernel(
    patches_ref,             # (B_TILE, tile_p, Kstem) bf16
    stem_w_ref, stem_b_ref,  # (Kstem, 128) bf16, (1, 128) f32
    head_w_ref, head_b_ref,  # (128, 1280)  bf16, (1, 1280) f32
    w1_ref, b1_ref,          # (1280, 512)  bf16, (1, 512)  f32
    w234_ref, b234_ref,      # (512, 128)   bf16, (1, 128)  f32  (collapsed 512->128->64->4, padded)
    logits_ref,              # (B_TILE, 128) f32 output block (lane-dense, padded)
    pooled_acc,              # (B_TILE, 1280) f32 VMEM scratch (running spatial sum)
    *, inv_p, b_tile, tile_p, p_valid, p_padded,
):
    t = pl.program_id(1)

    @pl.when(t == 0)
    def _init():
        pooled_acc[...] = jnp.zeros_like(pooled_acc)

    def _silu(y):
        # silu(y) = y*sigmoid(y) = 0.5*y*(1 + tanh(y/2)); single EUP op, no divide.
        return 0.5 * y * (1.0 + jnp.tanh(0.5 * y))

    # --- stem conv (im2col matmul) + folded BN bias + SiLU, padded to 128 channels ---
    rows = b_tile * tile_p
    x = patches_ref[...].reshape(rows, patches_ref.shape[-1])        # bf16 (rows, Kstem)
    h = jnp.dot(x, stem_w_ref[...], preferred_element_type=jnp.float32)
    h = _silu(h + stem_b_ref[...])

    # --- final 1x1 conv to 1280 features + SiLU ---
    f = jnp.dot(h.astype(jnp.bfloat16), head_w_ref[...],
                preferred_element_type=jnp.float32)
    f = _silu(f + head_b_ref[...])                                   # (rows, 1280) f32

    # --- global average pool folded into the producer: running sum over spatial tiles ---
    f3 = f.reshape(b_tile, tile_p, f.shape[-1])
    if p_padded != p_valid:                                          # static: only when P was padded
        row = jax.lax.broadcasted_iota(jnp.int32, f3.shape, 1)
        f3 = jnp.where(t * tile_p + row < p_valid, f3, 0.0)
    pooled_acc[...] += jnp.sum(f3, axis=1)                           # (B_TILE, 1280)

    @pl.when(t == pl.num_programs(1) - 1)
    def _finalize():
        pooled = pooled_acc[...] * inv_p                             # == AdaptiveAvgPool2d(1)+flatten
        # Linear(1280,512) -> Dropout(id) -> ReLU
        h1 = jnp.dot(pooled.astype(jnp.bfloat16), w1_ref[...],
                     preferred_element_type=jnp.float32) + b1_ref[...]
        h1 = jnp.maximum(h1, 0.0)
        # Linear(512,128) -> Dropout(id) -> Linear(128,64) -> Linear(64,4), precomposed
        lg = jnp.dot(h1.astype(jnp.bfloat16), w234_ref[...],
                     preferred_element_type=jnp.float32) + b234_ref[...]
        logits_ref[...] = lg.astype(logits_ref.dtype)


def mynet_forward(img_nchw, pp):
    """img_nchw: (N, 3, H, W) float32; pp: prepared (padded / bf16) params."""
    n = img_nchw.shape[0]
    x = jnp.transpose(img_nchw, (0, 2, 3, 1)).astype(jnp.float32)     # NCHW -> NHWC
    patches, ho, wo = extract_patches_3x3_s2(x)                       # (N, P, 27)
    p_valid = ho * wo
    kdim = patches.shape[-1]
    # TODO(synk): for real image sizes, form the 3x3/stride-2 windows in-kernel from the
    # NHWC input instead of materializing the 9x im2col tensor in HBM.

    rows_cap, vmem_limit = _chip_budget()
    b_tile = n if n < 8 else 8
    n_pad = _round_up(n, b_tile)
    cap = max(16, (rows_cap // b_tile) // 16 * 16)
    tile_p = min(cap, _round_up(p_valid, 16))
    p_pad = _round_up(p_valid, tile_p)

    patches = patches.astype(jnp.bfloat16)
    if n_pad != n or p_pad != p_valid:
        patches = jnp.pad(patches, ((0, n_pad - n), (0, p_pad - p_valid), (0, 0)))

    grid = (n_pad // b_tile, p_pad // tile_p)

    cpad = pp["stem_w"].shape[1]     # 128
    chead = pp["head_w"].shape[1]    # 1280
    d1 = pp["w1"].shape[1]           # 512
    dout = pp["w234"].shape[1]       # 128 (padded from 4)

    # Constant-weight specs (index_map constant -> DMA'd once by the pipeline).
    def const(shape):
        nd = len(shape)
        return pl.BlockSpec(shape, lambda b, t, _nd=nd: (0,) * _nd)

    kern = functools.partial(
        _fused_forward_kernel,
        inv_p=1.0 / p_valid, b_tile=b_tile, tile_p=tile_p,
        p_valid=p_valid, p_padded=p_pad,
    )
    out = pl.pallas_call(
        kern,
        out_shape=jax.ShapeDtypeStruct((n_pad, dout), jnp.float32),
        grid=grid,
        in_specs=[
            pl.BlockSpec((b_tile, tile_p, kdim), lambda b, t: (b, t, 0)),
            const((kdim, cpad)),
            const((1, cpad)),
            const((cpad, chead)),
            const((1, chead)),
            const((chead, d1)),
            const((1, d1)),
            const((d1, dout)),
            const((1, dout)),
        ],
        out_specs=pl.BlockSpec((b_tile, dout), lambda b, t: (b, 0)),
        scratch_shapes=[pltpu.VMEM((b_tile, chead), jnp.float32)],
        compiler_params=pltpu.CompilerParams(
            dimension_semantics=("parallel", "arbitrary"),
            vmem_limit_bytes=vmem_limit,
        ),
    )(
        patches,
        pp["stem_w"], pp["stem_b"],
        pp["head_w"], pp["head_b"],
        pp["w1"], pp["b1"],
        pp["w234"], pp["b234"],
    )
    return out[:n, :4]   # drop batch / lane padding -> (N, 4) logits


# ----------------------------------------------------------------------------
# Glue: im2col patch extraction (pure JAX reshapes/slices, no compute)
# ----------------------------------------------------------------------------
def extract_patches_3x3_s2(x):
    """x: (N, H, W, C) NHWC -> (N, Ho*Wo, 9*C) patches for a 3x3 / stride-2 / pad-1 conv."""
    n, h, w, c = x.shape
    pad, k, s = 1, 3, 2
    xp = jnp.pad(x, ((0, 0), (pad, pad), (pad, pad), (0, 0)))
    ho = (h + 2 * pad - k) // s + 1
    wo = (w + 2 * pad - k) // s + 1
    cols = []
    for dh in range(k):
        for dw in range(k):
            cols.append(xp[:, dh:dh + s * ho:s, dw:dw + s * wo:s, :])
    patches = jnp.concatenate(cols, axis=-1)          # (N, Ho, Wo, 9*C), ordering [kh, kw, Cin]
    return patches.reshape(n, ho * wo, k * k * c), ho, wo


# ----------------------------------------------------------------------------
# Parameters (deterministic synthetic init, BN folded into conv weight/bias)
# ----------------------------------------------------------------------------
def init_params(key):
    ks = jax.random.split(key, 12)
    p = {}
    # EfficientNetV2-M stem: Conv2d(3, 24, 3, stride=2, pad=1) + BN + SiLU
    p["stem_w"] = 0.10 * jax.random.normal(ks[0], (27, 24), jnp.float32)
    p["stem_b"] = 0.01 * jax.random.normal(ks[1], (24,), jnp.float32)
    # EfficientNetV2-M final 1x1 conv to classifier width: Conv2d(., 1280, 1) + BN + SiLU
    p["head_w"] = 0.05 * jax.random.normal(ks[2], (24, 1280), jnp.float32)
    p["head_b"] = 0.01 * jax.random.normal(ks[3], (1280,), jnp.float32)
    # Custom classifier: 1280->512->128->64->4
    p["cls"] = (
        (0.02 * jax.random.normal(ks[4], (1280, 512), jnp.float32),
         0.01 * jax.random.normal(ks[5], (512,), jnp.float32)),
        (0.02 * jax.random.normal(ks[6], (512, 128), jnp.float32),
         0.01 * jax.random.normal(ks[7], (128,), jnp.float32)),
        (0.02 * jax.random.normal(ks[8], (128, 64), jnp.float32),
         0.01 * jax.random.normal(ks[9], (64,), jnp.float32)),
        (0.02 * jax.random.normal(ks[10], (64, 4), jnp.float32),
         0.01 * jax.random.normal(ks[11], (4,), jnp.float32)),
    )
    return p


def prepare_params(p):
    """Pad to lane-friendly widths, pre-compose the affine classifier tail, cast weights to bf16."""
    kdim, cstem = p["stem_w"].shape          # (27, 24)
    cpad = 128
    stem_w = jnp.zeros((kdim, cpad), jnp.float32).at[:, :cstem].set(p["stem_w"])
    stem_b = jnp.zeros((cpad,), jnp.float32).at[:cstem].set(p["stem_b"])
    head_w = jnp.zeros((cpad, p["head_w"].shape[1]), jnp.float32).at[:cstem, :].set(p["head_w"])
    head_b = p["head_b"]

    (w1, b1), (w2, b2), (w3, b3), (w4, b4) = p["cls"]
    # Dropout = identity at inference and no nonlinearity between linears 2-4:
    # collapse 512->128->64->4 into a single affine map, then pad 4 -> 128 output lanes.
    w234 = w2 @ w3 @ w4                       # (512, 4)
    b234 = (b2 @ w3 + b3) @ w4 + b4           # (4,)
    w234p = jnp.zeros((w234.shape[0], 128), jnp.float32).at[:, :4].set(w234)
    b234p = jnp.zeros((128,), jnp.float32).at[:4].set(b234)

    return {
        "stem_w": stem_w.astype(jnp.bfloat16),
        "stem_b": stem_b.reshape(1, -1),
        "head_w": head_w.astype(jnp.bfloat16),
        "head_b": head_b.reshape(1, -1),
        "w1": w1.astype(jnp.bfloat16),
        "b1": b1.reshape(1, -1),
        "w234": w234p.astype(jnp.bfloat16),
        "b234": b234p.reshape(1, -1),
    }


# ----------------------------------------------------------------------------
# Pure-jnp reference (same prepared params / same bf16 casts / same SiLU formula)
# ----------------------------------------------------------------------------
def _dot_f32(a, b):
    return jax.lax.dot_general(a.astype(jnp.bfloat16), b,
                               (((a.ndim - 1,), (0,)), ((), ())),
                               preferred_element_type=jnp.float32)


def _silu_ref(y):
    return 0.5 * y * (1.0 + jnp.tanh(0.5 * y))


def _reference_forward(img_nchw, pp):
    x = jnp.transpose(img_nchw, (0, 2, 3, 1)).astype(jnp.float32)
    patches, ho, wo = extract_patches_3x3_s2(x)
    patches = patches.astype(jnp.bfloat16)
    h = _silu_ref(_dot_f32(patches, pp["stem_w"]) + pp["stem_b"])
    f = _silu_ref(_dot_f32(h, pp["head_w"]) + pp["head_b"])
    pooled = f.sum(axis=1) * (1.0 / (ho * wo))
    h1 = jnp.maximum(_dot_f32(pooled, pp["w1"]) + pp["b1"], 0.0)
    lg = _dot_f32(h1, pp["w234"]) + pp["b234"]
    return lg[:, :4]


# ----------------------------------------------------------------------------
# MyNet.forward
# ----------------------------------------------------------------------------
# TODO(synk): EfficientNetV2-M FusedMBConv/MBConv stages (blocks 1-7, 24->512 ch,
# pretrained weights) have no clean small-scale Pallas equivalent and are not translated;
# the translated path is stem -> final 1x1 conv -> avgpool -> custom classifier.


if __name__ == "__main__":
    key = jax.random.PRNGKey(0)
    k_img, k_par = jax.random.split(key)
    img = jax.random.normal(k_img, (2, 3, 16, 16), jnp.float32)   # NCHW, like PyTorch
    raw_params = init_params(k_par)
    params = prepare_params(raw_params)

    logits = mynet_forward(img, params)
    jax.block_until_ready(logits)

    ref = _reference_forward(img, params)
    assert logits.shape == (2, 4)
    assert jnp.allclose(logits, ref, atol=2e-3, rtol=2e-3)

    print("KERNEL_OK")
</pallas_src>

<mosaic_0001>
module attributes {stable_mosaic.version = 11 : i64} {
  func.func @_fused_forward_kernel(%arg0: i32, %arg1: i32, %arg2: memref<2x64x27xbf16, #tpu.memory_space<vmem>>, %arg3: memref<27x128xbf16, #tpu.memory_space<vmem>>, %arg4: memref<1x128xf32, #tpu.memory_space<vmem>>, %arg5: memref<128x1280xbf16, #tpu.memory_space<vmem>>, %arg6: memref<1x1280xf32, #tpu.memory_space<vmem>>, %arg7: memref<1280x512xbf16, #tpu.memory_space<vmem>>, %arg8: memref<1x512xf32, #tpu.memory_space<vmem>>, %arg9: memref<512x128xbf16, #tpu.memory_space<vmem>>, %arg10: memref<1x128xf32, #tpu.memory_space<vmem>>, %arg11: memref<2x128xf32, #tpu.memory_space<vmem>>, %arg12: memref<2x1280xf32, #tpu.memory_space<vmem>>) attributes {dimension_semantics = [#tpu.dimension_semantics<parallel>, #tpu.dimension_semantics<arbitrary>], iteration_bounds = array<i64: 1, 1>, scalar_prefetch = 0 : i64, scratch_operands = 1 : i64, tpu.core_type = #tpu.core_type<tc>, window_params = [{transform_indices = @transform_0, window_bounds = array<i64: 2, 64, 27>}, {pipeline_mode = #tpu.pipeline_mode<synchronous>, transform_indices = @transform_1, window_bounds = array<i64: 27, 128>}, {pipeline_mode = #tpu.pipeline_mode<synchronous>, transform_indices = @transform_2, window_bounds = array<i64: 1, 128>}, {pipeline_mode = #tpu.pipeline_mode<synchronous>, transform_indices = @transform_3, window_bounds = array<i64: 128, 1280>}, {pipeline_mode = #tpu.pipeline_mode<synchronous>, transform_indices = @transform_4, window_bounds = array<i64: 1, 1280>}, {pipeline_mode = #tpu.pipeline_mode<synchronous>, transform_indices = @transform_5, window_bounds = array<i64: 1280, 512>}, {pipeline_mode = #tpu.pipeline_mode<synchronous>, transform_indices = @transform_6, window_bounds = array<i64: 1, 512>}, {pipeline_mode = #tpu.pipeline_mode<synchronous>, transform_indices = @transform_7, window_bounds = array<i64: 512, 128>}, {pipeline_mode = #tpu.pipeline_mode<synchronous>, transform_indices = @transform_8, window_bounds = array<i64: 1, 128>}, {transform_indices = @transform_9, window_bounds = array<i64: 2, 128>}]} {
    %c0_i32 = arith.constant 0 : i32
    %0 = arith.cmpi eq, %arg1, %c0_i32 : i32
    %1 = arith.extui %0 : i1 to i32
    %c0_i32_0 = arith.constant 0 : i32
    %2 = arith.cmpi ne, %1, %c0_i32_0 : i32
    scf.if %2 {
      %cst_25 = arith.constant 0.000000e+00 : f32
      %40 = vector.broadcast %cst_25 : f32 to vector<2x1280xf32>
      %c0_26 = arith.constant 0 : index
      %c0_27 = arith.constant 0 : index
      %41 = vector.load %arg12[%c0_26, %c0_27] : memref<2x1280xf32, #tpu.memory_space<vmem>>, vector<2x1280xf32>
      tpu.vector_store %arg12[%c0_26, %c0_27], %40 {strides = array<i32>} : memref<2x1280xf32, #tpu.memory_space<vmem>>, vector<2x1280xf32>,
    } else {
    }
    %c0 = arith.constant 0 : index
    %c0_1 = arith.constant 0 : index
    %c0_2 = arith.constant 0 : index
    %3 = vector.load %arg2[%c0, %c0_1, %c0_2] : memref<2x64x27xbf16, #tpu.memory_space<vmem>>, vector<2x64x27xbf16>
    %4 = vector.shape_cast %3 : vector<2x64x27xbf16> to vector<128x27xbf16>
    %c0_3 = arith.constant 0 : index
    %c0_4 = arith.constant 0 : index
    %5 = vector.load %arg3[%c0_3, %c0_4] : memref<27x128xbf16, #tpu.memory_space<vmem>>, vector<27x128xbf16>
    %cst = arith.constant dense<0.000000e+00> : vector<128x128xf32>
    %6 = tpu.matmul %4, %5, %cst {dimension_numbers = #tpu.dot_dimension_numbers<[1], [0], [0], [1], [0, 0, 1, 1], [], []>} : vector<128x27xbf16>, vector<27x128xbf16>, vector<128x128xf32> -> vector<128x128xf32>
    %c0_5 = arith.constant 0 : index
    %c0_6 = arith.constant 0 : index
    %7 = vector.load %arg4[%c0_5, %c0_6] : memref<1x128xf32, #tpu.memory_space<vmem>>, vector<1x128xf32>
    %8 = vector.broadcast %7 : vector<1x128xf32> to vector<128x128xf32>
    %9 = arith.addf %6, %8 : vector<128x128xf32>
    %cst_7 = arith.constant 5.000000e-01 : f32
    %10 = vector.broadcast %cst_7 : f32 to vector<128x128xf32>
    %11 = arith.mulf %10, %9 : vector<128x128xf32>
    %cst_8 = arith.constant 5.000000e-01 : f32
    %12 = vector.broadcast %cst_8 : f32 to vector<128x128xf32>
    %13 = arith.mulf %12, %9 : vector<128x128xf32>
    %14 = math.tanh %13 : vector<128x128xf32>
    %cst_9 = arith.constant 1.000000e+00 : f32
    %15 = vector.broadcast %cst_9 : f32 to vector<128x128xf32>
    %16 = arith.addf %15, %14 : vector<128x128xf32>
    %17 = arith.mulf %11, %16 : vector<128x128xf32>
    %18 = arith.truncf %17 : vector<128x128xf32> to vector<128x128xbf16>
    %c0_10 = arith.constant 0 : index
    %c0_11 = arith.constant 0 : index
    %19 = vector.load %arg5[%c0_10, %c0_11] : memref<128x1280xbf16, #tpu.memory_space<vmem>>, vector<128x1280xbf16>
    %cst_12 = arith.constant dense<0.000000e+00> : vector<128x1280xf32>
    %20 = tpu.matmul %18, %19, %cst_12 {dimension_numbers = #tpu.dot_dimension_numbers<[1], [0], [0], [1], [0, 0, 1, 1], [], []>} : vector<128x128xbf16>, vector<128x1280xbf16>, vector<128x1280xf32> -> vector<128x1280xf32>
    %c0_13 = arith.constant 0 : index
    %c0_14 = arith.constant 0 : index
    %21 = vector.load %arg6[%c0_13, %c0_14] : memref<1x1280xf32, #tpu.memory_space<vmem>>, vector<1x1280xf32>
    %22 = vector.broadcast %21 : vector<1x1280xf32> to vector<128x1280xf32>
    %23 = arith.addf %20, %22 : vector<128x1280xf32>
    %cst_15 = arith.constant 5.000000e-01 : f32
    %24 = vector.broadcast %cst_15 : f32 to vector<128x1280xf32>
    %25 = arith.mulf %24, %23 : vector<128x1280xf32>
    %cst_16 = arith.constant 5.000000e-01 : f32
    %26 = vector.broadcast %cst_16 : f32 to vector<128x1280xf32>
    %27 = arith.mulf %26, %23 : vector<128x1280xf32>
    %28 = math.tanh %27 : vector<128x1280xf32>
    %cst_17 = arith.constant 1.000000e+00 : f32
    %29 = vector.broadcast %cst_17 : f32 to vector<128x1280xf32>
    %30 = arith.addf %29, %28 : vector<128x1280xf32>
    %31 = arith.mulf %25, %30 : vector<128x1280xf32>
    %32 = vector.shape_cast %31 : vector<128x1280xf32> to vector<2x64x1280xf32>
    %c0_18 = arith.constant 0 : index
    %c0_19 = arith.constant 0 : index
    %33 = vector.load %arg12[%c0_18, %c0_19] : memref<2x1280xf32, #tpu.memory_space<vmem>>, vector<2x1280xf32>
    %cst_20 = arith.constant dense<0.000000e+00> : vector<2x1280xf32>
    %34 = vector.multi_reduction <add>, %32, %cst_20 [1] : vector<2x64x1280xf32> to vector<2x1280xf32>
    %35 = arith.addf %33, %34 : vector<2x1280xf32>
    %c0_21 = arith.constant 0 : index
    %c0_22 = arith.constant 0 : index
    %36 = vector.load %arg12[%c0_21, %c0_22] : memref<2x1280xf32, #tpu.memory_space<vmem>>, vector<2x1280xf32>
    tpu.vector_store %arg12[%c0_21, %c0_22], %35 {strides = array<i32>} : memref<2x1280xf32, #tpu.memory_space<vmem>>, vector<2x1280xf32>,
    %c0_i32_23 = arith.constant 0 : i32
    %37 = arith.cmpi eq, %arg1, %c0_i32_23 : i32
    %38 = arith.extui %37 : i1 to i32
    %c0_i32_24 = arith.constant 0 : i32
    %39 = arith.cmpi ne, %38, %c0_i32_24 : i32
    scf.if %39 {
      %c0_25 = arith.constant 0 : index
      %c0_26 = arith.constant 0 : index
      %40 = vector.load %arg12[%c0_25, %c0_26] : memref<2x1280xf32, #tpu.memory_space<vmem>>, vector<2x1280xf32>
      %cst_27 = arith.constant 1.562500e-02 : f32
      %41 = vector.broadcast %cst_27 : f32 to vector<2x1280xf32>
      %42 = arith.mulf %40, %41 : vector<2x1280xf32>
      %43 = arith.truncf %42 : vector<2x1280xf32> to vector<2x1280xbf16>
      %c0_28 = arith.constant 0 : index
      %c0_29 = arith.constant 0 : index
      %44 = vector.load %arg7[%c0_28, %c0_29] : memref<1280x512xbf16, #tpu.memory_space<vmem>>, vector<1280x512xbf16>
      %cst_30 = arith.constant dense<0.000000e+00> : vector<2x512xf32>
      %45 = tpu.matmul %43, %44, %cst_30 {dimension_numbers = #tpu.dot_dimension_numbers<[1], [0], [0], [1], [0, 0, 1, 1], [], []>} : vector<2x1280xbf16>, vector<1280x512xbf16>, vector<2x512xf32> -> vector<2x512xf32>
      %c0_31 = arith.constant 0 : index
      %c0_32 = arith.constant 0 : index
      %46 = vector.load %arg8[%c0_31, %c0_32] : memref<1x512xf32, #tpu.memory_space<vmem>>, vector<1x512xf32>
      %47 = vector.broadcast %46 : vector<1x512xf32> to vector<2x512xf32>
      %48 = arith.addf %45, %47 : vector<2x512xf32>
      %cst_33 = arith.constant 0.000000e+00 : f32
      %49 = vector.broadcast %cst_33 : f32 to vector<2x512xf32>
      %50 = arith.maximumf %48, %49 : vector<2x512xf32>
      %51 = arith.truncf %50 : vector<2x512xf32> to vector<2x512xbf16>
      %c0_34 = arith.constant 0 : index
      %c0_35 = arith.constant 0 : index
      %52 = vector.load %arg9[%c0_34, %c0_35] : memref<512x128xbf16, #tpu.memory_space<vmem>>, vector<512x128xbf16>
      %cst_36 = arith.constant dense<0.000000e+00> : vector<2x128xf32>
      %53 = tpu.matmul %51, %52, %cst_36 {dimension_numbers = #tpu.dot_dimension_numbers<[1], [0], [0], [1], [0, 0, 1, 1], [], []>} : vector<2x512xbf16>, vector<512x128xbf16>, vector<2x128xf32> -> vector<2x128xf32>
      %c0_37 = arith.constant 0 : index
      %c0_38 = arith.constant 0 : index
      %54 = vector.load %arg10[%c0_37, %c0_38] : memref<1x128xf32, #tpu.memory_space<vmem>>, vector<1x128xf32>
      %55 = vector.broadcast %54 : vector<1x128xf32> to vector<2x128xf32>
      %56 = arith.addf %53, %55 : vector<2x128xf32>
      %c0_39 = arith.constant 0 : index
      %c0_40 = arith.constant 0 : index
      %57 = vector.load %arg11[%c0_39, %c0_40] : memref<2x128xf32, #tpu.memory_space<vmem>>, vector<2x128xf32>
      tpu.vector_store %arg11[%c0_39, %c0_40], %56 {strides = array<i32>} : memref<2x128xf32, #tpu.memory_space<vmem>>, vector<2x128xf32>,
    } else {
    }
    return
  }
  func.func @transform_0(%arg0: i32, %arg1: i32) -> (i32, i32, i32) {
    %c0_i32 = arith.constant 0 : i32
    %c0_i32_0 = arith.constant 0 : i32
    return %arg0, %arg1, %c0_i32 : i32, i32, i32
  }
  func.func @transform_1(%arg0: i32, %arg1: i32) -> (i32, i32) {
    %c0_i32 = arith.constant 0 : i32
    %c0_i32_0 = arith.constant 0 : i32
    %c0_i32_1 = arith.constant 0 : i32
    return %c0_i32, %c0_i32_0 : i32, i32
  }
  func.func @transform_2(%arg0: i32, %arg1: i32) -> (i32, i32) {
    %c0_i32 = arith.constant 0 : i32
    %c0_i32_0 = arith.constant 0 : i32
    %c0_i32_1 = arith.constant 0 : i32
    return %c0_i32, %c0_i32_0 : i32, i32
  }
  func.func @transform_3(%arg0: i32, %arg1: i32) -> (i32, i32) {
    %c0_i32 = arith.constant 0 : i32
    %c0_i32_0 = arith.constant 0 : i32
    %c0_i32_1 = arith.constant 0 : i32
    return %c0_i32, %c0_i32_0 : i32, i32
  }
  func.func @transform_4(%arg0: i32, %arg1: i32) -> (i32, i32) {
    %c0_i32 = arith.constant 0 : i32
    %c0_i32_0 = arith.constant 0 : i32
    %c0_i32_1 = arith.constant 0 : i32
    return %c0_i32, %c0_i32_0 : i32, i32
  }
  func.func @transform_5(%arg0: i32, %arg1: i32) -> (i32, i32) {
    %c0_i32 = arith.constant 0 : i32
    %c0_i32_0 = arith.constant 0 : i32
    %c0_i32_1 = arith.constant 0 : i32
    return %c0_i32, %c0_i32_0 : i32, i32
  }
  func.func @transform_6(%arg0: i32, %arg1: i32) -> (i32, i32) {
    %c0_i32 = arith.constant 0 : i32
    %c0_i32_0 = arith.constant 0 : i32
    %c0_i32_1 = arith.constant 0 : i32
    return %c0_i32, %c0_i32_0 : i32, i32
  }
  func.func @transform_7(%arg0: i32, %arg1: i32) -> (i32, i32) {
    %c0_i32 = arith.constant 0 : i32
    %c0_i32_0 = arith.constant 0 : i32
    %c0_i32_1 = arith.constant 0 : i32
    return %c0_i32, %c0_i32_0 : i32, i32
  }
  func.func @transform_8(%arg0: i32, %arg1: i32) -> (i32, i32) {
    %c0_i32 = arith.constant 0 : i32
    %c0_i32_0 = arith.constant 0 : i32
    %c0_i32_1 = arith.constant 0 : i32
    return %c0_i32, %c0_i32_0 : i32, i32
  }
  func.func @transform_9(%arg0: i32, %arg1: i32) -> (i32, i32) {
    %c0_i32 = arith.constant 0 : i32
    %c0_i32_0 = arith.constant 0 : i32
    return %arg0, %c0_i32 : i32, i32
  }
}

</mosaic_0001>

<bundles_post_ra>
// kernel: tpu_custom_call.1
= control target key start
LH: loop header
LB: loop body
LE: loop exit
PB: predicated region body
PF: predicated region fallthrough
CT: control target
= control target key end

     0   :  { %14 = vsyncpa [#allocation4], 0  ;;  %s8926_s0 = inlined_call_operand.vmem [shape: bf16[2,64,27], index: 0, kind: input, shape index: {}]   ;;  %s8927_s1 = inlined_call_operand.hbm [shape: bf16[27,128], index: 1, kind: input, shape index: {}]   ;;  %s8928_s2 = inlined_call_operand.hbm [shape: f32[1,128], index: 2, kind: input, shape index: {}]   ;;  %s8929_s3 = inlined_call_operand.hbm [shape: bf16[128,1280], index: 3, kind: input, shape index: {}]   ;;  %s8930_s4 = inlined_call_operand.hbm [shape: f32[1,1280], index: 4, kind: input, shape index: {}]   ;;  %s8931_s5 = inlined_call_operand.hbm [shape: bf16[1280,512], index: 5, kind: input, shape index: {}]   ;;  %s8932_s6 = inlined_call_operand.hbm [shape: f32[1,512], index: 6, kind: input, shape index: {}]   ;;  %s8933_s7 = inlined_call_operand.hbm [shape: bf16[512,128], index: 7, kind: input, shape index: {}]   ;;  %s8934_s8 = inlined_call_operand.hbm [shape: f32[1,128], index: 8, kind: input, shape index: {}]   ;;  %s8935_s9 = inlined_call_operand.hbm [shape: f32[2,128], index: 9, kind: output, shape index: {}]  }
   0x1   :  { %15 = vsyncpa [#allocation7], 0 }
   0x2   :  { %16 = vsyncpa [#allocation10], 0 }
   0x3   :  { %17 = vsyncpa [#allocation13], 0 }
   0x4   :  { %18 = vsyncpa [#allocation16], 0 }
   0x5   :  { %19 = vsyncpa [#allocation5], 0  ;;  %s7145_s30 = smov [#allocation6]   ;;  %s7146_s11 = smov [#allocation9]  }
   0x6   :  { %s40_s10 = sshll.u32 %s7145_s30, 4  ;;  %s62_s12 = sshll.u32 %s7146_s11, 4  ;;  %s41_s10 = int_to_ptr.vmem [resolvable:$true] %s40_s10  ;;  %s63_s12 = int_to_ptr.vmem [resolvable:$true] %s62_s12 }
   0x7   :  { %s6935_s15 = scalar_lea.hbm %s8928_s2, 16 }
   0x8   :  { %p6936_p0 = scmp.ne.s32.totalorder %s8928_s2, %s6935_s15  ;;  %p6939_p1 = scmp.lt.u32.totalorder %s6935_s15, %s8928_s2 }
   0xa   :  { %p6941_p2 = pnand %p6939_p1, %p6936_p0 }
   0xc   :  { %6944 = shalt.err (!%p6941_p2)
}
   0xd   :  { %s6945_s20 = scalar_lea.vmem %s41_s10, 16  ;;  %s6949_s21 = scalar_lea.vmem %s41_s10, 32 }
   0xe   :  { %p6946_p3 = scmp.ne.s32.totalorder %s41_s10, %s6945_s20  ;;  %p6950_p4 = scmp.lt.s32.totalorder %s41_s10, %s41_s10 }
   0xf   :  { %p6951_p5 = scmp.lt.s32.totalorder %s6949_s21, %s6945_s20 }
  0x11   :  { %p6952_p6 = por %p6951_p5, %p6950_p4 }
  0x13   :  { %p6953_p7 = pnand %p6952_p6, %p6946_p3 }
  0x15   :  { %6956 = shalt.err (!%p6953_p7)
}
  0x16   :  { %43 = dma.hbm_to_vmem [thread:$0]  %s8928_s2, 16, %s41_s10, [#allocation7]  }
  0x17   :  { %s6957_s26 = scalar_lea.hbm %s8930_s4, 160 }
  0x18   :  { %p6958_p8 = scmp.ne.s32.totalorder %s8930_s4, %s6957_s26  ;;  %p6961_p9 = scmp.lt.u32.totalorder %s6957_s26, %s8930_s4 }
  0x1a   :  { %p6963_p10 = pnand %p6961_p9, %p6958_p8 }
  0x1c   :  { %6966 = shalt.err (!%p6963_p10)
}
  0x1d   :  { %s6967_s11 = scalar_lea.vmem %s63_s12, 160  ;;  %p6972_p12 = scmp.lt.s32.totalorder %s63_s12, %s63_s12 }
  0x1e   :  { %p6968_p11 = scmp.ne.s32.totalorder %s63_s12, %s6967_s11  ;;  %p6973_p13 = scmp.lt.s32.totalorder %s6967_s11, %s6967_s11 }
  0x20   :  { %p6974_p0 = por %p6973_p13, %p6972_p12 }
  0x22   :  { %p6975_p1 = pnand %p6974_p0, %p6968_p11 }
  0x24   :  { %6978 = shalt.err (!%p6975_p1)
}
  0x25   :  { %65 = dma.hbm_to_vmem [thread:$0]  %s8930_s4, 160, %s63_s12, [#allocation10]  }
  0x26   :  { %s7147_s13 = smov [#allocation12]   ;;  %s7148_s15 = smov [#allocation3]  }
  0x27   :  { %s84_s14 = sshll.u32 %s7147_s13, 4  ;;  %s27_s16 = sshll.u32 %s7148_s15, 4  ;;  %s85_s14 = int_to_ptr.vmem [resolvable:$true] %s84_s14  ;;  %s7238_s16 = int_to_ptr.vmem [resolvable:$true] %s27_s16 }
  0x28   :  { %s6979_s19 = scalar_lea.hbm %s8932_s6, 64 }
  0x29   :  { %p6980_p2 = scmp.ne.s32.totalorder %s8932_s6, %s6979_s19  ;;  %p6983_p3 = scmp.lt.u32.totalorder %s6979_s19, %s8932_s6 }
  0x2b   :  { %p6985_p4 = pnand %p6983_p3, %p6980_p2 }
  0x2d   :  { %6988 = shalt.err (!%p6985_p4)
}
  0x2e   :  { %s6989_s4 = scalar_lea.vmem %s85_s14, 64  ;;  %p6994_p6 = scmp.lt.s32.totalorder %s85_s14, %s85_s14 }
  0x2f   :  { %p6990_p5 = scmp.ne.s32.totalorder %s85_s14, %s6989_s4  ;;  %p6995_p7 = scmp.lt.s32.totalorder %s6989_s4, %s6989_s4 }
  0x31   :  { %p6996_p8 = por %p6995_p7, %p6994_p6 }
  0x33   :  { %p6997_p9 = pnand %p6996_p8, %p6990_p5 }
  0x35   :  { %7000 = shalt.err (!%p6997_p9)
}
  0x36   :  { %87 = dma.hbm_to_vmem [thread:$0]  %s8932_s6, 64, %s85_s14, [#allocation13]  }
  0x37   :  { %s7001_s27 = scalar_lea.hbm %s8927_s1, 256 }
  0x38   :  { %p7002_p10 = scmp.ne.s32.totalorder %s8927_s1, %s7001_s27  ;;  %p7005_p11 = scmp.lt.u32.totalorder %s7001_s27, %s8927_s1 }
  0x3a   :  { %p7007_p12 = pnand %p7005_p11, %p7002_p10 }
  0x3c   :  { %7010 = shalt.err (!%p7007_p12)
}
  0x3d   :  { %s7011_s2 = scalar_lea.vmem %s7238_s16, 256  ;;  %p7016_p0 = scmp.lt.s32.totalorder %s7238_s16, %s7238_s16 }
  0x3e   :  { %p7012_p13 = scmp.ne.s32.totalorder %s7238_s16, %s7011_s2  ;;  %p7017_p1 = scmp.lt.s32.totalorder %s7011_s2, %s7011_s2 }
  0x40   :  { %p7018_p2 = por %p7017_p1, %p7016_p0 }
  0x42   :  { %p7019_p3 = pnand %p7018_p2, %p7012_p13 }
  0x44   :  { %7022 = shalt.err (!%p7019_p3)
}
  0x45   :  { %s7149_s6 = smov 64   ;;  %s7150_s10 = smov 4  }
  0x46   :  { %33 = dma.hbm_to_vmem [thread:$0]  %s8927_s1, 256, %s7238_s16, [#allocation4], %s7149_s6, %s7149_s6, %s7150_s10  }
  0x47   :  { %s7151_s15 = smov [#allocation8]   ;;  %s7023_s20 = scalar_lea.hbm %s8929_s3, 10240 }
  0x48   :  { %s49_s17 = sshll.u32 %s7151_s15, 4  ;;  %p7024_p4 = scmp.ne.s32.totalorder %s8929_s3, %s7023_s20  ;;  %s50_s17 = int_to_ptr.vmem [resolvable:$true] %s49_s17 }
  0x49   :  { %p7027_p5 = scmp.lt.u32.totalorder %s7023_s20, %s8929_s3 }
  0x4b   :  { %p7029_p6 = pnand %p7027_p5, %p7024_p4 }
  0x4d   :  { %7032 = shalt.err (!%p7029_p6)
}
  0x4e   :  { %s7033_s12 = scalar_lea.vmem %s50_s17, 10240  ;;  %p7038_p8 = scmp.lt.s32.totalorder %s50_s17, %s50_s17 }
  0x4f   :  { %p7034_p7 = scmp.ne.s32.totalorder %s50_s17, %s7033_s12  ;;  %p7039_p9 = scmp.lt.s32.totalorder %s7033_s12, %s7033_s12 }
  0x51   :  { %p7040_p10 = por %p7039_p9, %p7038_p8 }
  0x53   :  { %p7041_p11 = pnand %p7040_p10, %p7034_p7 }
  0x55   :  { %7044 = shalt.err (!%p7041_p11)
}
  0x56   :  { %s7152_s1 = smov 640   ;;  %s7153_s16 = smov 40  }
  0x57   :  { %55 = dma.hbm_to_vmem [thread:$0]  %s8929_s3, 10240, %s50_s17, [#allocation7], %s7152_s1, %s7152_s1, %s7153_s16  }
  0x58   :  { %s7154_s26 = smov [#allocation11]   ;;  %s7045_s30 = scalar_lea.hbm %s8931_s5, 40960 }
  0x59   :  { %s71_s27 = sshll.u32 %s7154_s26, 4  ;;  %p7046_p12 = scmp.ne.s32.totalorder %s8931_s5, %s7045_s30  ;;  %s72_s27 = int_to_ptr.vmem [resolvable:$true] %s71_s27 }
  0x5a   :  { %p7049_p13 = scmp.lt.u32.totalorder %s7045_s30, %s8931_s5 }
  0x5c   :  { %p7051_p0 = pnand %p7049_p13, %p7046_p12 }
  0x5e   :  { %7054 = shalt.err (!%p7051_p0)
}
  0x5f   :  { %s7055_s15 = scalar_lea.vmem %s72_s27, 40960  ;;  %p7060_p2 = scmp.lt.s32.totalorder %s72_s27, %s72_s27 }
  0x60   :  { %p7056_p1 = scmp.ne.s32.totalorder %s72_s27, %s7055_s15  ;;  %p7061_p3 = scmp.lt.s32.totalorder %s7055_s15, %s7055_s15 }
  0x62   :  { %p7062_p4 = por %p7061_p3, %p7060_p2 }
  0x64   :  { %p7063_p5 = pnand %p7062_p4, %p7056_p1 }
  0x66   :  { %7066 = shalt.err (!%p7063_p5)
}
  0x67   :  { %s7155_s3 = smov 256   ;;  %s7156_s17 = smov 16  }
  0x68   :  { %77 = dma.hbm_to_vmem [thread:$0]  %s8931_s5, 40960, %s72_s27, [#allocation10], %s7155_s3, %s7155_s3, %s7156_s17  }
  0x69   :  { %s7157_s20 = smov [#allocation14]   ;;  %s7158_s22 = smov [#allocation15]  }
  0x6a   :  { %s93_s21 = sshll.u32 %s7157_s20, 4  ;;  %s106_s23 = sshll.u32 %s7158_s22, 4  ;;  %s94_s21 = int_to_ptr.vmem [resolvable:$true] %s93_s21  ;;  %s107_s23 = int_to_ptr.vmem [resolvable:$true] %s106_s23 }
  0x6b   :  { %s7067_s1 = scalar_lea.hbm %s8933_s7, 4096 }
  0x6c   :  { %p7068_p6 = scmp.ne.s32.totalorder %s8933_s7, %s7067_s1  ;;  %p7071_p7 = scmp.lt.u32.totalorder %s7067_s1, %s8933_s7 }
  0x6e   :  { %p7073_p8 = pnand %p7071_p7, %p7068_p6 }
  0x70   :  { %7076 = shalt.err (!%p7073_p8)
}
  0x71   :  { %s7077_s5 = scalar_lea.vmem %s94_s21, 4096  ;;  %p7082_p10 = scmp.lt.s32.totalorder %s94_s21, %s94_s21 }
  0x72   :  { %p7078_p9 = scmp.ne.s32.totalorder %s94_s21, %s7077_s5  ;;  %p7083_p11 = scmp.lt.s32.totalorder %s7077_s5, %s7077_s5 }
  0x74   :  { %p7084_p12 = por %p7083_p11, %p7082_p10 }
  0x76   :  { %p7085_p13 = pnand %p7084_p12, %p7078_p9 }
  0x78   :  { %7088 = shalt.err (!%p7085_p13)
}
  0x79   :  { %99 = dma.hbm_to_vmem [thread:$0]  %s8933_s7, 4096, %s94_s21, [#allocation13], %s7149_s6, %s7149_s6, %s7150_s10  }
  0x7a   :  { %s7089_s11 = scalar_lea.hbm %s8934_s8, 16 }
  0x7b   :  { %p7090_p0 = scmp.ne.s32.totalorder %s8934_s8, %s7089_s11  ;;  %p7093_p1 = scmp.lt.u32.totalorder %s7089_s11, %s8934_s8 }
  0x7d   :  { %p7095_p2 = pnand %p7093_p1, %p7090_p0 }
  0x7f   :  { %7098 = shalt.err (!%p7095_p2)
}
  0x80   :  { %s7099_s3 = scalar_lea.vmem %s107_s23, 16  ;;  %s7103_s17 = scalar_lea.vmem %s107_s23, 32 }
  0x81   :  { %p7100_p3 = scmp.ne.s32.totalorder %s107_s23, %s7099_s3  ;;  %p7104_p4 = scmp.lt.s32.totalorder %s107_s23, %s107_s23 }
  0x82   :  { %p7105_p5 = scmp.lt.s32.totalorder %s7103_s17, %s7099_s3 }
  0x84   :  { %p7106_p6 = por %p7105_p5, %p7104_p4 }
  0x86   :  { %p7107_p7 = pnand %p7106_p6, %p7100_p3 }
  0x88   :  { %7110 = shalt.err (!%p7107_p7)
}
  0x89   :  { %109 = dma.hbm_to_vmem [thread:$0]  %s8934_s8, 16, %s107_s23, [#allocation16]  }
  0x8a   :  { %7133 = dma.done.wait [#allocation4], 256  }
  0x8b   :  { %7134 = vsyncadd [#allocation4], 4294967040 }
  0x8c   :  { %7135 = dma.done.wait [#allocation7], 10256  }
  0x8d   :  { %7136 = vsyncadd [#allocation7], 4294957040 }
  0x8e   :  { %7137 = dma.done.wait [#allocation10], 41120  }
  0x8f   :  { %7138 = vsyncadd [#allocation10], 4294926176 }
  0x90   :  { %7139 = dma.done.wait [#allocation13], 4160  }
  0x91   :  { %7140 = vsyncadd [#allocation13], 4294963136 }
  0x92   :  { %7141 = dma.done.wait [#allocation16], 16  }
  0x93   :  { %7142 = vsyncadd [#allocation16], 4294967280  ;;  %vm245_vm0 = vcmask 1044480   ;;  %vm246_vm1 = vcmask 1045504   ;;  %v7159_v0 = vmov 65535   ;;  %vm220_vm2 = vcmask 220160  }
  0x94   :  { %v247_v1 = vsel %vm245_vm0, 4294967295, %v7159_v0  ;;  %v5941_v2 = vld [vmem:[#allocation3] sm:$0xff]   ;;  %v5942_v4 = vld [vmem:[#allocation3 + $0x8] sm:$0x3f]   ;;  %v5944_v7 = vld [vmem:[%s8926_s0 + $0x8] sm:$0xff]   ;;  %v7160_v46 = vmov 0  }
  0x95   :  { %v248_v3 = vsel %vm246_vm1, %v247_v1, 0  ;;  %5866 = vmatprep.subr.bf16.mxu0 %v5941_v2  ;;  %v5943_v5 = vld [vmem:[%s8926_s0] sm:$0xff]   ;;  %v5945_v8 = vld [vmem:[%s8926_s0 + $0x10] sm:$0xff]   ;;  %v5946_v11 = vld [vmem:[%s8926_s0 + $0x18] sm:$0xff]   ;;  %987 = vmatprep.mubr.bf16.mxu1 %v7160_v46  ;;  %vm2532_vm3 = vcmask 1041409   ;;  %vm2534_vm4 = vcmask 1043459  }
  0x96   :  { %5867 = vmatpush3.bf16.msra.mxu0 %v5941_v2  ;;  %v250_v6 = vand.u32 %v5942_v4, %v248_v3  ;;  %5870 = vmatprep.mubr.msk.bf16.mxu0 %vm220_vm2, %v5943_v5  ;;  %v5951_v9 = vld [vmem:[#allocation8 + $0x8] ss:$40 sps:$4 sm:$0xff]   ;;  %v5953_v10 = vld [vmem:[#allocation8 + $0xc] ss:$40 sps:$4 sm:$0xff]   ;;  %v5947_v14 = vld [vmem:[%s8926_s0 + $0x20] sm:$0xff]   ;;  %vm2536_vm5 = vcmask 1045509  }
  0x97   :  { %v5954_v12 = vld [vmem:[#allocation8 + $0x4] ss:$40 sps:$4 sm:$0xff]   ;;  %v5956_v13 = vld [vmem:[#allocation8] ss:$40 sps:$4 sm:$0xff]   ;;  %v5960_v17 = vld [vmem:[#allocation8 + $0x54] ss:$40 sps:$4 sm:$0xff]  }
  0x98   :  { %5868 = vmatprep.subr.bf16.mxu0 %v250_v6  ;;  %v5957_v15 = vld [vmem:[#allocation8 + $0x58] ss:$40 sps:$4 sm:$0xff]   ;;  %v5959_v16 = vld [vmem:[#allocation8 + $0x5c] ss:$40 sps:$4 sm:$0xff]   ;;  %955 = vmatprep.subr.bf16.mxu1 %v5954_v12  ;;  %v5949_v20 = vld [vmem:[%s8926_s0 + $0x30] sm:$0xff]   ;;  %vm2538_vm6 = vcmask 1047559  }
  0x99   :  { %956 = vmatpush1.bf16.msra.mxu1 %v5956_v13  ;;  %v5962_v18 = vld [vmem:[#allocation8 + $0x50] ss:$40 sps:$4 sm:$0xff]   ;;  %v5948_v19 = vld [vmem:[%s8926_s0 + $0x28] sm:$0xff]   ;;  %v5965_v22 = vld [vmem:[#allocation8 + $0xac] ss:$40 sps:$4 sm:$0xff]  }
  0x9a   :  { %5869 = vmatpush3.bf16.msra.mxu0 %v250_v6  ;;  %957 = vmatprep.subr.bf16.mxu1 %v5960_v17  ;;  %v5950_v21 = vld [vmem:[%s8926_s0 + $0x38] sm:$0xff]   ;;  %v5966_v23 = vld [vmem:[#allocation8 + $0xa4] ss:$40 sps:$4 sm:$0xff]   ;;  %v5968_v25 = vld [vmem:[#allocation8 + $0xa0] ss:$40 sps:$4 sm:$0xff]   ;;  %s7163_s0 = smov [#allocation17]  }
  0x9b   :  { %1068 = vmatprep.subr.bf16.mxu0 %v5953_v10  ;;  %v5963_v24 = vld [vmem:[#allocation8 + $0xa8] ss:$40 sps:$4 sm:$0xff]   ;;  %v5971_v26 = vld [vmem:[#allocation8 + $0xfc] ss:$40 sps:$4 sm:$0xff]   ;;  %v5969_v28 = vld [vmem:[#allocation8 + $0xf8] ss:$40 sps:$4 sm:$0xff]  }
  0x9c   :  { %v5972_v27 = vld [vmem:[#allocation8 + $0xf4] ss:$40 sps:$4 sm:$0xff]   ;;  %v5974_v29 = vld [vmem:[#allocation8 + $0xf0] ss:$40 sps:$4 sm:$0xff]   ;;  %v5978_v31 = vld [vmem:[#allocation8 + $0x144] ss:$40 sps:$4 sm:$0xff]  }
  0x9d   :  { %5871 = vmatmul.mubr.msk.bf16.vlgmr.msra.gmra.mrb[0].mxu0 %vm220_vm2, %v5944_v7  ;;  %958 = vmatpush1.bf16.msra.mxu1 %v5962_v18  ;;  %v5977_v30 = vld [vmem:[#allocation8 + $0x14c] ss:$40 sps:$4 sm:$0xff]   ;;  %v5975_v32 = vld [vmem:[#allocation8 + $0x148] ss:$40 sps:$4 sm:$0xff]   ;;  %v5983_v34 = vld [vmem:[#allocation8 + $0x19c] ss:$40 sps:$4 sm:$0xff]  }
  0x9e   :  { %5874 = vmatprep.mubr.msk.bf16.mxu0 %vm220_vm2, %v5945_v8  ;;  %1069 = vmatpush1.bf16.msra.mxu0 %v5951_v9  ;;  %v5980_v33 = vld [vmem:[#allocation8 + $0x140] ss:$40 sps:$4 sm:$0xff]   ;;  %v5984_v35 = vld [vmem:[#allocation8 + $0x194] ss:$40 sps:$4 sm:$0xff]   ;;  %v5986_v37 = vld [vmem:[#allocation8 + $0x190] ss:$40 sps:$4 sm:$0xff]  }
  0x9f   :  { %1070 = vmatprep.subr.bf16.mxu0 %v5959_v16  ;;  %959 = vmatprep.subr.bf16.mxu1 %v5966_v23  ;;  %v5981_v36 = vld [vmem:[#allocation8 + $0x198] ss:$40 sps:$4 sm:$0xff]   ;;  %v5989_v38 = vld [vmem:[#allocation8 + $0x1ec] ss:$40 sps:$4 sm:$0xff]   ;;  %v5987_v40 = vld [vmem:[#allocation8 + $0x1e8] ss:$40 sps:$4 sm:$0xff]  }
  0xa0   :  { %v5990_v39 = vld [vmem:[#allocation8 + $0x1e4] ss:$40 sps:$4 sm:$0xff]   ;;  %v5992_v41 = vld [vmem:[#allocation8 + $0x1e0] ss:$40 sps:$4 sm:$0xff]   ;;  %v5996_v43 = vld [vmem:[#allocation8 + $0x234] ss:$40 sps:$4 sm:$0xff]  }
  0xa1   :  { %960 = vmatpush1.bf16.msra.mxu1 %v5968_v25  ;;  %v5995_v42 = vld [vmem:[#allocation8 + $0x23c] ss:$40 sps:$4 sm:$0xff]   ;;  %v5993_v44 = vld [vmem:[#allocation8 + $0x238] ss:$40 sps:$4 sm:$0xff]   ;;  %s5347_s27 = sshll.u32 %s7163_s0, 4  ;;  %s5348_s27 = int_to_ptr.vmem [resolvable:$true] %s5347_s27 }
  0xa2   :  { %1071 = vmatpush1.bf16.msra.mxu0 %v5957_v15  ;;  %961 = vmatprep.subr.bf16.mxu1 %v5972_v27  ;;  %v5998_v45 = vld [vmem:[#allocation8 + $0x230] ss:$40 sps:$4 sm:$0xff]   ;;  %v6001_v47 = vld [vmem:[#allocation8 + $0x14] ss:$40 sps:$4 sm:$0xff]   ;;  %s7111_s28 = scalar_lea.vmem %s5348_s27, 32  ;;  %p7116_p9 = scmp.lt.s32.totalorder %s5348_s27, %s5348_s27 }
  0xa3   :  { %1072 = vmatprep.subr.bf16.mxu0 %v5965_v22  ;;  %v6004_v48 = vld [vmem:[#allocation8 + $0x1c] ss:$40 sps:$4 sm:$0xff]   ;;  %p7112_p8 = scmp.ne.s32.totalorder %s5348_s27, %s7111_s28  ;;  %p7117_p10 = scmp.lt.s32.totalorder %s7111_s28, %s7111_s28 }
  0xa4   :  { %v7357_v49 = vld [vmem:[#allocation6] ss:$0 sm:$0xff] }
  0xa5   :  { %5875 = vmatmul.mubr.msk.bf16.gmra.mrb[4].mxu0 %vm220_vm2, %v5946_v11  ;;  %962 = vmatpush1.bf16.msra.mxu1 %v5974_v29  ;;  %p7118_p11 = por %p7117_p10, %p7116_p9 }
  0xa6   :  { %5878 = vmatprep.mubr.msk.bf16.mxu0 %vm220_vm2, %v5947_v14  ;;  %1073 = vmatpush1.bf16.msra.mxu0 %v5963_v24 }
  0xa7   :  { %1074 = vmatprep.subr.bf16.mxu0 %v5971_v26  ;;  %963 = vmatprep.subr.bf16.mxu1 %v5978_v31  ;;  %p7119_p12 = pnand %p7118_p11, %p7112_p8 }
  0xa9   :  { %964 = vmatpush1.bf16.msra.mxu1 %v5980_v33 }
  0xaa   :  { %1075 = vmatpush1.bf16.msra.mxu0 %v5969_v28  ;;  %965 = vmatprep.subr.bf16.mxu1 %v5984_v35 }
  0xab   :  { %1076 = vmatprep.subr.bf16.mxu0 %v5977_v30 }
  0xad   :  { %5879 = vmatmul.mubr.msk.bf16.gmra.mrb[8].mxu0 %vm220_vm2, %v5948_v19  ;;  %966 = vmatpush1.bf16.msra.mxu1 %v5986_v37  ;;  %v5999_v37 = vld [vmem:[#allocation8 + $0x10] ss:$40 sps:$4 sm:$0xff]  }
  0xae   :  { %5882 = vmatprep.mubr.msk.bf16.mxu0 %vm220_vm2, %v5949_v20  ;;  %1077 = vmatpush1.bf16.msra.mxu0 %v5975_v32 }
  0xaf   :  { %1078 = vmatprep.subr.bf16.mxu0 %v5983_v34  ;;  %967 = vmatprep.subr.bf16.mxu1 %v5990_v39 }
  0xb1   :  { %968 = vmatpush1.bf16.msra.mxu1 %v5992_v41 }
  0xb2   :  { %1079 = vmatpush1.bf16.msra.mxu0 %v5981_v36  ;;  %969 = vmatprep.subr.bf16.mxu1 %v5996_v43  ;;  %v6010_v43 = vld [vmem:[#allocation8 + $0x6c] ss:$40 sps:$4 sm:$0xff]  }
  0xb3   :  { %1080 = vmatprep.subr.bf16.mxu0 %v5989_v38  ;;  %v6002_v38 = vld [vmem:[#allocation8 + $0x18] ss:$40 sps:$4 sm:$0xff]  }
  0xb5   :  { %5883 = vmatmul.mubr.msk.bf16.gmra.mrb[12].mxu0 %vm220_vm2, %v5950_v21  ;;  %970 = vmatpush1.bf16.msra.mxu1 %v5998_v45 }
  0xb6   :  { %1081 = vmatpush1.bf16.msra.mxu0 %v5987_v40  ;;  %1100 = vmatprep.mubr.bf16.mxu0 %v7160_v46 }
  0xb7   :  { %1082 = vmatprep.subr.bf16.mxu0 %v5995_v42  ;;  %1181 = vmatprep.subr.bf16.mxu1 %v6001_v47  ;;  %v6007_v42 = vld [vmem:[#allocation8 + $0x64] ss:$40 sps:$4 sm:$0xff]  }
  0xba   :  { %1083 = vmatpush1.bf16.msra.mxu0 %v5993_v44 }
  0xbb   :  { %1294 = vmatprep.subr.bf16.mxu0 %v6004_v48 }
 0x170   :  { %v5872_v50 = vpop.f32.mrb[0].mxu0 }
 0x171   :  { %v295_v51 = vadd.f32 %v5872_v50, %v7357_v49  ;;  %v286_v52 = vpop.f32.mrb[1].mxu0 }
 0x172   :  { %v287_v53 = vadd.f32 %v7357_v49, %v286_v52  ;;  %v5873_v54 = vpop.f32.mrb[2].mxu0 }
 0x173   :  { %v351_v55 = vmul.f32 0.5, %v295_v51  ;;  %v298_v56 = vadd.f32 %v5873_v54, %v7357_v49  ;;  %v289_v57 = vpop.f32.mrb[3].mxu0  ;;  %v6005_v54 = vld [vmem:[#allocation8 + $0x60] ss:$40 sps:$4 sm:$0xff]  }
 0x174   :  { %v349_v58 = vmul.f32 0.5, %v287_v53  ;;  %v290_v59 = vadd.f32 %v7357_v49, %v289_v57 }
 0x175   :  { %6583 = vtanh.f32 %v351_v55  ;;  %v352_v60 = vmul.f32 0.5, %v298_v56 }
 0x176   :  { %6585 = vtanh.f32 %v349_v58  ;;  %v350_v61 = vmul.f32 0.5, %v290_v59  ;;  %v6008_v59 = vld [vmem:[#allocation8 + $0x68] ss:$40 sps:$4 sm:$0xff]  }
 0x177   :  { %6587 = vtanh.f32 %v352_v60 }
 0x178   :  { %6589 = vtanh.f32 %v350_v61  ;;  %v5876_v62 = vpop.f32.mrb[4].mxu0 }
 0x179   :  { %v311_v63 = vadd.f32 %v5876_v62, %v7357_v49  ;;  %v302_v0 = vpop.f32.mrb[5].mxu0 }
 0x17a   :  { %v303_v1 = vadd.f32 %v7357_v49, %v302_v0  ;;  %v5877_v2 = vpop.f32.mrb[6].mxu0  ;;  %v6013_v0 = vld [vmem:[#allocation8 + $0xb4] ss:$40 sps:$4 sm:$0xff]  }
 0x17b   :  { %v7365_v3 = vmul.f32 0.5, %v311_v63  ;;  %v314_v4 = vadd.f32 %v5877_v2, %v7357_v49  ;;  %v305_v5 = vpop.f32.mrb[7].mxu0 }
 0x17c   :  { %v7368_v6 = vmul.f32 0.5, %v303_v1  ;;  %v306_v7 = vadd.f32 %v7357_v49, %v305_v5  ;;  %v6016_v1 = vld [vmem:[#allocation8 + $0xbc] ss:$40 sps:$4 sm:$0xff]  }
 0x17d   :  { %6591 = vtanh.f32 %v7365_v3  ;;  %v7372_v8 = vmul.f32 0.5, %v314_v4 }
 0x17e   :  { %6593 = vtanh.f32 %v7368_v6  ;;  %v7375_v9 = vmul.f32 0.5, %v306_v7 }
 0x17f   :  { %v6584_v10 = vpop.eup %6583  ;;  %6595 = vtanh.f32 %v7372_v8 }
 0x180   :  { %v6586_v11 = vpop.eup %6585  ;;  %v383_v12 = vadd.f32 1.0, %v6584_v10  ;;  %6597 = vtanh.f32 %v7375_v9  ;;  %v5880_v13 = vpop.f32.mrb[8].mxu0  ;;  %v6014_v10 = vld [vmem:[#allocation8 + $0xb8] ss:$40 sps:$4 sm:$0xff]  }
 0x181   :  { %v6588_v14 = vpop.eup %6587  ;;  %v381_v15 = vadd.f32 1.0, %v6586_v11  ;;  %v327_v16 = vadd.f32 %v5880_v13, %v7357_v49  ;;  %v318_v17 = vpop.f32.mrb[9].mxu0  ;;  %v6022_v13 = vld [vmem:[#allocation8 + $0x10c] ss:$40 sps:$4 sm:$0xff]  }
 0x182   :  { %v6590_v18 = vpop.eup %6589  ;;  %v384_v19 = vadd.f32 1.0, %v6588_v14  ;;  %v319_v20 = vadd.f32 %v7357_v49, %v318_v17  ;;  %v5881_v21 = vpop.f32.mrb[10].mxu0  ;;  %v399_v26 = vmul.f32 %v383_v12, %v351_v55  ;;  %v6019_v12 = vld [vmem:[#allocation8 + $0x104] ss:$40 sps:$4 sm:$0xff]  }
 0x183   :  { %v382_v22 = vadd.f32 1.0, %v6590_v18  ;;  %v7381_v23 = vmul.f32 0.5, %v327_v16  ;;  %v330_v24 = vadd.f32 %v5881_v21, %v7357_v49  ;;  %v321_v25 = vpop.f32.mrb[11].mxu0  ;;  %v397_v30 = vmul.f32 %v381_v15, %v349_v58  ;;  %v6017_v21 = vld [vmem:[#allocation8 + $0x100] ss:$40 sps:$4 sm:$0xff]  }
 0x184   :  { %v400_v27 = vmul.f32 %v384_v19, %v352_v60  ;;  %v7384_v28 = vmul.f32 0.5, %v319_v20  ;;  %v322_v29 = vadd.f32 %v7357_v49, %v321_v25  ;;  %v6025_v25 = vld [vmem:[#allocation8 + $0x154] ss:$40 sps:$4 sm:$0xff]  }
 0x185   :  { %v398_v31 = vmul.f32 %v382_v22, %v350_v61  ;;  %6599 = vtanh.f32 %v7381_v23  ;;  %v7388_v32 = vmul.f32 0.5, %v330_v24  ;;  %v6020_v22 = vld [vmem:[#allocation8 + $0x108] ss:$40 sps:$4 sm:$0xff]  }
 0x186   :  { %v7390_v33 = vpack.c.bf16 %v400_v27, %v399_v26  ;;  %6601 = vtanh.f32 %v7384_v28  ;;  %v7393_v34 = vmul.f32 0.5, %v322_v29  ;;  %v6028_v26 = vld [vmem:[#allocation8 + $0x15c] ss:$40 sps:$4 sm:$0xff]  }
 0x187   :  { %v6592_v35 = vpop.eup %6591  ;;  %v7395_v36 = vpack.c.bf16 %v398_v31, %v397_v30  ;;  %6603 = vtanh.f32 %v7388_v32  ;;  %v6026_v31 = vld [vmem:[#allocation8 + $0x158] ss:$40 sps:$4 sm:$0xff]  }
 0x188   :  { %v6594_v39 = vpop.eup %6593  ;;  %v387_v40 = vadd.f32 1.0, %v6592_v35  ;;  %6605 = vtanh.f32 %v7393_v34  ;;  %v5884_v41 = vpop.f32.mrb[12].mxu0 }
 0x189   :  { %v6596_v44 = vpop.eup %6595  ;;  %v385_v45 = vadd.f32 1.0, %v6594_v39  ;;  %988 = vmatmul.mubr.bf16.vlgmr.msra.gmra.mrb[0].mxu1 %v7395_v36  ;;  %1101 = vmatmul.mubr.bf16.vlgmr.msra.gmra.mrb[16].mxu0 %v7395_v36  ;;  %v343_v47 = vadd.f32 %v5884_v41, %v7357_v49  ;;  %v334_v48 = vpop.f32.mrb[13].mxu0 }
 0x18a   :  { %v6598_v50 = vpop.eup %6597  ;;  %v388_v51 = vadd.f32 1.0, %v6596_v44  ;;  %997 = vmatprep.mubr.bf16.mxu1 %v7160_v46  ;;  %1110 = vmatprep.mubr.bf16.mxu0 %v7160_v46  ;;  %v335_v52 = vadd.f32 %v7357_v49, %v334_v48  ;;  %v5885_v53 = vpop.f32.mrb[14].mxu0  ;;  %v403_v60 = vmul.f32 %v387_v40, %v7365_v3 }
 0x18b   :  { %v386_v55 = vadd.f32 1.0, %v6598_v50  ;;  %v7405_v56 = vmul.f32 0.5, %v343_v47  ;;  %v346_v57 = vadd.f32 %v5885_v53, %v7357_v49  ;;  %v337_v58 = vpop.f32.mrb[15].mxu0  ;;  %1182 = vmatpush1.bf16.msra.mxu1 %v5999_v37  ;;  %1295 = vmatpush1.bf16.msra.mxu0 %v6002_v38  ;;  %v401_v2 = vmul.f32 %v385_v45, %v7368_v6  ;;  %v6011_v6 = vld [vmem:[#allocation8 + $0xb0] ss:$40 sps:$4 sm:$0xff]  }
 0x18c   :  { %v404_v61 = vmul.f32 %v388_v51, %v7372_v8  ;;  %v7410_v62 = vmul.f32 0.5, %v335_v52  ;;  %v338_v63 = vadd.f32 %v7357_v49, %v337_v58  ;;  %1183 = vmatprep.subr.bf16.mxu1 %v6007_v42  ;;  %1296 = vmatprep.subr.bf16.mxu0 %v6010_v43  ;;  %v6034_v38 = vld [vmem:[#allocation8 + $0x1ac] ss:$40 sps:$4 sm:$0xff]   ;;  %v6029_v45 = vld [vmem:[#allocation8 + $0x1a0] ss:$40 sps:$4 sm:$0xff]  }
 0x18d   :  { %v402_v4 = vmul.f32 %v386_v55, %v7375_v9  ;;  %6607 = vtanh.f32 %v7405_v56  ;;  %v7416_v5 = vmul.f32 0.5, %v346_v57  ;;  %v6032_v47 = vld [vmem:[#allocation8 + $0x1a8] ss:$40 sps:$4 sm:$0xff]   ;;  %v6037_v50 = vld [vmem:[#allocation8 + $0x1f4] ss:$40 sps:$4 sm:$0xff]  }
 0x18e   :  { %v7418_v7 = vpack.c.bf16 %v404_v61, %v403_v60  ;;  %6609 = vtanh.f32 %v7410_v62  ;;  %v7421_v3 = vmul.f32 0.5, %v338_v63  ;;  %v6040_v51 = vld [vmem:[#allocation8 + $0x1fc] ss:$40 sps:$4 sm:$0xff]   ;;  %v6035_v55 = vld [vmem:[#allocation8 + $0x1f0] ss:$40 sps:$4 sm:$0xff]  }
 0x18f   :  { %v6600_v8 = vpop.eup %6599  ;;  %v7423_v49 = vpack.c.bf16 %v402_v4, %v401_v2  ;;  %6611 = vtanh.f32 %v7416_v5  ;;  %1184 = vmatpush1.bf16.msra.mxu1 %v6005_v54  ;;  %1297 = vmatpush1.bf16.msra.mxu0 %v6008_v59  ;;  %v6043_v57 = vld [vmem:[#allocation8 + $0x244] ss:$40 sps:$4 sm:$0xff]   ;;  %v6041_v59 = vld [vmem:[#allocation8 + $0x240] ss:$40 sps:$4 sm:$0xff]   ;;  %v6052_v63 = vld [vmem:[#allocation8 + $0x74] ss:$40 sps:$4 sm:$0xff]  }
 0x190   :  { %v6602_v9 = vpop.eup %6601  ;;  %v391_v11 = vadd.f32 1.0, %v6600_v8  ;;  %6613 = vtanh.f32 %v7421_v3  ;;  %1185 = vmatprep.subr.bf16.mxu1 %v6013_v0  ;;  %1298 = vmatprep.subr.bf16.mxu0 %v6016_v1  ;;  %v6046_v58 = vld [vmem:[#allocation8 + $0x24c] ss:$40 sps:$4 sm:$0xff]   ;;  %v6044_v60 = vld [vmem:[#allocation8 + $0x248] ss:$40 sps:$4 sm:$0xff]  }
 0x191   :  { %v6604_v14 = vpop.eup %6603  ;;  %v389_v15 = vadd.f32 1.0, %v6602_v9  ;;  %998 = vmatmul.mubr.bf16.gmra.mrb[4].mxu1 %v7390_v33  ;;  %1111 = vmatmul.mubr.bf16.gmra.mrb[20].mxu0 %v7390_v33  ;;  %v6049_v61 = vld [vmem:[#allocation8 + $0x24] ss:$40 sps:$4 sm:$0xff]   ;;  %v6050_v0 = vld [vmem:[#allocation8 + $0x70] ss:$40 sps:$4 sm:$0xff]  }
 0x192   :  { %v6606_v16 = vpop.eup %6605  ;;  %v407_v17 = vmul.f32 %v391_v11, %v7381_v23  ;;  %v392_v18 = vadd.f32 1.0, %v6604_v14  ;;  %1007 = vmatprep.mubr.bf16.mxu1 %v7160_v46  ;;  %1120 = vmatprep.mubr.bf16.mxu0 %v7160_v46  ;;  %v6055_v1 = vld [vmem:[#allocation8 + $0xc4] ss:$40 sps:$4 sm:$0xff]   ;;  %v6053_v2 = vld [vmem:[#allocation8 + $0xc0] ss:$40 sps:$4 sm:$0xff]  }
 0x193   :  { %v405_v19 = vmul.f32 %v389_v15, %v7384_v28  ;;  %v390_v20 = vadd.f32 1.0, %v6606_v16  ;;  %1186 = vmatpush1.bf16.msra.mxu1 %v6011_v6  ;;  %1299 = vmatpush1.bf16.msra.mxu0 %v6014_v10  ;;  %v6023_v28 = vld [vmem:[#allocation8 + $0x150] ss:$40 sps:$4 sm:$0xff]   ;;  %v6058_v4 = vld [vmem:[#allocation8 + $0x114] ss:$40 sps:$4 sm:$0xff]  }
 0x194   :  { %v408_v24 = vmul.f32 %v392_v18, %v7388_v32  ;;  %1187 = vmatprep.subr.bf16.mxu1 %v6019_v12  ;;  %1300 = vmatprep.subr.bf16.mxu0 %v6022_v13  ;;  %v6031_v32 = vld [vmem:[#allocation8 + $0x1a4] ss:$40 sps:$4 sm:$0xff]   ;;  %v6059_v8 = vld [vmem:[#allocation8 + $0x160] ss:$40 sps:$4 sm:$0xff]   ;;  %v6064_v6 = vld [vmem:[#allocation8 + $0x1b4] ss:$40 sps:$4 sm:$0xff]  }
 0x195   :  { %v406_v23 = vmul.f32 %v390_v20, %v7393_v34  ;;  %v6062_v10 = vld [vmem:[#allocation8 + $0x1b0] ss:$40 sps:$4 sm:$0xff]   ;;  %v6067_v9 = vld [vmem:[#allocation8 + $0x204] ss:$40 sps:$4 sm:$0xff]   ;;  %v6065_v11 = vld [vmem:[#allocation8 + $0x200] ss:$40 sps:$4 sm:$0xff]  }
 0x196   :  { %v7435_v27 = vpack.c.bf16 %v408_v24, %v407_v17  ;;  %v6070_v12 = vld [vmem:[#allocation8 + $0x254] ss:$40 sps:$4 sm:$0xff]   ;;  %v6068_v13 = vld [vmem:[#allocation8 + $0x250] ss:$40 sps:$4 sm:$0xff]  }
 0x197   :  { %v6608_v29 = vpop.eup %6607  ;;  %v7437_v30 = vpack.c.bf16 %v406_v23, %v405_v19  ;;  %1188 = vmatpush1.bf16.msra.mxu1 %v6017_v21  ;;  %1301 = vmatpush1.bf16.msra.mxu0 %v6020_v22  ;;  %v6071_v14 = vld [vmem:[#allocation11] ss:$16 sps:$4 sm:$0xff]   ;;  %v6074_v15 = vld [vmem:[#allocation11 + $0x8] ss:$16 sps:$4 sm:$0xff]   ;;  %v6085_v18 = vld [vmem:[#allocation11 + $0x44] ss:$16 sps:$4 sm:$0xff]  }
 0x198   :  { %v6610_v35 = vpop.eup %6609  ;;  %v395_v37 = vadd.f32 1.0, %v6608_v29  ;;  %1189 = vmatprep.subr.bf16.mxu1 %v6025_v25  ;;  %1302 = vmatprep.subr.bf16.mxu0 %v6028_v26  ;;  %v6077_v16 = vld [vmem:[#allocation11 + $0x20] ss:$16 sps:$4 sm:$0xff]   ;;  %v6080_v17 = vld [vmem:[#allocation11 + $0x28] ss:$16 sps:$4 sm:$0xff]  }
 0x199   :  { %v6612_v39 = vpop.eup %6611  ;;  %v393_v40 = vadd.f32 1.0, %v6610_v35  ;;  %1008 = vmatmul.mubr.bf16.gmra.mrb[8].mxu1 %v7423_v49  ;;  %1121 = vmatmul.mubr.bf16.gmra.mrb[24].mxu0 %v7423_v49  ;;  %v6088_v19 = vld [vmem:[#allocation11 + $0x4c] ss:$16 sps:$4 sm:$0xff]   ;;  %v6083_v20 = vld [vmem:[#allocation11 + $0x40] ss:$16 sps:$4 sm:$0xff]  }
 0x19a   :  { %v6614_v34 = vpop.eup %6613  ;;  %v411_v41 = vmul.f32 %v395_v37, %v7405_v56  ;;  %v396_v42 = vadd.f32 1.0, %v6612_v39  ;;  %1017 = vmatprep.mubr.bf16.mxu1 %v7160_v46  ;;  %1130 = vmatprep.mubr.bf16.mxu0 %v7160_v46  ;;  %v6038_v56 = vld [vmem:[#allocation8 + $0x1f8] ss:$40 sps:$4 sm:$0xff]  }
 0x19b   :  { %v409_v43 = vmul.f32 %v393_v40, %v7410_v62  ;;  %v394_v44 = vadd.f32 1.0, %v6614_v34  ;;  %1190 = vmatpush1.bf16.msra.mxu1 %v6023_v28  ;;  %1303 = vmatpush1.bf16.msra.mxu0 %v6026_v31  ;;  %v6047_v62 = vld [vmem:[#allocation8 + $0x20] ss:$40 sps:$4 sm:$0xff]  }
 0x19c   :  { %v412_v48 = vmul.f32 %v396_v42, %v7416_v5  ;;  %1191 = vmatprep.subr.bf16.mxu1 %v6031_v32  ;;  %1304 = vmatprep.subr.bf16.mxu0 %v6034_v38  ;;  %v6056_v5 = vld [vmem:[#allocation8 + $0x110] ss:$40 sps:$4 sm:$0xff]   ;;  %v7161_v42 = vmov 0.0  }
 0x19d   :  { %v410_v52 = vmul.f32 %v394_v44, %v7421_v3  ;;  %v6061_v3 = vld [vmem:[#allocation8 + $0x164] ss:$40 sps:$4 sm:$0xff]   ;;  %141 = vst [vmem:[#allocation2 + $0x10] sm:$0xf] %v7161_v42 }
 0x19e   :  { %v7447_v53 = vpack.c.bf16 %v412_v48, %v411_v41  ;;  %v6086_v21 = vld [vmem:[#allocation11 + $0x48] ss:$16 sps:$4 sm:$0xff]   ;;  %v6091_v22 = vld [vmem:[#allocation11 + $0x64] ss:$16 sps:$4 sm:$0xff]   ;;  %v6094_v24 = vld [vmem:[#allocation11 + $0x6c] ss:$16 sps:$4 sm:$0xff]  }
 0x19f   :  { %v7449_v54 = vpack.c.bf16 %v410_v52, %v409_v43  ;;  %1192 = vmatpush1.bf16.msra.mxu1 %v6029_v45  ;;  %1305 = vmatpush1.bf16.msra.mxu0 %v6032_v47  ;;  %v6089_v25 = vld [vmem:[#allocation11 + $0x60] ss:$16 sps:$4 sm:$0xff]   ;;  %v6092_v26 = vld [vmem:[#allocation11 + $0x68] ss:$16 sps:$4 sm:$0xff]   ;;  %v6097_v32 = vld [vmem:[#allocation11 + $0x84] ss:$16 sps:$4 sm:$0xff]  }
 0x1a0   :  { %1193 = vmatprep.subr.bf16.mxu1 %v6037_v50  ;;  %1306 = vmatprep.subr.bf16.mxu0 %v6040_v51  ;;  %v6100_v38 = vld [vmem:[#allocation11 + $0x8c] ss:$16 sps:$4 sm:$0xff]   ;;  %v6095_v34 = vld [vmem:[#allocation11 + $0x80] ss:$16 sps:$4 sm:$0xff]   ;;  %v6098_v41 = vld [vmem:[#allocation11 + $0x88] ss:$16 sps:$4 sm:$0xff]  }
 0x1a1   :  { %1018 = vmatmul.mubr.bf16.gmra.mrb[12].mxu1 %v7418_v7  ;;  %1131 = vmatmul.mubr.bf16.gmra.mrb[28].mxu0 %v7418_v7  ;;  %v6103_v51 = vld [vmem:[#allocation11 + $0xa4] ss:$16 sps:$4 sm:$0xff]   ;;  %v6106_v52 = vld [vmem:[#allocation11 + $0xac] ss:$16 sps:$4 sm:$0xff]  }
 0x1a2   :  { %1027 = vmatprep.mubr.bf16.mxu1 %v7160_v46  ;;  %1140 = vmatprep.mubr.bf16.mxu0 %v7160_v46 }
 0x1a3   :  { %1194 = vmatpush1.bf16.msra.mxu1 %v6035_v55  ;;  %1307 = vmatpush1.bf16.msra.mxu0 %v6038_v56 }
 0x1a4   :  { %1195 = vmatprep.subr.bf16.mxu1 %v6043_v57  ;;  %1308 = vmatprep.subr.bf16.mxu0 %v6046_v58  ;;  %v6101_v57 = vld [vmem:[#allocation11 + $0xa0] ss:$16 sps:$4 sm:$0xff]   ;;  %v6104_v58 = vld [vmem:[#allocation11 + $0xa8] ss:$16 sps:$4 sm:$0xff]  }
 0x1a7   :  { %1196 = vmatpush1.bf16.msra.mxu1 %v6041_v59  ;;  %1309 = vmatpush1.bf16.msra.mxu0 %v6044_v60 }
 0x1a8   :  { %1407 = vmatprep.subr.bf16.mxu1 %v6049_v61 }
 0x1a9   :  { %1028 = vmatmul.mubr.bf16.gmra.mrb[16].mxu1 %v7437_v30  ;;  %1141 = vmatmul.mubr.bf16.gmra.mrb[32].mxu0 %v7437_v30 }
 0x1aa   :  { %1037 = vmatprep.mubr.bf16.mxu1 %v7160_v46  ;;  %1150 = vmatprep.mubr.bf16.mxu0 %v7160_v46 }
 0x1b1   :  { %1038 = vmatmul.mubr.bf16.gmra.mrb[20].mxu1 %v7435_v27  ;;  %1151 = vmatmul.mubr.bf16.gmra.mrb[36].mxu0 %v7435_v27 }
 0x1b2   :  { %1047 = vmatprep.mubr.bf16.mxu1 %v7160_v46  ;;  %1160 = vmatprep.mubr.bf16.mxu0 %v7160_v46 }
 0x1b9   :  { %1048 = vmatmul.mubr.bf16.gmra.mrb[24].mxu1 %v7449_v54  ;;  %1161 = vmatmul.mubr.bf16.gmra.mrb[40].mxu0 %v7449_v54 }
 0x1ba   :  { %1057 = vmatprep.mubr.bf16.mxu1 %v7160_v46  ;;  %1170 = vmatprep.mubr.bf16.mxu0 %v7160_v46 }
 0x1c1   :  { %1058 = vmatmul.mubr.bf16.gmra.mrb[28].mxu1 %v7447_v53  ;;  %1171 = vmatmul.mubr.bf16.gmra.mrb[44].mxu0 %v7447_v53 }
 0x1c2   :  { %1213 = vmatprep.mubr.bf16.mxu1 %v7160_v46  ;;  %1326 = vmatprep.mubr.bf16.mxu0 %v7160_v46 }
 0x1c9   :  { %1214 = vmatmul.mubr.bf16.vlgmr.msra.gmra.mrb[32].mxu1 %v7395_v36  ;;  %1327 = vmatmul.mubr.bf16.vlgmr.msra.gmra.mrb[48].mxu0 %v7395_v36 }
 0x1ca   :  { %1223 = vmatprep.mubr.bf16.mxu1 %v7160_v46  ;;  %1336 = vmatprep.mubr.bf16.mxu0 %v7160_v46 }
 0x1cb   :  { %1408 = vmatpush1.bf16.msra.mxu1 %v6047_v62 }
 0x1cc   :  { %1409 = vmatprep.subr.bf16.mxu1 %v6052_v63 }
 0x1cf   :  { %1410 = vmatpush1.bf16.msra.mxu1 %v6050_v0 }
 0x1d0   :  { %1411 = vmatprep.subr.bf16.mxu1 %v6055_v1 }
 0x1d1   :  { %1224 = vmatmul.mubr.bf16.gmra.mrb[36].mxu1 %v7390_v33  ;;  %1337 = vmatmul.mubr.bf16.gmra.mrb[52].mxu0 %v7390_v33 }
 0x1d2   :  { %1233 = vmatprep.mubr.bf16.mxu1 %v7160_v46  ;;  %1346 = vmatprep.mubr.bf16.mxu0 %v7160_v46 }
 0x1d3   :  { %1412 = vmatpush1.bf16.msra.mxu1 %v6053_v2 }
 0x1d4   :  { %1413 = vmatprep.subr.bf16.mxu1 %v6058_v4 }
 0x1d7   :  { %1414 = vmatpush1.bf16.msra.mxu1 %v6056_v5 }
 0x1d8   :  { %1415 = vmatprep.subr.bf16.mxu1 %v6061_v3 }
 0x1d9   :  { %1234 = vmatmul.mubr.bf16.gmra.mrb[40].mxu1 %v7423_v49  ;;  %1347 = vmatmul.mubr.bf16.gmra.mrb[56].mxu0 %v7423_v49 }
 0x1da   :  { %1243 = vmatprep.mubr.bf16.mxu1 %v7160_v46  ;;  %1356 = vmatprep.mubr.bf16.mxu0 %v7160_v46 }
 0x1db   :  { %1416 = vmatpush1.bf16.msra.mxu1 %v6059_v8 }
 0x1dc   :  { %1417 = vmatprep.subr.bf16.mxu1 %v6064_v6  ;;  %v7162_v6 = vmov 1983009808  }
 0x1df   :  { %1418 = vmatpush1.bf16.msra.mxu1 %v6062_v10  ;;  %v2446_v10 = vunpack.c.l.s4 %v7162_v6 }
 0x1e0   :  { %1419 = vmatprep.subr.bf16.mxu1 %v6067_v9 }
 0x1e1   :  { %1244 = vmatmul.mubr.bf16.gmra.mrb[44].mxu1 %v7418_v7  ;;  %1357 = vmatmul.mubr.bf16.gmra.mrb[60].mxu0 %v7418_v7 }
 0x1e2   :  { %1253 = vmatprep.mubr.bf16.mxu1 %v7160_v46  ;;  %1366 = vmatprep.mubr.bf16.mxu0 %v7160_v46 }
 0x1e3   :  { %1420 = vmatpush1.bf16.msra.mxu1 %v6065_v11 }
 0x1e4   :  { %1421 = vmatprep.subr.bf16.mxu1 %v6070_v12 }
 0x1e7   :  { %1422 = vmatpush1.bf16.msra.mxu1 %v6068_v13 }
 0x1e9   :  { %1254 = vmatmul.mubr.bf16.gmra.mrb[48].mxu1 %v7437_v30  ;;  %1367 = vmatmul.mubr.bf16.gmra.mrb[64].mxu0 %v7437_v30 }
 0x1ea   :  { %1263 = vmatprep.mubr.bf16.mxu1 %v7160_v46  ;;  %1376 = vmatprep.mubr.bf16.mxu0 %v7160_v46 }
 0x1f1   :  { %1264 = vmatmul.mubr.bf16.gmra.mrb[52].mxu1 %v7435_v27  ;;  %1377 = vmatmul.mubr.bf16.gmra.mrb[68].mxu0 %v7435_v27 }
 0x1f2   :  { %1273 = vmatprep.mubr.bf16.mxu1 %v7160_v46  ;;  %1386 = vmatprep.mubr.bf16.mxu0 %v7160_v46 }
 0x1f9   :  { %1274 = vmatmul.mubr.bf16.gmra.mrb[56].mxu1 %v7449_v54  ;;  %1387 = vmatmul.mubr.bf16.gmra.mrb[72].mxu0 %v7449_v54 }
 0x1fa   :  { %1283 = vmatprep.mubr.bf16.mxu1 %v7160_v46  ;;  %1396 = vmatprep.mubr.bf16.mxu0 %v7160_v46 }
 0x201   :  { %1284 = vmatmul.mubr.bf16.gmra.mrb[60].mxu1 %v7447_v53  ;;  %1397 = vmatmul.mubr.bf16.gmra.mrb[76].mxu0 %v7447_v53 }
 0x202   :  { %1439 = vmatprep.mubr.bf16.mxu1 %v7160_v46 }
 0x209   :  { %1440 = vmatmul.mubr.bf16.vlgmr.msra.gmra.mrb[64].mxu1 %v7395_v36  ;;  %v6073_v36 = vld [vmem:[#allocation11 + $0x4] ss:$16 sps:$4 sm:$0xff]  }
 0x20a   :  { %1449 = vmatprep.mubr.bf16.mxu1 %v7160_v46  ;;  %4579 = vmatprep.subr.bf16.mxu0 %v6073_v36 }
 0x20b   :  { %4580 = vmatpush1.bf16.msra.mxu0 %v6071_v14 }
 0x211   :  { %1450 = vmatmul.mubr.bf16.gmra.mrb[68].mxu1 %v7390_v33  ;;  %v6076_v33 = vld [vmem:[#allocation11 + $0xc] ss:$16 sps:$4 sm:$0xff]  }
 0x212   :  { %1459 = vmatprep.mubr.bf16.mxu1 %v7160_v46  ;;  %4784 = vmatprep.subr.bf16.mxu1 %v6076_v33 }
 0x213   :  { %4785 = vmatpush1.bf16.msra.mxu1 %v6074_v15 }
 0x219   :  { %1460 = vmatmul.mubr.bf16.gmra.mrb[72].mxu1 %v7423_v49  ;;  %v6082_v49 = vld [vmem:[#allocation11 + $0x2c] ss:$16 sps:$4 sm:$0xff]  }
 0x21a   :  { %1469 = vmatprep.mubr.bf16.mxu1 %v7160_v46  ;;  %4786 = vmatprep.subr.bf16.mxu1 %v6082_v49 }
 0x21b   :  { %4787 = vmatpush1.bf16.msra.mxu1 %v6080_v17 }
 0x21c   :  { %4788 = vmatprep.subr.bf16.mxu1 %v6088_v19 }
 0x21f   :  { %4789 = vmatpush1.bf16.msra.mxu1 %v6086_v21 }
 0x220   :  { %4790 = vmatprep.subr.bf16.mxu1 %v6094_v24  ;;  %v6112_v24 = vld [vmem:[#allocation11 + $0xcc] ss:$16 sps:$4 sm:$0xff]  }
 0x221   :  { %1470 = vmatmul.mubr.bf16.gmra.mrb[76].mxu1 %v7418_v7  ;;  %v6079_v7 = vld [vmem:[#allocation11 + $0x24] ss:$16 sps:$4 sm:$0xff]  }
 0x222   :  { %1479 = vmatprep.mubr.bf16.mxu1 %v7160_v46  ;;  %4581 = vmatprep.subr.bf16.mxu0 %v6079_v7 }
 0x223   :  { %4582 = vmatpush1.bf16.msra.mxu0 %v6077_v16  ;;  %4791 = vmatpush1.bf16.msra.mxu1 %v6092_v26 }
 0x224   :  { %4583 = vmatprep.subr.bf16.mxu0 %v6085_v18  ;;  %4792 = vmatprep.subr.bf16.mxu1 %v6100_v38 }
 0x227   :  { %4584 = vmatpush1.bf16.msra.mxu0 %v6083_v20  ;;  %4793 = vmatpush1.bf16.msra.mxu1 %v6098_v41  ;;  %v6107_v41 = vld [vmem:[#allocation11 + $0xc0] ss:$16 sps:$4 sm:$0xff]  }
 0x228   :  { %4585 = vmatprep.subr.bf16.mxu0 %v6091_v22  ;;  %4794 = vmatprep.subr.bf16.mxu1 %v6106_v52  ;;  %v6109_v22 = vld [vmem:[#allocation11 + $0xc4] ss:$16 sps:$4 sm:$0xff]  }
 0x229   :  { %1480 = vmatmul.mubr.bf16.gmra.mrb[80].mxu1 %v7437_v30  ;;  %v7523_v30 = vld [vmem:[#allocation9] sm:$0xff] }
 0x22a   :  { %1489 = vmatprep.mubr.bf16.mxu1 %v7160_v46 }
 0x22b   :  { %4586 = vmatpush1.bf16.msra.mxu0 %v6089_v25  ;;  %4795 = vmatpush1.bf16.msra.mxu1 %v6104_v58 }
 0x22c   :  { %4587 = vmatprep.subr.bf16.mxu0 %v6097_v32  ;;  %4796 = vmatprep.subr.bf16.mxu1 %v6112_v24 }
 0x22f   :  { %4588 = vmatpush1.bf16.msra.mxu0 %v6095_v34 }
 0x230   :  { %4589 = vmatprep.subr.bf16.mxu0 %v6103_v51 }
 0x231   :  { %1490 = vmatmul.mubr.bf16.gmra.mrb[84].mxu1 %v7435_v27 }
 0x232   :  { %1499 = vmatprep.mubr.bf16.mxu1 %v7160_v46 }
 0x233   :  { %4590 = vmatpush1.bf16.msra.mxu0 %v6101_v57 }
 0x234   :  { %4591 = vmatprep.subr.bf16.mxu0 %v6109_v22 }
 0x237   :  { %4592 = vmatpush1.bf16.msra.mxu0 %v6107_v41 }
 0x239   :  { %1500 = vmatmul.mubr.bf16.gmra.mrb[88].mxu1 %v7449_v54 }
 0x23a   :  { %1509 = vmatprep.mubr.bf16.mxu1 %v7160_v46  ;;  %v505_v46 = vlaneseq }
 0x23c   :  { %v7517_v23 = vshrl.u32 %v505_v46, 7  ;;  %v2447_v46 = vunpack.c.0.s8 %v2446_v10 }
 0x23e   :  { %8948 = vst [vmem:[#allocation24_spill] sm:$0xff] %v7517_v23  ;;  %v7520_v27 = vsub.s32 0, %v7517_v23  ;;  %v8936_v29 = vsub.s32 2, %v7517_v23  ;;  %v7526_v28 = vsub.s32 1, %v7517_v23  ;;  %v8937_v31 = vsub.s32 3, %v7517_v23 }
 0x23f   :  { %v523_v11 = vsub.s32 4, %v7517_v23  ;;  %v531_v33 = vsub.s32 6, %v7517_v23  ;;  %v527_v14 = vsub.s32 5, %v7517_v23  ;;  %v535_v17 = vsub.s32 7, %v7517_v23 }
 0x240   :  { %8949 = vst [vmem:[#allocation25_spill] sm:$0xff] %v7520_v27  ;;  %8950 = vst [vmem:[#allocation26_spill] sm:$0xff] %v7526_v28  ;;  %v7531_v35 = vrot.slane %v7523_v30, %v7520_v27  ;;  %v7536_v37 = vrot.slane %v7523_v30, %v8936_v29  ;;  %v7540_v39 = vrot.slane %v7523_v30, %v7526_v28  ;;  %v6152_v27 = vld [vmem:[#allocation11 + $0x1a8] ss:$16 sps:$4 sm:$0xff]  }
 0x241   :  { %1510 = vmatmul.mubr.bf16.gmra.mrb[92].mxu1 %v7447_v53  ;;  %v7545_v40 = vrot.slane %v7523_v30, %v8937_v31  ;;  %v7606_v52 = vsub.s32 %v2447_v46, %v7517_v23  ;;  %v7615_v58 = vrot.slane %v7523_v30, %v531_v33 }
 0x243   :  { %8952 = vst [vmem:[#allocation28_spill] sm:$0xff] %v7615_v58 }
 0x25c   :  { %v989_v43 = vpop.f32.mrb[0].mxu1  ;;  %v1102_v44 = vpop.f32.mrb[16].mxu0 }
 0x25d   :  { %v990_v45 = vadd.f32 %v989_v43, %v7531_v35  ;;  %v1103_v47 = vadd.f32 %v1102_v44, %v7536_v37  ;;  %v991_v48 = vpop.f32.mrb[1].mxu1  ;;  %v1104_v50 = vpop.f32.mrb[17].mxu0 }
 0x25e   :  { %v992_v53 = vadd.f32 %v991_v48, %v7540_v39  ;;  %v1105_v54 = vadd.f32 %v1104_v50, %v7545_v40  ;;  %v993_v55 = vpop.f32.mrb[2].mxu1  ;;  %v1106_v56 = vpop.f32.mrb[18].mxu0 }
 0x25f   :  { %v7551_v59 = vmul.f32 0.5, %v990_v45  ;;  %v7553_v60 = vmul.f32 0.5, %v1103_v47  ;;  %v994_v61 = vadd.f32 %v993_v55, %v7531_v35  ;;  %v1107_v62 = vadd.f32 %v1106_v56, %v7536_v37  ;;  %v995_v63 = vpop.f32.mrb[3].mxu1  ;;  %v1108_v0 = vpop.f32.mrb[19].mxu0  ;;  %v6110_v45 = vld [vmem:[#allocation11 + $0xc8] ss:$16 sps:$4 sm:$0xff]  }
 0x260   :  { %v7557_v1 = vmul.f32 0.5, %v992_v53  ;;  %v7559_v2 = vmul.f32 0.5, %v1105_v54  ;;  %v996_v4 = vadd.f32 %v995_v63, %v7540_v39  ;;  %v1109_v5 = vadd.f32 %v1108_v0, %v7545_v40  ;;  %4797 = vmatpush1.bf16.msra.mxu1 %v6110_v45  ;;  %v6115_v54 = vld [vmem:[#allocation11 + $0xe4] ss:$16 sps:$4 sm:$0xff]   ;;  %v6118_v55 = vld [vmem:[#allocation11 + $0xec] ss:$16 sps:$4 sm:$0xff]  }
 0x261   :  { %6615 = vtanh.f32 %v7551_v59  ;;  %v7564_v3 = vmul.f32 0.5, %v994_v61  ;;  %v7567_v8 = vmul.f32 0.5, %v1107_v62  ;;  %v7609_v53 = vrot.slane %v7523_v30, %v523_v11  ;;  %v6113_v62 = vld [vmem:[#allocation11 + $0xe0] ss:$16 sps:$4 sm:$0xff]   ;;  %v6116_v63 = vld [vmem:[#allocation11 + $0xe8] ss:$16 sps:$4 sm:$0xff]   ;;  %4593 = vmatprep.subr.bf16.mxu0 %v6115_v54  ;;  %4798 = vmatprep.subr.bf16.mxu1 %v6118_v55 }
 0x262   :  { %6617 = vtanh.f32 %v7553_v60  ;;  %v7570_v9 = vmul.f32 0.5, %v996_v4  ;;  %v7574_v12 = vmul.f32 0.5, %v1109_v5  ;;  %v7618_v61 = vrot.slane %v7523_v30, %v527_v14  ;;  %4594 = vmatpush1.bf16.msra.mxu0 %v6113_v62  ;;  %v6124_v54 = vld [vmem:[#allocation11 + $0x10c] ss:$16 sps:$4 sm:$0xff]  }
 0x263   :  { %6619 = vtanh.f32 %v7557_v1  ;;  %8951 = vst [vmem:[#allocation27_spill] sm:$0xff] %v7609_v53  ;;  %v7624_v11 = vrot.slane %v7523_v30, %v535_v17 }
 0x264   :  { %6621 = vtanh.f32 %v7559_v2  ;;  %v999_v13 = vpop.f32.mrb[4].mxu1  ;;  %v1112_v36 = vpop.f32.mrb[20].mxu0  ;;  %8953 = vst [vmem:[#allocation29_spill] sm:$0xff] %v7618_v61  ;;  %4799 = vmatpush1.bf16.msra.mxu1 %v6116_v63  ;;  %v6119_v63 = vld [vmem:[#allocation11 + $0x100] ss:$16 sps:$4 sm:$0xff]  }
 0x265   :  { %6623 = vtanh.f32 %v7564_v3  ;;  %v1000_v15 = vadd.f32 %v999_v13, %v7531_v35  ;;  %v1113_v7 = vadd.f32 %v1112_v36, %v7536_v37  ;;  %v1001_v49 = vpop.f32.mrb[5].mxu1  ;;  %v1114_v16 = vpop.f32.mrb[21].mxu0  ;;  %8954 = vst [vmem:[#allocation30_spill] sm:$0xff] %v7624_v11  ;;  %4800 = vmatprep.subr.bf16.mxu1 %v6124_v54 }
 0x266   :  { %6625 = vtanh.f32 %v7567_v8  ;;  %v1002_v18 = vadd.f32 %v1001_v49, %v7540_v39  ;;  %v1115_v19 = vadd.f32 %v1114_v16, %v7545_v40  ;;  %v1003_v20 = vpop.f32.mrb[6].mxu1  ;;  %v1116_v21 = vpop.f32.mrb[22].mxu0 }
 0x267   :  { %6627 = vtanh.f32 %v7570_v9  ;;  %v7586_v25 = vmul.f32 0.5, %v1000_v15  ;;  %v7588_v26 = vmul.f32 0.5, %v1113_v7  ;;  %v1004_v32 = vadd.f32 %v1003_v20, %v7531_v35  ;;  %v1005_v38 = vpop.f32.mrb[7].mxu1  ;;  %v1118_v34 = vpop.f32.mrb[23].mxu0 }
 0x268   :  { %6629 = vtanh.f32 %v7574_v12  ;;  %v7592_v42 = vmul.f32 0.5, %v1002_v18  ;;  %v7594_v43 = vmul.f32 0.5, %v1115_v19  ;;  %v1117_v44 = vadd.f32 %v1116_v21, %v7536_v37 }
 0x269   :  { %6631 = vtanh.f32 %v7586_v25  ;;  %v7598_v47 = vmul.f32 0.5, %v1004_v32  ;;  %v1006_v48 = vadd.f32 %v1005_v38, %v7540_v39  ;;  %v1119_v50 = vadd.f32 %v1118_v34, %v7545_v40 }
 0x26a   :  { %6633 = vtanh.f32 %v7588_v26  ;;  %v7603_v51 = vmul.f32 0.5, %v1117_v44 }
 0x26b   :  { %v6616_v56 = vpop.eup %6615  ;;  %6635 = vtanh.f32 %v7592_v42  ;;  %v7612_v57 = vmul.f32 0.5, %v1006_v48  ;;  %v7621_v5 = vmul.f32 0.5, %v1119_v50  ;;  %v6121_v50 = vld [vmem:[#allocation11 + $0x104] ss:$16 sps:$4 sm:$0xff]  }
 0x26c   :  { %v6618_v0 = vpop.eup %6617  ;;  %v1840_v4 = vadd.f32 1.0, %v6616_v56  ;;  %6637 = vtanh.f32 %v7594_v43  ;;  %v1009_v6 = vpop.f32.mrb[8].mxu1  ;;  %4595 = vmatprep.subr.bf16.mxu0 %v6121_v50 }
 0x26d   :  { %v1122_v10 = vpop.f32.mrb[24].mxu0  ;;  %v6620_v13 = vpop.eup %6619  ;;  %v1842_v36 = vadd.f32 1.0, %v6618_v0  ;;  %6639 = vtanh.f32 %v7598_v47  ;;  %v1010_v33 = vadd.f32 %v1009_v6, %v7531_v35  ;;  %v6122_v0 = vld [vmem:[#allocation11 + $0x108] ss:$16 sps:$4 sm:$0xff]   ;;  %4596 = vmatpush1.bf16.msra.mxu0 %v6119_v63 }
 0x26e   :  { %v1123_v14 = vadd.f32 %v1122_v10, %v7536_v37  ;;  %v1011_v15 = vpop.f32.mrb[9].mxu1  ;;  %v1124_v7 = vpop.f32.mrb[25].mxu0  ;;  %v2000_v16 = vmul.f32 %v1840_v4, %v7551_v59  ;;  %v1841_v18 = vadd.f32 1.0, %v6620_v13  ;;  %6641 = vtanh.f32 %v7603_v51  ;;  %4801 = vmatpush1.bf16.msra.mxu1 %v6122_v0 }
 0x26f   :  { %v6622_v49 = vpop.eup %6621  ;;  %v1012_v30 = vadd.f32 %v1011_v15, %v7540_v39  ;;  %v1013_v17 = vpop.f32.mrb[10].mxu1  ;;  %v2002_v21 = vmul.f32 %v1842_v36, %v7553_v60  ;;  %6643 = vtanh.f32 %v7612_v57  ;;  %v7636_v22 = vmul.f32 0.5, %v1010_v33 }
 0x270   :  { %v7632_v19 = vpop.f32.mrb[26].mxu0  ;;  %v6624_v20 = vpop.eup %6623  ;;  %v1843_v46 = vadd.f32 1.0, %v6622_v49  ;;  %v2001_v38 = vmul.f32 %v1841_v18, %v7557_v1  ;;  %6645 = vtanh.f32 %v7621_v5  ;;  %v7644_v41 = vmul.f32 0.5, %v1123_v14 }
 0x271   :  { %v7638_v24 = vpop.f32.mrb[11].mxu1  ;;  %v7640_v59 = vpop.f32.mrb[27].mxu0  ;;  %v1850_v34 = vadd.f32 1.0, %v6624_v20  ;;  %6647 = vtanh.f32 %v7636_v22  ;;  %v7648_v48 = vmul.f32 0.5, %v1012_v30  ;;  %v1125_v1 = vadd.f32 %v1124_v7, %v7545_v40 }
 0x272   :  { %v6626_v32 = vpop.eup %6625  ;;  %v2003_v60 = vmul.f32 %v1843_v46, %v7559_v2  ;;  %6649 = vtanh.f32 %v7644_v41  ;;  %v1014_v10 = vadd.f32 %v1013_v17, %v7531_v35 }
 0x273   :  { %v6628_v44 = vpop.eup %6627  ;;  %v1852_v45 = vadd.f32 1.0, %v6626_v32  ;;  %v2010_v56 = vmul.f32 %v1850_v34, %v7564_v3  ;;  %6651 = vtanh.f32 %v7648_v48  ;;  %v7657_v14 = vmul.f32 0.5, %v1125_v1 }
 0x274   :  { %v6630_v55 = vpop.eup %6629  ;;  %v1851_v62 = vadd.f32 1.0, %v6628_v44  ;;  %v7659_v15 = vpop.f32.mrb[12].mxu1  ;;  %v7664_v17 = vmul.f32 0.5, %v1014_v10 }
 0x275   :  { %v6632_v4 = vpop.eup %6631  ;;  %v2012_v2 = vmul.f32 %v1852_v45, %v7567_v8  ;;  %v1853_v6 = vadd.f32 1.0, %v6630_v55  ;;  %v2163_v36 = vadd.f32 %v2010_v56, %v2000_v16  ;;  %v7661_v7 = vpop.f32.mrb[28].mxu0  ;;  %6653 = vtanh.f32 %v7657_v14 }
 0x276   :  { %v6634_v13 = vpop.eup %6633  ;;  %v2011_v3 = vmul.f32 %v1851_v62, %v7570_v9  ;;  %v1860_v33 = vadd.f32 1.0, %v6632_v4  ;;  %v7666_v20 = vpop.f32.mrb[13].mxu1  ;;  %v6127_v9 = vld [vmem:[#allocation11 + $0x124] ss:$16 sps:$4 sm:$0xff]   ;;  %6655 = vtanh.f32 %v7664_v17 }
 0x277   :  { %v6636_v8 = vpop.eup %6635  ;;  %v2189_v49 = vadd.f32 %v2012_v2, %v2002_v21  ;;  %v2013_v18 = vmul.f32 %v1853_v6, %v7574_v12  ;;  %v1862_v30 = vadd.f32 1.0, %v6634_v13  ;;  %v7668_v16 = vpop.f32.mrb[29].mxu0  ;;  %v6125_v12 = vld [vmem:[#allocation11 + $0x120] ss:$16 sps:$4 sm:$0xff]   ;;  %4597 = vmatprep.subr.bf16.mxu0 %v6127_v9  ;;  %v1127_v2 = vadd.f32 %v7632_v19, %v7536_v37 }
 0x278   :  { %v6638_v46 = vpop.eup %6637  ;;  %v2176_v32 = vadd.f32 %v2011_v3, %v2001_v38  ;;  %v2020_v34 = vmul.f32 %v1860_v33, %v7586_v25  ;;  %v1861_v44 = vadd.f32 1.0, %v6636_v8  ;;  %v7672_v45 = vpop.f32.mrb[14].mxu1  ;;  %v6128_v25 = vld [vmem:[#allocation11 + $0x128] ss:$16 sps:$4 sm:$0xff]   ;;  %4598 = vmatpush1.bf16.msra.mxu0 %v6125_v12  ;;  %v1016_v3 = vadd.f32 %v7638_v24, %v7540_v39  ;;  %v6133_v12 = vld [vmem:[#allocation11 + $0x144] ss:$16 sps:$4 sm:$0xff]  }
 0x279   :  { %v7674_v21 = vpop.f32.mrb[30].mxu0  ;;  %v6640_v50 = vpop.eup %6639  ;;  %v2202_v54 = vadd.f32 %v2013_v18, %v2003_v60  ;;  %v2022_v55 = vmul.f32 %v1862_v30, %v7588_v26  ;;  %v1863_v56 = vadd.f32 1.0, %v6638_v46  ;;  %v6130_v60 = vld [vmem:[#allocation11 + $0x12c] ss:$16 sps:$4 sm:$0xff]   ;;  %4599 = vmatprep.subr.bf16.mxu0 %v6133_v12 }
 0x27a   :  { %v7678_v62 = vpop.f32.mrb[15].mxu1  ;;  %v7680_v38 = vpop.f32.mrb[31].mxu0  ;;  %v2164_v63 = vadd.f32 %v2163_v36, %v2020_v34  ;;  %v2021_v0 = vmul.f32 %v1861_v44, %v7592_v42  ;;  %v1870_v4 = vadd.f32 1.0, %v6640_v50  ;;  %v7689_v42 = vmul.f32 0.5, %v1127_v2  ;;  %4802 = vmatprep.subr.bf16.mxu1 %v6130_v60 }
 0x27b   :  { %v6642_v1 = vpop.eup %6641  ;;  %v2190_v6 = vadd.f32 %v2189_v49, %v2022_v55  ;;  %v2023_v10 = vmul.f32 %v1863_v56, %v7594_v43  ;;  %v7692_v49 = vmul.f32 0.5, %v1016_v3  ;;  %4803 = vmatpush1.bf16.msra.mxu1 %v6128_v25 }
 0x27c   :  { %v6644_v26 = vpop.eup %6643  ;;  %v1872_v13 = vadd.f32 1.0, %v6642_v1  ;;  %v2177_v8 = vadd.f32 %v2176_v32, %v2021_v0  ;;  %v2030_v36 = vmul.f32 %v1870_v4, %v7598_v47  ;;  %6657 = vtanh.f32 %v7689_v42  ;;  %v7696_v47 = vpop.f32.mrb[16].mxu1 }
 0x27d   :  { %v6646_v33 = vpop.eup %6645  ;;  %v1871_v18 = vadd.f32 1.0, %v6644_v26  ;;  %v2203_v19 = vadd.f32 %v2202_v54, %v2023_v10  ;;  %v7698_v32 = vpop.f32.mrb[32].mxu0  ;;  %6659 = vtanh.f32 %v7692_v49  ;;  %v1129_v4 = vadd.f32 %v7640_v59, %v7545_v40  ;;  %v6136_v59 = vld [vmem:[#allocation11 + $0x14c] ss:$16 sps:$4 sm:$0xff]  }
 0x27e   :  { %v6648_v30 = vpop.eup %6647  ;;  %v2032_v9 = vmul.f32 %v1872_v13, %v7603_v51  ;;  %v1873_v46 = vadd.f32 1.0, %v6646_v33  ;;  %v2165_v34 = vadd.f32 %v2164_v63, %v2030_v36  ;;  %v7702_v56 = vpop.f32.mrb[17].mxu1  ;;  %v1020_v10 = vadd.f32 %v7659_v15, %v7531_v35  ;;  %v6142_v15 = vld [vmem:[#allocation11 + $0x16c] ss:$16 sps:$4 sm:$0xff]   ;;  %4804 = vmatprep.subr.bf16.mxu1 %v6136_v59 }
 0x27f   :  { %v6650_v43 = vpop.eup %6649  ;;  %v2031_v24 = vmul.f32 %v1871_v18, %v7612_v57  ;;  %v1880_v44 = vadd.f32 1.0, %v6648_v30  ;;  %v7704_v25 = vpop.f32.mrb[33].mxu0  ;;  %v6131_v57 = vld [vmem:[#allocation11 + $0x140] ss:$16 sps:$4 sm:$0xff]   ;;  %v1133_v13 = vadd.f32 %v7661_v7, %v7536_v37  ;;  %v7723_v18 = vmul.f32 0.5, %v1129_v4 }
 0x280   :  { %v6652_v50 = vpop.eup %6651  ;;  %v2191_v54 = vadd.f32 %v2190_v6, %v2032_v9  ;;  %v2033_v51 = vmul.f32 %v1873_v46, %v7621_v5  ;;  %v1882_v55 = vadd.f32 1.0, %v6650_v43  ;;  %v7709_v2 = vpop.f32.mrb[18].mxu1  ;;  %v6134_v5 = vld [vmem:[#allocation11 + $0x148] ss:$16 sps:$4 sm:$0xff]   ;;  %4600 = vmatpush1.bf16.msra.mxu0 %v6131_v57  ;;  %v6139_v30 = vld [vmem:[#allocation11 + $0x164] ss:$16 sps:$4 sm:$0xff]  }
 0x281   :  { %v2178_v1 = vadd.f32 %v2177_v8, %v2031_v24  ;;  %v2040_v63 = vmul.f32 %v1880_v44, %v7636_v22  ;;  %v1881_v0 = vadd.f32 1.0, %v6652_v50  ;;  %v7711_v60 = vpop.f32.mrb[34].mxu0  ;;  %v7718_v22 = vpop.f32.mrb[19].mxu1  ;;  %v7727_v46 = vmul.f32 0.5, %v1020_v10  ;;  %v6137_v24 = vld [vmem:[#allocation11 + $0x160] ss:$16 sps:$4 sm:$0xff]   ;;  %4805 = vmatpush1.bf16.msra.mxu1 %v6134_v5  ;;  %4601 = vmatprep.subr.bf16.mxu0 %v6139_v30 }
 0x282   :  { %v2204_v26 = vadd.f32 %v2203_v19, %v2033_v51  ;;  %v2042_v6 = vmul.f32 %v1882_v55, %v7644_v41  ;;  %v7720_v3 = vpop.f32.mrb[35].mxu0  ;;  %v6654_v33 = vpop.eup %6653  ;;  %v1022_v41 = vadd.f32 %v7666_v20, %v7540_v39  ;;  %v7729_v43 = vmul.f32 0.5, %v1133_v13  ;;  %v6140_v20 = vld [vmem:[#allocation11 + $0x168] ss:$16 sps:$4 sm:$0xff]   ;;  %4806 = vmatprep.subr.bf16.mxu1 %v6142_v15 }
 0x283   :  { %v2166_v8 = vadd.f32 %v2165_v34, %v2040_v63  ;;  %v2041_v36 = vmul.f32 %v1881_v0, %v7648_v48  ;;  %v6656_v19 = vpop.eup %6655  ;;  %v1883_v7 = vadd.f32 1.0, %v6654_v33  ;;  %6661 = vtanh.f32 %v7723_v18 }
 0x284   :  { %v2192_v9 = vadd.f32 %v2191_v54, %v2042_v6  ;;  %v1890_v34 = vadd.f32 1.0, %v6656_v19  ;;  %v7732_v48 = vmul.f32 0.5, %v1022_v41  ;;  %6663 = vtanh.f32 %v7727_v46  ;;  %4602 = vmatpush1.bf16.msra.mxu0 %v6137_v24  ;;  %v7746_v57 = vpop.f32.mrb[20].mxu1 }
 0x285   :  { %v2179_v44 = vadd.f32 %v2178_v1, %v2041_v36  ;;  %v2043_v12 = vmul.f32 %v1883_v7, %v7657_v14  ;;  %v1135_v50 = vadd.f32 %v7668_v16, %v7545_v40  ;;  %v1024_v54 = vadd.f32 %v7672_v45, %v7531_v35  ;;  %v7748_v1 = vpop.f32.mrb[36].mxu0  ;;  %4807 = vmatpush1.bf16.msra.mxu1 %v6140_v20 }
 0x286   :  { %v2050_v51 = vmul.f32 %v1890_v34, %v7664_v17  ;;  %6665 = vtanh.f32 %v7729_v43  ;;  %v1137_v55 = vadd.f32 %v7674_v21, %v7536_v37  ;;  %v1026_v14 = vadd.f32 %v7678_v62, %v7540_v39  ;;  %v7757_v17 = vpop.f32.mrb[21].mxu1  ;;  %v7759_v0 = vpop.f32.mrb[37].mxu0 }
 0x287   :  { %v7750_v16 = vadd.f32 %v2204_v26, %v2043_v12  ;;  %6667 = vtanh.f32 %v7732_v48  ;;  %v7753_v45 = vmul.f32 0.5, %v1135_v50  ;;  %v7755_v63 = vmul.f32 0.5, %v1024_v54  ;;  %v6658_v21 = vpop.eup %6657  ;;  %v7769_v6 = vpop.f32.mrb[22].mxu1 }
 0x288   :  { %v7761_v4 = vadd.f32 %v2166_v8, %v2050_v51  ;;  %v7763_v62 = vmul.f32 0.5, %v1137_v55  ;;  %v7765_v5 = vmul.f32 0.5, %v1026_v14  ;;  %v1139_v26 = vadd.f32 %v7680_v38, %v7545_v40  ;;  %v7771_v10 = vpop.f32.mrb[38].mxu0  ;;  %v6660_v13 = vpop.eup %6659 }
 0x289   :  { %v1892_v59 = vadd.f32 1.0, %v6658_v21  ;;  %6669 = vtanh.f32 %v7753_v45  ;;  %v1030_v33 = vadd.f32 %v7696_v47, %v7531_v35  ;;  %v1143_v8 = vadd.f32 %v7698_v32, %v7536_v37  ;;  %v7778_v36 = vpop.f32.mrb[23].mxu1  ;;  %v7780_v41 = vpop.f32.mrb[39].mxu0 }
 0x28a   :  { %v1891_v38 = vadd.f32 1.0, %v6660_v13  ;;  %6671 = vtanh.f32 %v7755_v63  ;;  %v7783_v30 = vmul.f32 0.5, %v1139_v26  ;;  %v1032_v15 = vadd.f32 %v7702_v56, %v7540_v39 }
 0x28b   :  { %v2052_v19 = vmul.f32 %v1892_v59, %v7689_v42  ;;  %6673 = vtanh.f32 %v7763_v62  ;;  %v7789_v47 = vmul.f32 0.5, %v1030_v33  ;;  %v7791_v7 = vmul.f32 0.5, %v1143_v8 }
 0x28c   :  { %v2051_v32 = vmul.f32 %v1891_v38, %v7692_v49  ;;  %6675 = vtanh.f32 %v7765_v5  ;;  %v7795_v24 = vmul.f32 0.5, %v1032_v15  ;;  %v1145_v34 = vadd.f32 %v7704_v25, %v7545_v40  ;;  %v7809_v51 = vpop.f32.mrb[24].mxu1  ;;  %v7811_v25 = vpop.f32.mrb[40].mxu0 }
 0x28d   :  { %v2193_v20 = vadd.f32 %v2192_v9, %v2052_v19  ;;  %6677 = vtanh.f32 %v7783_v30  ;;  %v1034_v42 = vadd.f32 %v7709_v2, %v7531_v35  ;;  %v1147_v56 = vadd.f32 %v7711_v60, %v7536_v37  ;;  %v6662_v12 = vpop.eup %6661  ;;  %v7820_v14 = vpop.f32.mrb[41].mxu0 }
 0x28e   :  { %v2180_v50 = vadd.f32 %v2179_v44, %v2051_v32  ;;  %6679 = vtanh.f32 %v7789_v47  ;;  %v7805_v49 = vmul.f32 0.5, %v1145_v34  ;;  %v1036_v54 = vadd.f32 %v7718_v22, %v7540_v39  ;;  %v6664_v9 = vpop.eup %6663  ;;  %v7818_v44 = vpop.f32.mrb[25].mxu1 }
 0x28f   :  { %v1893_v55 = vadd.f32 1.0, %v6662_v12  ;;  %6681 = vtanh.f32 %v7791_v7  ;;  %v7814_v2 = vmul.f32 0.5, %v1034_v42  ;;  %v7816_v60 = vmul.f32 0.5, %v1147_v56  ;;  %v7827_v59 = vpop.f32.mrb[26].mxu1  ;;  %v7829_v33 = vpop.f32.mrb[42].mxu0 }
 0x290   :  { %v6666_v21 = vpop.eup %6665  ;;  %v1900_v26 = vadd.f32 1.0, %v6664_v9  ;;  %6683 = vtanh.f32 %v7795_v24  ;;  %v7823_v22 = vmul.f32 0.5, %v1036_v54  ;;  %v1149_v13 = vadd.f32 %v7720_v3, %v7545_v40  ;;  %v7835_v32 = vpop.f32.mrb[27].mxu1 }
 0x291   :  { %v6668_v8 = vpop.eup %6667  ;;  %v2053_v38 = vmul.f32 %v1893_v55, %v7723_v18  ;;  %v1902_v15 = vadd.f32 1.0, %v6666_v21  ;;  %6685 = vtanh.f32 %v7805_v49  ;;  %v1040_v19 = vadd.f32 %v7746_v57, %v7531_v35  ;;  %v7837_v34 = vpop.f32.mrb[43].mxu0 }
 0x292   :  { %v2060_v42 = vmul.f32 %v1900_v26, %v7727_v46  ;;  %v1901_v3 = vadd.f32 1.0, %v6668_v8  ;;  %6687 = vtanh.f32 %v7814_v2  ;;  %v7841_v56 = vmul.f32 0.5, %v1149_v13  ;;  %v6145_v26 = vld [vmem:[#allocation11 + $0x184] ss:$16 sps:$4 sm:$0xff]   ;;  %v6148_v13 = vld [vmem:[#allocation11 + $0x18c] ss:$16 sps:$4 sm:$0xff]  }
 0x293   :  { %v6670_v12 = vpop.eup %6669  ;;  %v2206_v18 = vadd.f32 %v7750_v16, %v2053_v38  ;;  %v2062_v54 = vmul.f32 %v1902_v15, %v7729_v43  ;;  %6689 = vtanh.f32 %v7816_v60  ;;  %v7846_v9 = vmul.f32 0.5, %v1040_v19  ;;  %v6143_v16 = vld [vmem:[#allocation11 + $0x180] ss:$16 sps:$4 sm:$0xff]   ;;  %v6146_v38 = vld [vmem:[#allocation11 + $0x188] ss:$16 sps:$4 sm:$0xff]   ;;  %4603 = vmatprep.subr.bf16.mxu0 %v6145_v26  ;;  %4808 = vmatprep.subr.bf16.mxu1 %v6148_v13 }
 0x294   :  { %v6672_v57 = vpop.eup %6671  ;;  %v2168_v55 = vadd.f32 %v7761_v4, %v2060_v42  ;;  %v2061_v21 = vmul.f32 %v1901_v3, %v7732_v48  ;;  %v1903_v46 = vadd.f32 1.0, %v6670_v12  ;;  %6691 = vtanh.f32 %v7823_v22  ;;  %v7856_v42 = vpop.f32.mrb[28].mxu1  ;;  %4604 = vmatpush1.bf16.msra.mxu0 %v6143_v16  ;;  %4809 = vmatpush1.bf16.msra.mxu1 %v6146_v38  ;;  %v6149_v38 = vld [vmem:[#allocation11 + $0x1a0] ss:$16 sps:$4 sm:$0xff]  }
 0x295   :  { %v6674_v8 = vpop.eup %6673  ;;  %v2194_v29 = vadd.f32 %v2193_v20, %v2062_v54  ;;  %v1910_v31 = vadd.f32 1.0, %v6672_v57  ;;  %6693 = vtanh.f32 %v7841_v56  ;;  %v1153_v43 = vadd.f32 %v7748_v1, %v7536_v37  ;;  %v7858_v3 = vpop.f32.mrb[44].mxu0 }
 0x296   :  { %v6676_v15 = vpop.eup %6675  ;;  %v2181_v19 = vadd.f32 %v2180_v50, %v2061_v21  ;;  %v2063_v4 = vmul.f32 %v1903_v46, %v7753_v45  ;;  %v1912_v48 = vadd.f32 1.0, %v6674_v8  ;;  %6695 = vtanh.f32 %v7846_v9  ;;  %v7865_v57 = vpop.f32.mrb[29].mxu1 }
 0x297   :  { %v6678_v20 = vpop.eup %6677  ;;  %v2070_v12 = vmul.f32 %v1910_v31, %v7755_v63  ;;  %v1911_v54 = vadd.f32 1.0, %v6676_v15  ;;  %v7861_v1 = vmul.f32 0.5, %v1153_v43  ;;  %v1042_v50 = vadd.f32 %v7757_v17, %v7540_v39  ;;  %v7867_v45 = vpop.f32.mrb[45].mxu0  ;;  %v6151_v17 = vld [vmem:[#allocation11 + $0x1a4] ss:$16 sps:$4 sm:$0xff]  }
 0x298   :  { %v6680_v21 = vpop.eup %6679  ;;  %v2207_v46 = vadd.f32 %v2206_v18, %v2063_v4  ;;  %v2072_v26 = vmul.f32 %v1912_v48, %v7763_v62  ;;  %v1913_v13 = vadd.f32 1.0, %v6678_v20  ;;  %v7872_v31 = vadd.f32 %v7759_v0, %v7545_v40  ;;  %v7874_v63 = vpop.f32.mrb[30].mxu1  ;;  %4605 = vmatprep.subr.bf16.mxu0 %v6151_v17 }
 0x299   :  { %v7876_v8 = vpop.f32.mrb[46].mxu0  ;;  %v6682_v43 = vpop.eup %6681  ;;  %v2169_v15 = vadd.f32 %v2168_v55, %v2070_v12  ;;  %v2071_v23 = vmul.f32 %v1911_v54, %v7765_v5  ;;  %v1920_v16 = vadd.f32 1.0, %v6680_v21  ;;  %6697 = vtanh.f32 %v7861_v1  ;;  %v6154_v55 = vld [vmem:[#allocation11 + $0x1ac] ss:$16 sps:$4 sm:$0xff]   ;;  %4606 = vmatpush1.bf16.msra.mxu0 %v6149_v38 }
 0x29a   :  { %v7880_v18 = vpop.f32.mrb[31].mxu1  ;;  %v7882_v62 = vpop.f32.mrb[47].mxu0  ;;  %v2195_v0 = vadd.f32 %v2194_v29, %v2072_v26  ;;  %v2073_v48 = vmul.f32 %v1913_v13, %v7783_v30  ;;  %v1922_v20 = vadd.f32 1.0, %v6682_v43  ;;  %v7885_v28 = vmul.f32 0.5, %v1042_v50  ;;  %4810 = vmatprep.subr.bf16.mxu1 %v6154_v55 }
 0x29b   :  { %8955 = vst [vmem:[#allocation31_spill] sm:$0xff] %v7882_v62  ;;  %v6684_v4 = vpop.eup %6683  ;;  %v2170_v5 = vrot.slane %v2169_v15, 4  ;;  %v2182_v54 = vadd.f32 %v2181_v19, %v2071_v23  ;;  %v2080_v21 = vmul.f32 %v1920_v16, %v7789_v47  ;;  %4811 = vmatpush1.bf16.msra.mxu1 %v6152_v27  ;;  %v6157_v62 = vld [vmem:[#allocation11 + $0x1c4] ss:$16 sps:$4 sm:$0xff]   ;;  %v6160_v23 = vld [vmem:[#allocation11 + $0x1cc] ss:$16 sps:$4 sm:$0xff]  }
 0x29c   :  { %v6686_v12 = vpop.eup %6685  ;;  %v1921_v11 = vadd.f32 1.0, %v6684_v4  ;;  %v2196_v58 = vrot.slane %v2195_v0, 4  ;;  %v2208_v53 = vadd.f32 %v2207_v46, %v2073_v48  ;;  %v2082_v29 = vmul.f32 %v1922_v20, %v7791_v7  ;;  %v7891_v46 = vpop.f32.mrb[32].mxu1  ;;  %v6155_v48 = vld [vmem:[#allocation11 + $0x1c0] ss:$16 sps:$4 sm:$0xff]   ;;  %4607 = vmatprep.subr.bf16.mxu0 %v6157_v62  ;;  %4812 = vmatprep.subr.bf16.mxu1 %v6160_v23 }
 0x29d   :  { %v6688_v61 = vpop.eup %6687  ;;  %v1923_v26 = vadd.f32 1.0, %v6686_v12  ;;  %v2171_v50 = vadd.f32 %v2170_v5, %v2169_v15  ;;  %v2183_v13 = vrot.slane %v2182_v54, 4  ;;  %v7893_v7 = vpop.f32.mrb[48].mxu0  ;;  %4608 = vmatpush1.bf16.msra.mxu0 %v6155_v48  ;;  %v6163_v23 = vld [vmem:[#allocation11 + $0x1e4] ss:$16 sps:$4 sm:$0xff]   ;;  %6699 = vtanh.f32 %v7885_v28 }
 0x29e   :  { %v6690_v30 = vpop.eup %6689  ;;  %v2081_v17 = vmul.f32 %v1921_v11, %v7795_v24  ;;  %v1930_v43 = vadd.f32 1.0, %v6688_v61  ;;  %v2197_v47 = vadd.f32 %v2196_v58, %v2195_v0  ;;  %v2209_v16 = vrot.slane %v2208_v53, 4  ;;  %8956 = vst [vmem:[#allocation32_spill] sm:$0xff] %v7893_v7  ;;  %v7896_v27 = vpop.f32.mrb[33].mxu1  ;;  %v6158_v58 = vld [vmem:[#allocation11 + $0x1c8] ss:$16 sps:$4 sm:$0xff]   ;;  %4609 = vmatprep.subr.bf16.mxu0 %v6163_v23 }
 0x29f   :  { %v6692_v19 = vpop.eup %6691  ;;  %v2083_v38 = vmul.f32 %v1923_v26, %v7805_v49  ;;  %v1932_v4 = vadd.f32 1.0, %v6690_v30  ;;  %v2172_v15 = vrot.slane %v2171_v50, 2  ;;  %v2184_v55 = vadd.f32 %v2183_v13, %v2182_v54  ;;  %v7898_v24 = vpop.f32.mrb[49].mxu0  ;;  %4813 = vmatpush1.bf16.msra.mxu1 %v6158_v58 }
 0x2a0   :  { %v6694_v20 = vpop.eup %6693  ;;  %v2090_v11 = vmul.f32 %v1930_v43, %v7814_v2  ;;  %v1931_v61 = vadd.f32 1.0, %v6692_v19  ;;  %v2198_v0 = vrot.slane %v2197_v47, 2  ;;  %v2210_v12 = vadd.f32 %v2209_v16, %v2208_v53  ;;  %v7901_v30 = vpop.f32.mrb[34].mxu1 }
 0x2a1   :  { %v6696_v49 = vpop.eup %6695  ;;  %v2092_v5 = vmul.f32 %v1932_v4, %v7816_v60  ;;  %v1933_v26 = vadd.f32 1.0, %v6694_v20  ;;  %8957 = vst [vmem:[#allocation33_spill] sm:$0xff] %v7901_v30  ;;  %v7903_v7 = vpop.f32.mrb[50].mxu0  ;;  %v2173_v2 = vadd.f32 %v2172_v15, %v2171_v50  ;;  %v2185_v54 = vrot.slane %v2184_v55, 2  ;;  %v6161_v20 = vld [vmem:[#allocation11 + $0x1e0] ss:$16 sps:$4 sm:$0xff]  }
 0x2a2   :  { %8958 = vst [vmem:[#allocation34_spill] sm:$0xff] %v7903_v7  ;;  %v2293_v13 = vadd.f32 %v2090_v11, %v2080_v21  ;;  %v2091_v43 = vmul.f32 %v1931_v61, %v7823_v22  ;;  %v7906_v19 = vpop.f32.mrb[35].mxu1  ;;  %v7908_v62 = vpop.f32.mrb[51].mxu0  ;;  %v2199_v53 = vadd.f32 %v2198_v0, %v2197_v47  ;;  %v2211_v16 = vrot.slane %v2210_v12, 2  ;;  %v6164_v30 = vld [vmem:[#allocation11 + $0x1e8] ss:$16 sps:$4 sm:$0xff]   ;;  %4610 = vmatpush1.bf16.msra.mxu0 %v6161_v20 }
 0x2a3   :  { %8959 = vst [vmem:[#allocation35_spill] sm:$0xff] %v7908_v62  ;;  %v2319_v60 = vadd.f32 %v2092_v5, %v2082_v29  ;;  %v2093_v4 = vmul.f32 %v1933_v26, %v7841_v56  ;;  %v6698_v7 = vpop.eup %6697  ;;  %v2174_v48 = vrot.slane %v2173_v2, 1  ;;  %v2186_v50 = vadd.f32 %v2185_v54, %v2184_v55  ;;  %v6166_v22 = vld [vmem:[#allocation11 + $0x1ec] ss:$16 sps:$4 sm:$0xff]  }
 0x2a4   :  { %v7911_v15 = vadd.f32 %v2091_v43, %v2081_v17  ;;  %v1940_v21 = vadd.f32 1.0, %v6696_v49  ;;  %v2200_v11 = vrot.slane %v2199_v53, 1  ;;  %v2212_v61 = vadd.f32 %v2211_v16, %v2210_v12  ;;  %4814 = vmatprep.subr.bf16.mxu1 %v6166_v22  ;;  %v7921_v5 = vpop.f32.mrb[36].mxu1 }
 0x2a5   :  { %v7913_v62 = vadd.f32 %v2093_v4, %v2083_v38  ;;  %v1942_v58 = vadd.f32 1.0, %v6698_v7  ;;  %v2175_v47 = vadd.f32 %v2174_v48, %v2173_v2  ;;  %v2187_v29 = vrot.slane %v2186_v50, 1  ;;  %v7923_v38 = vpop.f32.mrb[52].mxu0  ;;  %4815 = vmatpush1.bf16.msra.mxu1 %v6164_v30  ;;  %v7931_v2 = vpop.f32.mrb[37].mxu1 }
 0x2a6   :  { %v2100_v56 = vmul.f32 %v1940_v21, %v7846_v9  ;;  %v2201_v0 = vadd.f32 %v2200_v11, %v2199_v53  ;;  %v2213_v55 = vrot.slane %v2212_v61, 1  ;;  %v7919_v49 = vmul.f32 0.5, %v7872_v31 }
 0x2a7   :  { %v2102_v17 = vmul.f32 %v1942_v58, %v7861_v1  ;;  %v2188_v7 = vadd.f32 %v2187_v29, %v2186_v50  ;;  %v1044_v9 = vadd.f32 %v7769_v6, %v7531_v35  ;;  %v1157_v26 = vadd.f32 %v7771_v10, %v7536_v37  ;;  %v7933_v1 = vpop.f32.mrb[53].mxu0 }
 0x2a8   :  { %v7925_v12 = vadd.f32 %v2293_v13, %v2100_v56  ;;  %v2214_v31 = vadd.f32 %v2213_v55, %v2212_v61  ;;  %6701 = vtanh.f32 %v7919_v49  ;;  %v1046_v30 = vadd.f32 %v7778_v36, %v7540_v39  ;;  %v7940_v13 = vpop.f32.mrb[38].mxu1  ;;  %v7942_v43 = vpop.f32.mrb[54].mxu0 }
 0x2a9   :  { %v7935_v54 = vadd.f32 %v2319_v60, %v2102_v17  ;;  %v2443_v6 = vcombine.low %v2175_v47, %v2188_v7  ;;  %v7944_v23 = vmul.f32 0.5, %v1044_v9  ;;  %v7946_v10 = vmul.f32 0.5, %v1157_v26  ;;  %v7950_v16 = vpop.f32.mrb[39].mxu1  ;;  %v7952_v60 = vpop.f32.mrb[55].mxu0 }
 0x2aa   :  { %v1159_v53 = vadd.f32 %v7780_v41, %v7545_v40  ;;  %v2444_v4 = vcombine.low %v2201_v0, %v2214_v31  ;;  %v7954_v20 = vmul.f32 0.5, %v1046_v30  ;;  %v1050_v36 = vadd.f32 %v7809_v51, %v7531_v35  ;;  %v6700_v55 = vpop.eup %6699 }
 0x2ab   :  { %v1163_v48 = vadd.f32 %v7811_v25, %v7536_v37  ;;  %v7961_v50 = vrot.slane %v2443_v6, %v7606_v52  ;;  %6703 = vtanh.f32 %v7944_v23  ;;  %v1052_v41 = vadd.f32 %v7818_v44, %v7540_v39 }
 0x2ac   :  { %v7964_v21 = vmul.f32 0.5, %v1159_v53  ;;  %v7969_v22 = vrot.slane %v2444_v4, %v7606_v52  ;;  %6705 = vtanh.f32 %v7946_v10  ;;  %v7972_v11 = vmul.f32 0.5, %v1050_v36  ;;  %v7990_v56 = vpop.f32.mrb[40].mxu1  ;;  %v7992_v0 = vpop.f32.mrb[56].mxu0 }
 0x2ad   :  { %v7974_v51 = vmul.f32 0.5, %v1163_v48  ;;  %6707 = vtanh.f32 %v7954_v20  ;;  %v7977_v25 = vmul.f32 0.5, %v1052_v41  ;;  %v1165_v61 = vadd.f32 %v7820_v14, %v7545_v40  ;;  %v8001_v7 = vpop.f32.mrb[41].mxu1 }
 0x2ae   :  { %v1054_v58 = vadd.f32 %v7827_v59, %v7531_v35  ;;  %6709 = vtanh.f32 %v7964_v21  ;;  %v1167_v47 = vadd.f32 %v7829_v33, %v7536_v37  ;;  %v1056_v29 = vadd.f32 %v7835_v32, %v7540_v39  ;;  %v8003_v33 = vpop.f32.mrb[57].mxu0  ;;  %v8010_v31 = vpop.f32.mrb[42].mxu1 }
 0x2af   :  { %6711 = vtanh.f32 %v7972_v11  ;;  %v7995_v14 = vmul.f32 0.5, %v1165_v61  ;;  %v1169_v17 = vadd.f32 %v7837_v34, %v7545_v40  ;;  %v1941_v9 = vadd.f32 1.0, %v6700_v55  ;;  %v8012_v30 = vpop.f32.mrb[58].mxu0  ;;  %v8021_v4 = vpop.f32.mrb[43].mxu1 }
 0x2b0   :  { %v7997_v59 = vmul.f32 0.5, %v1054_v58  ;;  %6713 = vtanh.f32 %v7974_v51  ;;  %v8006_v32 = vmul.f32 0.5, %v1167_v47  ;;  %v8008_v26 = vmul.f32 0.5, %v1056_v29  ;;  %v8023_v36 = vpop.f32.mrb[59].mxu0  ;;  %v6169_v29 = vld [vmem:[#allocation11 + $0x204] ss:$16 sps:$4 sm:$0xff]  }
 0x2b1   :  { %6715 = vtanh.f32 %v7977_v25  ;;  %v8015_v6 = vmul.f32 0.5, %v1169_v17  ;;  %v1060_v34 = vadd.f32 %v7856_v42, %v7531_v35  ;;  %v1173_v53 = vadd.f32 %v7858_v3, %v7536_v37  ;;  %4620 = vmatprep.subr.bf16.mxu0 %v6169_v29 }
 0x2b2   :  { %v6702_v48 = vpop.eup %6701  ;;  %v2101_v41 = vmul.f32 %v1941_v9, %v7885_v28  ;;  %6717 = vtanh.f32 %v7995_v14  ;;  %v1062_v61 = vadd.f32 %v7865_v57, %v7540_v39  ;;  %v1175_v58 = vadd.f32 %v7867_v45, %v7545_v40 }
 0x2b3   :  { %v1943_v47 = vadd.f32 1.0, %v6702_v48  ;;  %6719 = vtanh.f32 %v7997_v59  ;;  %v8032_v42 = vmul.f32 0.5, %v1060_v34  ;;  %v8034_v3 = vmul.f32 0.5, %v1173_v53  ;;  %v6172_v53 = vld [vmem:[#allocation11 + $0x20c] ss:$16 sps:$4 sm:$0xff]  }
 0x2b4   :  { %v2307_v55 = vadd.f32 %v7911_v15, %v2101_v41  ;;  %6721 = vtanh.f32 %v8006_v32  ;;  %v8038_v28 = vmul.f32 0.5, %v1062_v61  ;;  %v8040_v17 = vmul.f32 0.5, %v1175_v58  ;;  %v8960_v61 = vld [vmem:[#allocation31_spill] sm:$0xff]  ;;  %v8053_v58 = vpop.f32.mrb[44].mxu1  ;;  %4825 = vmatprep.subr.bf16.mxu1 %v6172_v53 }
 0x2b5   :  { %v6704_v57 = vpop.eup %6703  ;;  %v2103_v9 = vmul.f32 %v1943_v47, %v7919_v49  ;;  %6723 = vtanh.f32 %v8008_v26  ;;  %v1064_v45 = vadd.f32 %v7874_v63, %v7531_v35  ;;  %v1177_v34 = vadd.f32 %v7876_v8, %v7536_v37  ;;  %v8055_v47 = vpop.f32.mrb[60].mxu0 }
 0x2b6   :  { %v6706_v15 = vpop.eup %6705  ;;  %v1950_v48 = vadd.f32 1.0, %v6704_v57  ;;  %6725 = vtanh.f32 %v8015_v6  ;;  %v1066_v41 = vadd.f32 %v7880_v18, %v7540_v39  ;;  %v1179_v49 = vadd.f32 %v8960_v61, %v7545_v40  ;;  %v8061_v29 = vpop.f32.mrb[45].mxu1 }
 0x2b7   :  { %v6708_v35 = vpop.eup %6707  ;;  %v2333_v63 = vadd.f32 %v7913_v62, %v2103_v9  ;;  %v1952_v37 = vadd.f32 1.0, %v6706_v15  ;;  %6727 = vtanh.f32 %v8032_v42  ;;  %v8059_v8 = vmul.f32 0.5, %v1064_v45  ;;  %8961 = vst [vmem:[#allocation31_spill] sm:$0xff] %v8061_v29  ;;  %v8063_v57 = vpop.f32.mrb[61].mxu0 }
 0x2b8   :  { %8962 = vst [vmem:[#allocation36_spill] sm:$0xff] %v8063_v57  ;;  %v6710_v39 = vpop.eup %6709  ;;  %v2110_v40 = vmul.f32 %v1950_v48, %v7944_v23  ;;  %v1951_v18 = vadd.f32 1.0, %v6708_v35  ;;  %6729 = vtanh.f32 %v8034_v3  ;;  %v8067_v61 = vmul.f32 0.5, %v1177_v34  ;;  %v8069_v44 = vpop.f32.mrb[46].mxu1 }
 0x2b9   :  { %8963 = vst [vmem:[#allocation37_spill] sm:$0xff] %v8069_v44  ;;  %v8071_v62 = vpop.f32.mrb[62].mxu0  ;;  %v6712_v9 = vpop.eup %6711  ;;  %v2112_v45 = vmul.f32 %v1952_v37, %v7946_v10  ;;  %v1953_v15 = vadd.f32 1.0, %v6710_v39  ;;  %6731 = vtanh.f32 %v8038_v28  ;;  %v8075_v57 = vmul.f32 0.5, %v1066_v41 }
 0x2ba   :  { %8964 = vst [vmem:[#allocation38_spill] sm:$0xff] %v8071_v62  ;;  %v8077_v53 = vpop.f32.mrb[47].mxu1  ;;  %v8079_v23 = vpop.f32.mrb[63].mxu0  ;;  %v2295_v34 = vadd.f32 %v7925_v12, %v2110_v40  ;;  %v2111_v35 = vmul.f32 %v1951_v18, %v7954_v20  ;;  %v1960_v44 = vadd.f32 1.0, %v6712_v9  ;;  %6733 = vtanh.f32 %v8040_v17 }
 0x2bb   :  { %8965 = vst [vmem:[#allocation39_spill] sm:$0xff] %v8077_v53  ;;  %8966 = vst [vmem:[#allocation40_spill] sm:$0xff] %v8079_v23  ;;  %v6714_v48 = vpop.eup %6713  ;;  %v2321_v10 = vadd.f32 %v7935_v54, %v2112_v45  ;;  %v2113_v37 = vmul.f32 %v1953_v15, %v7964_v21  ;;  %6735 = vtanh.f32 %v8059_v8  ;;  %v8092_v15 = vmul.f32 0.5, %v1179_v49 }
 0x2bc   :  { %v6716_v62 = vpop.eup %6715  ;;  %v1962_v39 = vadd.f32 1.0, %v6714_v48  ;;  %v2308_v53 = vadd.f32 %v2307_v55, %v2111_v35  ;;  %v2120_v23 = vmul.f32 %v1960_v44, %v7972_v11  ;;  %6737 = vtanh.f32 %v8067_v61  ;;  %v8094_v55 = vpop.f32.mrb[48].mxu1 }
 0x2bd   :  { %v6718_v41 = vpop.eup %6717  ;;  %v1961_v29 = vadd.f32 1.0, %v6716_v62  ;;  %v2334_v20 = vadd.f32 %v2333_v63, %v2113_v37  ;;  %6739 = vtanh.f32 %v8075_v57  ;;  %v8096_v11 = vpop.f32.mrb[64].mxu0 }
 0x2be   :  { %v6720_v12 = vpop.eup %6719  ;;  %v2122_v40 = vmul.f32 %v1962_v39, %v7974_v51  ;;  %v1963_v18 = vadd.f32 1.0, %v6718_v41  ;;  %v2296_v9 = vadd.f32 %v2295_v34, %v2120_v23  ;;  %v8967_v51 = vld [vmem:[#allocation27_spill] sm:$0xff]  ;;  %v8101_v37 = vpop.f32.mrb[49].mxu1  ;;  %6741 = vtanh.f32 %v8092_v15 }
 0x2bf   :  { %v6722_v54 = vpop.eup %6721  ;;  %v2121_v21 = vmul.f32 %v1961_v29, %v7977_v25  ;;  %v1970_v45 = vadd.f32 1.0, %v6720_v12  ;;  %v1216_v35 = vadd.f32 %v7891_v46, %v8967_v51  ;;  %8968 = vst [vmem:[#allocation27_spill] sm:$0xff] %v8101_v37  ;;  %v8103_v23 = vpop.f32.mrb[65].mxu0 }
 0x2c0   :  { %v6724_v44 = vpop.eup %6723  ;;  %v2322_v62 = vadd.f32 %v2321_v10, %v2122_v40  ;;  %v2123_v63 = vmul.f32 %v1963_v18, %v7995_v14  ;;  %v1972_v48 = vadd.f32 1.0, %v6722_v54  ;;  %8969 = vst [vmem:[#allocation41_spill] sm:$0xff] %v8103_v23  ;;  %v8107_v39 = vpop.f32.mrb[50].mxu1 }
 0x2c1   :  { %v6726_v25 = vpop.eup %6725  ;;  %v2309_v29 = vadd.f32 %v2308_v53, %v2121_v21  ;;  %v2130_v49 = vmul.f32 %v1970_v45, %v7997_v59  ;;  %v1971_v34 = vadd.f32 1.0, %v6724_v44  ;;  %8970 = vst [vmem:[#allocation42_spill] sm:$0xff] %v8107_v39  ;;  %v8109_v10 = vpop.f32.mrb[66].mxu0  ;;  %v8112_v40 = vmul.f32 0.5, %v1216_v35  ;;  %v8973_v44 = vld [vmem:[#allocation28_spill] sm:$0xff] }
 0x2c2   :  { %8971 = vst [vmem:[#allocation43_spill] sm:$0xff] %v8109_v10  ;;  %v6728_v14 = vpop.eup %6727  ;;  %v2335_v41 = vadd.f32 %v2334_v20, %v2123_v63  ;;  %v2132_v12 = vmul.f32 %v1972_v48, %v8006_v32  ;;  %v1973_v46 = vadd.f32 1.0, %v6726_v25  ;;  %v8114_v18 = vpop.f32.mrb[51].mxu1  ;;  %v8974_v39 = vld [vmem:[#allocation32_spill] sm:$0xff] }
 0x2c3   :  { %v8116_v54 = vpop.f32.mrb[67].mxu0  ;;  %v6730_v53 = vpop.eup %6729  ;;  %v2297_v59 = vadd.f32 %v2296_v9, %v2130_v49  ;;  %v2131_v21 = vmul.f32 %v1971_v34, %v8008_v26  ;;  %v1980_v45 = vadd.f32 1.0, %v6728_v14  ;;  %v1329_v23 = vadd.f32 %v8974_v39, %v8973_v44  ;;  %v8975_v39 = vld [vmem:[#allocation29_spill] sm:$0xff] }
 0x2c4   :  { %8972 = vst [vmem:[#allocation44_spill] sm:$0xff] %v8116_v54  ;;  %v6732_v10 = vpop.eup %6731  ;;  %v2323_v37 = vadd.f32 %v2322_v62, %v2132_v12  ;;  %v2133_v20 = vmul.f32 %v1973_v46, %v8015_v6  ;;  %v1982_v32 = vadd.f32 1.0, %v6730_v53  ;;  %6743 = vtanh.f32 %v8112_v40 }
 0x2c5   :  { %v6734_v63 = vpop.eup %6733  ;;  %v2310_v48 = vadd.f32 %v2309_v29, %v2131_v21  ;;  %v2140_v35 = vmul.f32 %v1980_v45, %v8032_v42  ;;  %v1981_v25 = vadd.f32 1.0, %v6732_v10  ;;  %v8124_v54 = vmul.f32 0.5, %v1329_v23  ;;  %v8131_v29 = vpop.f32.mrb[52].mxu1 }
 0x2c6   :  { %v6736_v9 = vpop.eup %6735  ;;  %v2336_v26 = vadd.f32 %v2335_v41, %v2133_v20  ;;  %v2142_v49 = vmul.f32 %v1982_v32, %v8034_v3  ;;  %v1983_v34 = vadd.f32 1.0, %v6734_v63  ;;  %v1218_v62 = vadd.f32 %v7896_v27, %v8975_v39  ;;  %v8133_v42 = vpop.f32.mrb[68].mxu0  ;;  %v8976_v20 = vld [vmem:[#allocation30_spill] sm:$0xff] }
 0x2c7   :  { %v6738_v14 = vpop.eup %6737  ;;  %v2298_v6 = vadd.f32 %v2297_v59, %v2140_v35  ;;  %v2141_v12 = vmul.f32 %v1981_v25, %v8038_v28  ;;  %v1990_v46 = vadd.f32 1.0, %v6736_v9  ;;  %6745 = vtanh.f32 %v8124_v54  ;;  %v8138_v21 = vpop.f32.mrb[53].mxu1  ;;  %v8977_v25 = vld [vmem:[#allocation33_spill] sm:$0xff] }
 0x2c8   :  { %v6740_v23 = vpop.eup %6739  ;;  %v2324_v10 = vadd.f32 %v2323_v37, %v2142_v49  ;;  %v2143_v41 = vmul.f32 %v1983_v34, %v8040_v17  ;;  %v1992_v3 = vadd.f32 1.0, %v6738_v14  ;;  %v8136_v53 = vmul.f32 0.5, %v1218_v62  ;;  %v8140_v27 = vpop.f32.mrb[69].mxu0  ;;  %v8979_v14 = vld [vmem:[#allocation34_spill] sm:$0xff] }
 0x2c9   :  { %v2311_v59 = vadd.f32 %v2310_v48, %v2141_v12  ;;  %v2150_v28 = vmul.f32 %v1990_v46, %v8059_v8  ;;  %v1991_v45 = vadd.f32 1.0, %v6740_v23  ;;  %v1331_v32 = vadd.f32 %v7898_v24, %v8976_v20  ;;  %v8145_v63 = vpop.f32.mrb[54].mxu1  ;;  %v8147_v35 = vpop.f32.mrb[70].mxu0 }
 0x2ca   :  { %v2337_v37 = vadd.f32 %v2336_v26, %v2143_v41  ;;  %v2152_v17 = vmul.f32 %v1992_v3, %v8067_v61  ;;  %6747 = vtanh.f32 %v8136_v53  ;;  %v1220_v9 = vadd.f32 %v8977_v25, %v8967_v51  ;;  %v8153_v49 = vpop.f32.mrb[55].mxu1  ;;  %v8155_v48 = vpop.f32.mrb[71].mxu0 }
 0x2cb   :  { %8978 = vst [vmem:[#allocation28_spill] sm:$0xff] %v8155_v48  ;;  %v6742_v8 = vpop.eup %6741  ;;  %v2299_v34 = vadd.f32 %v2298_v6, %v2150_v28  ;;  %v2151_v24 = vmul.f32 %v1991_v45, %v8075_v57  ;;  %v8158_v62 = vmul.f32 0.5, %v1331_v32  ;;  %v1333_v26 = vadd.f32 %v8979_v14, %v8973_v44 }
 0x2cc   :  { %v2325_v12 = vadd.f32 %v2324_v10, %v2152_v17  ;;  %v1993_v61 = vadd.f32 1.0, %v6742_v8  ;;  %v8162_v46 = vmul.f32 0.5, %v1220_v9  ;;  %v1222_v23 = vadd.f32 %v7906_v19, %v8975_v39  ;;  %v8174_v19 = vpop.f32.mrb[56].mxu1 }
 0x2cd   :  { %v2300_v41 = vrot.slane %v2299_v34, 4  ;;  %v2312_v3 = vadd.f32 %v2311_v59, %v2151_v24  ;;  %6749 = vtanh.f32 %v8158_v62  ;;  %v8167_v25 = vmul.f32 0.5, %v1333_v26  ;;  %8980 = vst [vmem:[#allocation32_spill] sm:$0xff] %v8174_v19  ;;  %v8176_v59 = vpop.f32.mrb[72].mxu0  ;;  %v8982_v24 = vld [vmem:[#allocation35_spill] sm:$0xff]  ;;  %v8181_v14 = vpop.f32.mrb[57].mxu1 }
 0x2ce   :  { %v6744_v6 = vpop.eup %6743  ;;  %v2326_v57 = vrot.slane %v2325_v12, 4  ;;  %v2153_v28 = vmul.f32 %v1993_v61, %v8092_v15  ;;  %6751 = vtanh.f32 %v8162_v46  ;;  %v8171_v45 = vmul.f32 0.5, %v1222_v23  ;;  %8981 = vst [vmem:[#allocation29_spill] sm:$0xff] %v8176_v59  ;;  %8983 = vst [vmem:[#allocation30_spill] sm:$0xff] %v8181_v14  ;;  %v8183_v26 = vpop.f32.mrb[73].mxu0 }
 0x2cf   :  { %v2301_v10 = vadd.f32 %v2300_v41, %v2299_v34  ;;  %v2313_v32 = vrot.slane %v2312_v3, 4  ;;  %v1844_v17 = vadd.f32 1.0, %v6744_v6  ;;  %6753 = vtanh.f32 %v8167_v25  ;;  %8984 = vst [vmem:[#allocation33_spill] sm:$0xff] %v8183_v26 }
 0x2d0   :  { %v2327_v9 = vadd.f32 %v2326_v57, %v2325_v12  ;;  %v2338_v8 = vadd.f32 %v2337_v37, %v2153_v28  ;;  %6755 = vtanh.f32 %v8171_v45  ;;  %v1335_v15 = vadd.f32 %v8982_v24, %v8976_v20  ;;  %v8190_v12 = vpop.f32.mrb[58].mxu1  ;;  %v8192_v37 = vpop.f32.mrb[74].mxu0 }
 0x2d1   :  { %v6746_v34 = vpop.eup %6745  ;;  %v2302_v61 = vrot.slane %v2301_v10, 2  ;;  %v2314_v23 = vadd.f32 %v2313_v32, %v2312_v3  ;;  %v8186_v41 = vmul.f32 %v1844_v17, %v8112_v40  ;;  %v1226_v6 = vadd.f32 %v7921_v5, %v8967_v51  ;;  %8985 = vst [vmem:[#allocation34_spill] sm:$0xff] %v8190_v12  ;;  %8986 = vst [vmem:[#allocation35_spill] sm:$0xff] %v8192_v37  ;;  %v8196_v14 = vpop.f32.mrb[59].mxu1 }
 0x2d2   :  { %v2328_v57 = vrot.slane %v2327_v9, 2  ;;  %v2339_v28 = vrot.slane %v2338_v8, 4  ;;  %v1846_v24 = vadd.f32 1.0, %v6746_v34  ;;  %v8194_v59 = vmul.f32 0.5, %v1335_v15  ;;  %8987 = vst [vmem:[#allocation45_spill] sm:$0xff] %v8196_v14  ;;  %v8198_v26 = vpop.f32.mrb[75].mxu0 }
 0x2d3   :  { %8988 = vst [vmem:[#allocation46_spill] sm:$0xff] %v8198_v26  ;;  %v2303_v3 = vadd.f32 %v2302_v61, %v2301_v10  ;;  %v2315_v32 = vrot.slane %v2314_v23, 2  ;;  %v8200_v40 = vmul.f32 0.5, %v1226_v6  ;;  %v1339_v5 = vadd.f32 %v7923_v38, %v8973_v44 }
 0x2d4   :  { %v6748_v17 = vpop.eup %6747  ;;  %v2329_v12 = vadd.f32 %v2328_v57, %v2327_v9  ;;  %v2340_v19 = vadd.f32 %v2339_v28, %v2338_v8  ;;  %v2006_v37 = vmul.f32 %v1846_v24, %v8124_v54  ;;  %6757 = vtanh.f32 %v8194_v59  ;;  %v8214_v57 = vpop.f32.mrb[60].mxu1 }
 0x2d5   :  { %v2304_v15 = vrot.slane %v2303_v3, 1  ;;  %v2316_v34 = vadd.f32 %v2315_v32, %v2314_v23  ;;  %v1845_v48 = vadd.f32 1.0, %v6748_v17  ;;  %6759 = vtanh.f32 %v8200_v40  ;;  %8989 = vst [vmem:[#allocation47_spill] sm:$0xff] %v8214_v57  ;;  %v8216_v23 = vpop.f32.mrb[76].mxu0  ;;  %v8219_v17 = vpop.f32.mrb[61].mxu1 }
 0x2d6   :  { %v2330_v26 = vrot.slane %v2329_v12, 1  ;;  %v2341_v10 = vrot.slane %v2340_v19, 2  ;;  %v8207_v61 = vmul.f32 0.5, %v1339_v5  ;;  %v1228_v6 = vadd.f32 %v7931_v2, %v8975_v39  ;;  %8990 = vst [vmem:[#allocation48_spill] sm:$0xff] %v8216_v23  ;;  %v8221_v2 = vpop.f32.mrb[77].mxu0  ;;  %v8227_v57 = vpop.f32.mrb[62].mxu1 }
 0x2d7   :  { %v6750_v38 = vpop.eup %6749  ;;  %v2305_v14 = vadd.f32 %v2304_v15, %v2303_v3  ;;  %v2317_v9 = vrot.slane %v2316_v34, 1  ;;  %v2005_v8 = vmul.f32 %v1845_v48, %v8136_v53  ;;  %v1341_v54 = vadd.f32 %v7933_v1, %v8976_v20  ;;  %8991 = vst [vmem:[#allocation49_spill] sm:$0xff] %v8221_v2  ;;  %v8229_v23 = vpop.f32.mrb[78].mxu0 }
 0x2d8   :  { %v6752_v28 = vpop.eup %6751  ;;  %v2331_v24 = vadd.f32 %v2330_v26, %v2329_v12  ;;  %v2342_v32 = vadd.f32 %v2341_v10, %v2340_v19  ;;  %v1847_v5 = vadd.f32 1.0, %v6750_v38  ;;  %6761 = vtanh.f32 %v8207_v61  ;;  %8992 = vst [vmem:[#allocation50_spill] sm:$0xff] %v8229_v23  ;;  %v8234_v2 = vpop.f32.mrb[63].mxu1 }
 0x2d9   :  { %v6754_v3 = vpop.eup %6753  ;;  %v2318_v15 = vadd.f32 %v2317_v9, %v2316_v34  ;;  %v1854_v53 = vadd.f32 1.0, %v6752_v28  ;;  %v8223_v48 = vmul.f32 0.5, %v1228_v6  ;;  %v8225_v1 = vmul.f32 0.5, %v1341_v54  ;;  %v8236_v34 = vpop.f32.mrb[79].mxu0 }
 0x2da   :  { %v6756_v26 = vpop.eup %6755  ;;  %v2343_v19 = vrot.slane %v2342_v32, 1  ;;  %v2007_v12 = vmul.f32 %v1847_v5, %v8158_v62  ;;  %v1856_v10 = vadd.f32 1.0, %v6754_v3  ;;  %v1230_v38 = vadd.f32 %v7940_v13, %v8967_v51 }
 0x2db   :  { %v2485_v6 = vcombine.low %v2305_v14, %v2318_v15  ;;  %v2014_v9 = vmul.f32 %v1854_v53, %v8162_v46  ;;  %v1855_v54 = vadd.f32 1.0, %v6756_v26  ;;  %6763 = vtanh.f32 %v8223_v48 }
 0x2dc   :  { %v2344_v28 = vadd.f32 %v2343_v19, %v2342_v32  ;;  %v2016_v23 = vmul.f32 %v1856_v10, %v8167_v25  ;;  %6765 = vtanh.f32 %v8225_v1  ;;  %v8242_v62 = vmul.f32 0.5, %v1230_v38 }
 0x2dd   :  { %v2493_v13 = vrot.slane %v2485_v6, %v7606_v52  ;;  %v2215_v5 = vadd.f32 %v2014_v9, %v8186_v41  ;;  %v2015_v14 = vmul.f32 %v1855_v54, %v8171_v45  ;;  %v1343_v46 = vadd.f32 %v7942_v43, %v8973_v44  ;;  %v8256_v41 = vpop.f32.mrb[64].mxu1 }
 0x2de   :  { %v6758_v3 = vpop.eup %6757  ;;  %v2486_v15 = vcombine.low %v2331_v24, %v2344_v28  ;;  %v2241_v32 = vadd.f32 %v2016_v23, %v2006_v37  ;;  %6767 = vtanh.f32 %v8242_v62  ;;  %v1232_v25 = vadd.f32 %v7950_v16, %v8975_v39  ;;  %v8263_v23 = vpop.f32.mrb[65].mxu1 }
 0x2df   :  { %v6760_v53 = vpop.eup %6759  ;;  %v2228_v26 = vadd.f32 %v2015_v14, %v2005_v8  ;;  %v1857_v19 = vadd.f32 1.0, %v6758_v3  ;;  %v8252_v10 = vmul.f32 0.5, %v1343_v46  ;;  %v1345_v45 = vadd.f32 %v7952_v60, %v8976_v20  ;;  %v8271_v6 = vpop.f32.mrb[66].mxu1 }
 0x2e0   :  { %v2500_v43 = vrot.slane %v2486_v15, %v7606_v52  ;;  %v1864_v24 = vadd.f32 1.0, %v6760_v53  ;;  %v8259_v38 = vmul.f32 0.5, %v1232_v25  ;;  %v1236_v37 = vadd.f32 %v7990_v56, %v8967_v51  ;;  %v8277_v14 = vpop.f32.mrb[67].mxu1 }
 0x2e1   :  { %v2017_v16 = vmul.f32 %v1857_v19, %v8194_v59  ;;  %6769 = vtanh.f32 %v8252_v10  ;;  %v8267_v8 = vmul.f32 0.5, %v1345_v45  ;;  %v1349_v60 = vadd.f32 %v7992_v0, %v8973_v44 }
 0x2e2   :  { %v6762_v9 = vpop.eup %6761  ;;  %v2501_v54 = vcombine.low %v2493_v13, %v2500_v43  ;;  %v2024_v28 = vmul.f32 %v1864_v24, %v8200_v40  ;;  %6771 = vtanh.f32 %v8259_v38  ;;  %v8275_v56 = vmul.f32 0.5, %v1236_v37 }
 0x2e3   :  { %v2254_v59 = vadd.f32 %v2017_v16, %v2007_v12  ;;  %v1866_v46 = vadd.f32 1.0, %v6762_v9  ;;  %6773 = vtanh.f32 %v8267_v8  ;;  %v8280_v3 = vmul.f32 0.5, %v1349_v60 }
 0x2e4   :  { %v2531_v15 = vrot.slane %v2501_v54, 7  ;;  %v2216_v0 = vadd.f32 %v2215_v5, %v2024_v28  ;;  %6775 = vtanh.f32 %v8275_v56  ;;  %v1238_v13 = vadd.f32 %v8001_v7, %v8975_v39  ;;  %v8302_v60 = vpop.f32.mrb[68].mxu1 }
 0x2e5   :  { %v6764_v40 = vpop.eup %6763  ;;  %v2026_v25 = vmul.f32 %v1866_v46, %v8207_v61  ;;  %6777 = vtanh.f32 %v8280_v3  ;;  %v1351_v12 = vadd.f32 %v8003_v33, %v8976_v20  ;;  %v1240_v53 = vadd.f32 %v8010_v31, %v8967_v51  ;;  %v8309_v54 = vpop.f32.mrb[69].mxu1 }
 0x2e6   :  { %v6766_v19 = vpop.eup %6765  ;;  %v8993_v5 = vcombine.low %v7961_v50, %v7969_v22  ;;  %v1865_v43 = vadd.f32 1.0, %v6764_v40  ;;  %v8295_v24 = vmul.f32 0.5, %v1238_v13  ;;  %v1353_v7 = vadd.f32 %v8012_v30, %v8973_v44  ;;  %v8314_v46 = vpop.f32.mrb[70].mxu1 }
 0x2e7   :  { %v2242_v37 = vadd.f32 %v2241_v32, %v2026_v25  ;;  %v1867_v16 = vadd.f32 1.0, %v6766_v19  ;;  %v8300_v33 = vmul.f32 0.5, %v1351_v12  ;;  %v8307_v22 = vmul.f32 0.5, %v1240_v53 }
 0x2e8   :  { %v2533_v45 = vsel %vm2532_vm3, %v2531_v15, %v8993_v5  ;;  %v6768_v31 = vpop.eup %6767  ;;  %v2025_v50 = vmul.f32 %v1865_v43, %v8223_v48  ;;  %6779 = vtanh.f32 %v8295_v24  ;;  %v8317_v40 = vmul.f32 0.5, %v1353_v7  ;;  %v8319_v48 = vpop.f32.mrb[71].mxu1 }
 0x2e9   :  { %v2535_v61 = vsel %vm2534_vm4, %v2531_v15, %v2533_v45  ;;  %v2027_v32 = vmul.f32 %v1867_v16, %v8225_v1  ;;  %v1874_v28 = vadd.f32 1.0, %v6768_v31  ;;  %6781 = vtanh.f32 %v8300_v33 }
 0x2ea   :  { %v2537_v9 = vsel %vm2536_vm5, %v2531_v15, %v2535_v61  ;;  %v2229_v13 = vadd.f32 %v2228_v26, %v2025_v50  ;;  %6783 = vtanh.f32 %v8307_v22  ;;  %v1355_v1 = vadd.f32 %v8023_v36, %v8976_v20 }
 0x2eb   :  { %v2539_v30 = vsel %vm2538_vm6, %v2531_v15, %v2537_v9  ;;  %v6770_v25 = vpop.eup %6769  ;;  %v2255_v12 = vadd.f32 %v2254_v59, %v2027_v32  ;;  %v2034_v53 = vmul.f32 %v1874_v28, %v8242_v62  ;;  %v1242_v15 = vadd.f32 %v8021_v4, %v8975_v39 }
 0x2ec   :  { %v6772_v19 = vpop.eup %6771  ;;  %2560 = vst [vmem:[#allocation2] sm:$0xff] %v2539_v30  ;;  %v1876_v5 = vadd.f32 1.0, %v6770_v25  ;;  %6785 = vtanh.f32 %v8317_v40  ;;  %v1246_v26 = vadd.f32 %v8053_v58, %v8967_v51  ;;  %v1359_v45 = vadd.f32 %v8055_v47, %v8973_v44  ;;  %v8994_v47 = vld [vmem:[#allocation31_spill] sm:$0xff]  ;;  %v8344_v32 = vpop.f32.mrb[72].mxu1 }
 0x2ed   :  { %v6774_v59 = vpop.eup %6773  ;;  %v2217_v43 = vadd.f32 %v2216_v0, %v2034_v53  ;;  %v1875_v62 = vadd.f32 1.0, %v6772_v19  ;;  %v8331_v7 = vmul.f32 0.5, %v1242_v15  ;;  %v8333_v4 = vmul.f32 0.5, %v1355_v1  ;;  %v8348_v53 = vpop.f32.mrb[73].mxu1 }
 0x2ee   :  { %v6776_v61 = vpop.eup %6775  ;;  %v2036_v36 = vmul.f32 %v1876_v5, %v8252_v10  ;;  %v1877_v16 = vadd.f32 1.0, %v6774_v59  ;;  %v8336_v31 = vmul.f32 0.5, %v1246_v26  ;;  %v8338_v9 = vmul.f32 0.5, %v1359_v45  ;;  %v8354_v19 = vpop.f32.mrb[74].mxu1 }
 0x2ef   :  { %v6778_v50 = vpop.eup %6777  ;;  %v2035_v58 = vmul.f32 %v1875_v62, %v8259_v38  ;;  %v1884_v30 = vadd.f32 1.0, %v6776_v61  ;;  %6787 = vtanh.f32 %v8331_v7  ;;  %v1248_v0 = vadd.f32 %v8994_v47, %v8975_v39  ;;  %v8360_v59 = vpop.f32.mrb[75].mxu1  ;;  %v8996_v61 = vld [vmem:[#allocation37_spill] sm:$0xff] }
 0x2f0   :  { %v2243_v28 = vadd.f32 %v2242_v37, %v2036_v36  ;;  %v2037_v25 = vmul.f32 %v1877_v16, %v8267_v8  ;;  %v1886_v10 = vadd.f32 1.0, %v6778_v50  ;;  %6789 = vtanh.f32 %v8333_v4  ;;  %v8995_v8 = vld [vmem:[#allocation36_spill] sm:$0xff] }
 0x2f1   :  { %v2230_v15 = vadd.f32 %v2229_v13, %v2035_v58  ;;  %v2044_v1 = vmul.f32 %v1884_v30, %v8275_v56  ;;  %6791 = vtanh.f32 %v8336_v31  ;;  %v8352_v38 = vmul.f32 0.5, %v1248_v0 }
 0x2f2   :  { %v6780_v5 = vpop.eup %6779  ;;  %v2256_v26 = vadd.f32 %v2255_v12, %v2037_v25  ;;  %v2046_v37 = vmul.f32 %v1886_v10, %v8280_v3  ;;  %6793 = vtanh.f32 %v8338_v9  ;;  %v1361_v45 = vadd.f32 %v8995_v8, %v8976_v20  ;;  %v8997_v3 = vld [vmem:[#allocation38_spill] sm:$0xff] }
 0x2f3   :  { %v6782_v13 = vpop.eup %6781  ;;  %v2218_v62 = vadd.f32 %v2217_v43, %v2044_v1  ;;  %v1885_v56 = vadd.f32 1.0, %v6780_v5  ;;  %6795 = vtanh.f32 %v8352_v38  ;;  %v1250_v36 = vadd.f32 %v8996_v61, %v8967_v51  ;;  %v8998_v43 = vld [vmem:[#allocation39_spill] sm:$0xff] }
 0x2f4   :  { %v6784_v16 = vpop.eup %6783  ;;  %v2244_v50 = vadd.f32 %v2243_v28, %v2046_v37  ;;  %v1887_v12 = vadd.f32 1.0, %v6782_v13  ;;  %v8365_v58 = vmul.f32 0.5, %v1361_v45  ;;  %v1363_v30 = vadd.f32 %v8997_v3, %v8973_v44  ;;  %v8999_v37 = vld [vmem:[#allocation40_spill] sm:$0xff] }
 0x2f5   :  { %v2045_v47 = vmul.f32 %v1885_v56, %v8295_v24  ;;  %v1894_v0 = vadd.f32 1.0, %v6784_v16  ;;  %v8370_v25 = vmul.f32 0.5, %v1250_v36  ;;  %v1252_v10 = vadd.f32 %v8998_v43, %v8975_v39  ;;  %v8382_v56 = vpop.f32.mrb[76].mxu1  ;;  %v9002_v43 = vld [vmem:[#allocation27_spill] sm:$0xff] }
 0x2f6   :  { %v6786_v1 = vpop.eup %6785  ;;  %v2047_v5 = vmul.f32 %v1887_v12, %v8300_v33  ;;  %6797 = vtanh.f32 %v8365_v58  ;;  %v8376_v28 = vmul.f32 0.5, %v1363_v30  ;;  %v1365_v8 = vadd.f32 %v8999_v37, %v8976_v20  ;;  %v8389_v16 = vpop.f32.mrb[77].mxu1 }
 0x2f7   :  { %v2231_v45 = vadd.f32 %v2230_v15, %v2045_v47  ;;  %v2054_v13 = vmul.f32 %v1894_v0, %v8307_v22  ;;  %v1896_v24 = vadd.f32 1.0, %v6786_v1  ;;  %6799 = vtanh.f32 %v8370_v25  ;;  %9000 = vst [vmem:[#allocation31_spill] sm:$0xff] %v8389_v16  ;;  %v8396_v47 = vpop.f32.mrb[78].mxu1  ;;  %v9003_v1 = vld [vmem:[#allocation41_spill] sm:$0xff] }
 0x2f8   :  { %v2257_v61 = vadd.f32 %v2256_v26, %v2047_v5  ;;  %6801 = vtanh.f32 %v8376_v28  ;;  %v8385_v36 = vmul.f32 0.5, %v1252_v10  ;;  %v8387_v33 = vmul.f32 0.5, %v1365_v8  ;;  %9001 = vst [vmem:[#allocation36_spill] sm:$0xff] %v8396_v47  ;;  %v8403_v5 = vpop.f32.mrb[79].mxu1 }
 0x2f9   :  { %v6788_v12 = vpop.eup %6787  ;;  %v2219_v3 = vadd.f32 %v2218_v62, %v2054_v13  ;;  %v2056_v15 = vmul.f32 %v1896_v24, %v8317_v40  ;;  %v1256_v22 = vadd.f32 %v8094_v55, %v8967_v51  ;;  %v1369_v30 = vadd.f32 %v8096_v11, %v8973_v44 }
 0x2fa   :  { %v6790_v26 = vpop.eup %6789  ;;  %v1895_v0 = vadd.f32 1.0, %v6788_v12  ;;  %6803 = vtanh.f32 %v8385_v36  ;;  %v1258_v10 = vadd.f32 %v9002_v43, %v8975_v39  ;;  %v1371_v62 = vadd.f32 %v9003_v1, %v8976_v20 }
 0x2fb   :  { %v6792_v40 = vpop.eup %6791  ;;  %v2245_v37 = vadd.f32 %v2244_v50, %v2056_v15  ;;  %v1897_v55 = vadd.f32 1.0, %v6790_v26  ;;  %6805 = vtanh.f32 %v8387_v33  ;;  %v8406_v11 = vmul.f32 0.5, %v1256_v22 }
 0x2fc   :  { %v6794_v8 = vpop.eup %6793  ;;  %v2055_v13 = vmul.f32 %v1895_v0, %v8331_v7  ;;  %v1904_v24 = vadd.f32 1.0, %v6792_v40  ;;  %v8409_v12 = vmul.f32 0.5, %v1369_v30  ;;  %v8411_v47 = vmul.f32 0.5, %v1258_v10  ;;  %v9004_v0 = vld [vmem:[#allocation42_spill] sm:$0xff] }
 0x2fd   :  { %v6796_v43 = vpop.eup %6795  ;;  %v2057_v1 = vmul.f32 %v1897_v55, %v8333_v4  ;;  %v1906_v16 = vadd.f32 1.0, %v6794_v8  ;;  %6807 = vtanh.f32 %v8406_v11  ;;  %v8415_v50 = vmul.f32 0.5, %v1371_v62  ;;  %v8423_v4 = vpop.f32.mrb[80].mxu1 }
 0x2fe   :  { %v2232_v15 = vadd.f32 %v2231_v45, %v2055_v13  ;;  %v2064_v22 = vmul.f32 %v1904_v24, %v8336_v31  ;;  %v1905_v26 = vadd.f32 1.0, %v6796_v43  ;;  %6809 = vtanh.f32 %v8409_v12  ;;  %9005 = vst [vmem:[#allocation37_spill] sm:$0xff] %v8423_v4  ;;  %v9006_v31 = vld [vmem:[#allocation43_spill] sm:$0xff]  ;;  %v8429_v8 = vpop.f32.mrb[81].mxu1 }
 0x2ff   :  { %v2258_v7 = vadd.f32 %v2257_v61, %v2057_v1  ;;  %v2066_v30 = vmul.f32 %v1906_v16, %v8338_v9  ;;  %6811 = vtanh.f32 %v8411_v47  ;;  %v1260_v10 = vadd.f32 %v9004_v0, %v8967_v51  ;;  %9007 = vst [vmem:[#allocation38_spill] sm:$0xff] %v8429_v8  ;;  %v8435_v43 = vpop.f32.mrb[82].mxu1 }
 0x300   :  { %v6798_v40 = vpop.eup %6797  ;;  %v2220_v55 = vadd.f32 %v2219_v3, %v2064_v22  ;;  %v2065_v62 = vmul.f32 %v1905_v26, %v8352_v38  ;;  %6813 = vtanh.f32 %v8415_v50  ;;  %v1373_v45 = vadd.f32 %v9006_v31, %v8973_v44  ;;  %9008 = vst [vmem:[#allocation39_spill] sm:$0xff] %v8435_v43  ;;  %v9009_v26 = vld [vmem:[#allocation44_spill] sm:$0xff]  ;;  %v8441_v31 = vpop.f32.mrb[83].mxu1 }
 0x301   :  { %v6800_v61 = vpop.eup %6799  ;;  %v2246_v9 = vadd.f32 %v2245_v37, %v2066_v30  ;;  %v1907_v16 = vadd.f32 1.0, %v6798_v40  ;;  %v8431_v13 = vmul.f32 0.5, %v1260_v10  ;;  %v1262_v24 = vadd.f32 %v8114_v18, %v8975_v39  ;;  %9010 = vst [vmem:[#allocation40_spill] sm:$0xff] %v8441_v31 }
 0x302   :  { %v6802_v3 = vpop.eup %6801  ;;  %v2233_v1 = vadd.f32 %v2232_v15, %v2065_v62  ;;  %v1914_v38 = vadd.f32 1.0, %v6800_v61  ;;  %v8437_v22 = vmul.f32 0.5, %v1373_v45  ;;  %v1375_v0 = vadd.f32 %v9009_v26, %v8976_v20 }
 0x303   :  { %v2067_v37 = vmul.f32 %v1907_v16, %v8365_v58  ;;  %v1916_v30 = vadd.f32 1.0, %v6802_v3  ;;  %6815 = vtanh.f32 %v8431_v13  ;;  %v8445_v10 = vmul.f32 0.5, %v1262_v24 }
 0x304   :  { %v6804_v18 = vpop.eup %6803  ;;  %v2074_v40 = vmul.f32 %v1914_v38, %v8370_v25  ;;  %6817 = vtanh.f32 %v8437_v22  ;;  %v8449_v15 = vmul.f32 0.5, %v1375_v0  ;;  %v1266_v62 = vadd.f32 %v8131_v29, %v8967_v51 }
 0x305   :  { %v6806_v45 = vpop.eup %6805  ;;  %v2259_v61 = vadd.f32 %v2258_v7, %v2067_v37  ;;  %v2076_v26 = vmul.f32 %v1916_v30, %v8376_v28  ;;  %v1915_v58 = vadd.f32 1.0, %v6804_v18  ;;  %6819 = vtanh.f32 %v8445_v10  ;;  %v8463_v28 = vpop.f32.mrb[84].mxu1 }
 0x306   :  { %v2221_v16 = vadd.f32 %v2220_v55, %v2074_v40  ;;  %v1917_v24 = vadd.f32 1.0, %v6806_v45  ;;  %6821 = vtanh.f32 %v8449_v15  ;;  %v8456_v3 = vmul.f32 0.5, %v1266_v62  ;;  %9011 = vst [vmem:[#allocation27_spill] sm:$0xff] %v8463_v28  ;;  %v8467_v40 = vpop.f32.mrb[85].mxu1 }
 0x307   :  { %v6808_v25 = vpop.eup %6807  ;;  %v2247_v38 = vadd.f32 %v2246_v9, %v2076_v26  ;;  %v2075_v0 = vmul.f32 %v1915_v58, %v8385_v36  ;;  %v1379_v29 = vadd.f32 %v8133_v42, %v8973_v44  ;;  %v1268_v7 = vadd.f32 %v8138_v21, %v8975_v39  ;;  %9012 = vst [vmem:[#allocation41_spill] sm:$0xff] %v8467_v40  ;;  %v8471_v42 = vpop.f32.mrb[86].mxu1 }
 0x308   :  { %v6810_v37 = vpop.eup %6809  ;;  %v2222_v30 = vrot.slane %v2221_v16, 4  ;;  %v2077_v55 = vmul.f32 %v1917_v24, %v8387_v33  ;;  %v1924_v18 = vadd.f32 1.0, %v6808_v25  ;;  %6823 = vtanh.f32 %v8456_v3  ;;  %9013 = vst [vmem:[#allocation42_spill] sm:$0xff] %v8471_v42  ;;  %v8474_v33 = vpop.f32.mrb[87].mxu1 }
 0x309   :  { %v6812_v9 = vpop.eup %6811  ;;  %v2248_v62 = vrot.slane %v2247_v38, 4  ;;  %v2234_v36 = vadd.f32 %v2233_v1, %v2075_v0  ;;  %v1926_v45 = vadd.f32 1.0, %v6810_v37  ;;  %v8469_v26 = vmul.f32 0.5, %v1379_v29  ;;  %9014 = vst [vmem:[#allocation43_spill] sm:$0xff] %v8474_v33 }
 0x30a   :  { %v6814_v21 = vpop.eup %6813  ;;  %v2223_v58 = vadd.f32 %v2222_v30, %v2221_v16  ;;  %v2260_v28 = vadd.f32 %v2259_v61, %v2077_v55  ;;  %v2084_v31 = vmul.f32 %v1924_v18, %v8406_v11  ;;  %v1925_v43 = vadd.f32 1.0, %v6812_v9 }
 0x30b   :  { %v2249_v24 = vadd.f32 %v2248_v62, %v2247_v38  ;;  %v2235_v25 = vrot.slane %v2234_v36, 4  ;;  %v2086_v40 = vmul.f32 %v1926_v45, %v8409_v12  ;;  %v1927_v8 = vadd.f32 1.0, %v6814_v21 }
 0x30c   :  { %v2224_v4 = vrot.slane %v2223_v58, 2  ;;  %v2261_v1 = vrot.slane %v2260_v28, 4  ;;  %v2085_v0 = vmul.f32 %v1925_v43, %v8411_v47  ;;  %6825 = vtanh.f32 %v8469_v26  ;;  %v8485_v43 = vpop.f32.mrb[88].mxu1 }
 0x30d   :  { %v6816_v29 = vpop.eup %6815  ;;  %v2250_v37 = vrot.slane %v2249_v24, 2  ;;  %v2236_v16 = vadd.f32 %v2235_v25, %v2234_v36  ;;  %v2087_v61 = vmul.f32 %v1927_v8, %v8415_v50  ;;  %v8480_v11 = vmul.f32 0.5, %v1268_v7  ;;  %9015 = vst [vmem:[#allocation44_spill] sm:$0xff] %v8485_v43 }
 0x30e   :  { %v6818_v30 = vpop.eup %6817  ;;  %v2225_v55 = vadd.f32 %v2224_v4, %v2223_v58  ;;  %v2262_v38 = vadd.f32 %v2261_v1, %v2260_v28  ;;  %v1934_v18 = vadd.f32 1.0, %v6816_v29  ;;  %v1381_v12 = vadd.f32 %v8140_v27, %v8976_v20  ;;  %v8488_v4 = vpop.f32.mrb[89].mxu1 }
 0x30f   :  { %v6820_v9 = vpop.eup %6819  ;;  %v2251_v62 = vadd.f32 %v2250_v37, %v2249_v24  ;;  %v2237_v45 = vrot.slane %v2236_v16, 2  ;;  %v1936_v47 = vadd.f32 1.0, %v6818_v30  ;;  %6827 = vtanh.f32 %v8480_v11  ;;  %9016 = vst [vmem:[#allocation51_spill] sm:$0xff] %v8488_v4  ;;  %v8491_v24 = vpop.f32.mrb[90].mxu1 }
 0x310   :  { %v6822_v36 = vpop.eup %6821  ;;  %v2226_v21 = vrot.slane %v2225_v55, 1  ;;  %v2263_v50 = vrot.slane %v2262_v38, 2  ;;  %v2094_v8 = vmul.f32 %v1934_v18, %v8431_v13  ;;  %v1935_v7 = vadd.f32 1.0, %v6820_v9  ;;  %v8494_v33 = vpop.f32.mrb[91].mxu1 }
 0x311   :  { %v2252_v28 = vrot.slane %v2251_v62, 1  ;;  %v2238_v58 = vadd.f32 %v2237_v45, %v2236_v16  ;;  %v2096_v27 = vmul.f32 %v1936_v47, %v8437_v22  ;;  %v1937_v25 = vadd.f32 1.0, %v6822_v36 }
 0x312   :  { %v6824_v1 = vpop.eup %6823  ;;  %v2227_v29 = vadd.f32 %v2226_v21, %v2225_v55  ;;  %v2264_v37 = vadd.f32 %v2263_v50, %v2262_v38  ;;  %v2345_v30 = vadd.f32 %v2094_v8, %v2084_v31  ;;  %v2095_v43 = vmul.f32 %v1935_v7, %v8445_v10 }
 0x313   :  { %v2253_v42 = vadd.f32 %v2252_v28, %v2251_v62  ;;  %v2239_v13 = vrot.slane %v2238_v58, 1  ;;  %v2371_v18 = vadd.f32 %v2096_v27, %v2086_v40  ;;  %v2097_v9 = vmul.f32 %v1937_v25, %v8449_v15  ;;  %v9018_v28 = vld [vmem:[#allocation32_spill] sm:$0xff] }
 0x314   :  { %v2265_v4 = vrot.slane %v2264_v37, 1  ;;  %v2358_v16 = vadd.f32 %v2095_v43, %v2085_v0  ;;  %v1944_v45 = vadd.f32 1.0, %v6824_v1  ;;  %v8497_v22 = vmul.f32 0.5, %v1381_v12  ;;  %v8513_v43 = vpop.f32.mrb[92].mxu1 }
 0x315   :  { %v2240_v47 = vadd.f32 %v2239_v13, %v2238_v58  ;;  %v8499_v36 = vadd.f32 %v2097_v9, %v2087_v61  ;;  %v1270_v31 = vadd.f32 %v8145_v63, %v8967_v51  ;;  %v1383_v10 = vadd.f32 %v8147_v35, %v8973_v44  ;;  %v8521_v8 = vpop.f32.mrb[93].mxu1 }
 0x316   :  { %v6826_v55 = vpop.eup %6825  ;;  %v2266_v38 = vadd.f32 %v2265_v4, %v2264_v37  ;;  %v2104_v40 = vmul.f32 %v1944_v45, %v8456_v3  ;;  %6829 = vtanh.f32 %v8497_v22  ;;  %v1272_v15 = vadd.f32 %v8153_v49, %v8975_v39  ;;  %v9017_v3 = vld [vmem:[#allocation28_spill] sm:$0xff]  ;;  %v8530_v58 = vpop.f32.mrb[94].mxu1 }
 0x317   :  { %v2460_v0 = vcombine.low %v2227_v29, %v2240_v47  ;;  %v1946_v12 = vadd.f32 1.0, %v6826_v55  ;;  %v8509_v62 = vmul.f32 0.5, %v1270_v31  ;;  %v8511_v61 = vmul.f32 0.5, %v1383_v10  ;;  %v8538_v29 = vpop.f32.mrb[95].mxu1  ;;  %v9020_v47 = vld [vmem:[#allocation30_spill] sm:$0xff]  ;;  %v9021_v10 = vld [vmem:[#allocation33_spill] sm:$0xff] }
 0x318   :  { %v2461_v63 = vcombine.low %v2253_v42, %v2266_v38  ;;  %v8515_v21 = vadd.f32 %v2345_v30, %v2104_v40  ;;  %v8517_v35 = vmul.f32 0.5, %v1272_v15  ;;  %v1385_v50 = vadd.f32 %v9017_v3, %v8976_v20  ;;  %v9019_v30 = vld [vmem:[#allocation29_spill] sm:$0xff]  ;;  %v9022_v38 = vld [vmem:[#allocation34_spill] sm:$0xff] }
 0x319   :  { %v6828_v7 = vpop.eup %6827  ;;  %v8524_v49 = vrot.slane %v2460_v0, %v7606_v52  ;;  %v2106_v4 = vmul.f32 %v1946_v12, %v8469_v26  ;;  %6831 = vtanh.f32 %v8509_v62  ;;  %v1276_v42 = vadd.f32 %v9018_v28, %v8967_v51 }
 0x31a   :  { %v8533_v27 = vrot.slane %v2461_v63, %v7606_v52  ;;  %v1945_v25 = vadd.f32 1.0, %v6828_v7  ;;  %6833 = vtanh.f32 %v8511_v61  ;;  %v8536_v1 = vmul.f32 0.5, %v1385_v50  ;;  %v9024_v63 = vld [vmem:[#allocation45_spill] sm:$0xff] }
 0x31b   :  { %v8540_v37 = vadd.f32 %v2371_v18, %v2106_v4  ;;  %6835 = vtanh.f32 %v8517_v35  ;;  %v8543_v26 = vmul.f32 0.5, %v1276_v42  ;;  %v1389_v13 = vadd.f32 %v9019_v30, %v8973_v44  ;;  %v9025_v4 = vld [vmem:[#allocation46_spill] sm:$0xff]  ;;  %v9026_v30 = vld [vmem:[#allocation47_spill] sm:$0xff] }
 0x31c   :  { %v2105_v45 = vmul.f32 %v1945_v25, %v8480_v11  ;;  %6837 = vtanh.f32 %v8536_v1  ;;  %v1278_v31 = vadd.f32 %v9020_v47, %v8975_v39  ;;  %v1391_v55 = vadd.f32 %v9021_v10, %v8976_v20  ;;  %v9023_v11 = vld [vmem:[#allocation35_spill] sm:$0xff] }
 0x31d   :  { %6839 = vtanh.f32 %v8543_v26  ;;  %v8554_v18 = vmul.f32 0.5, %v1389_v13  ;;  %v1280_v40 = vadd.f32 %v9022_v38, %v8967_v51  ;;  %v1393_v12 = vadd.f32 %v9023_v11, %v8973_v44 }
 0x31e   :  { %v2359_v15 = vadd.f32 %v2358_v16, %v2105_v45  ;;  %v8560_v0 = vmul.f32 0.5, %v1278_v31  ;;  %v1282_v3 = vadd.f32 %v9024_v63, %v8975_v39  ;;  %v8567_v50 = vmul.f32 0.5, %v1391_v55  ;;  %v9027_v31 = vld [vmem:[#allocation48_spill] sm:$0xff] }
 0x31f   :  { %6841 = vtanh.f32 %v8554_v18  ;;  %v8569_v7 = vmul.f32 0.5, %v1280_v40  ;;  %v1395_v28 = vadd.f32 %v9025_v4, %v8976_v20  ;;  %v8574_v16 = vmul.f32 0.5, %v1393_v12  ;;  %v9028_v40 = vld [vmem:[#allocation49_spill] sm:$0xff] }
 0x320   :  { %v6830_v42 = vpop.eup %6829  ;;  %6843 = vtanh.f32 %v8560_v0  ;;  %v8576_v25 = vmul.f32 0.5, %v1282_v3  ;;  %v1286_v13 = vadd.f32 %v9026_v30, %v8967_v51  ;;  %v1399_v10 = vadd.f32 %v9027_v31, %v8973_v44 }
 0x321   :  { %v1947_v45 = vadd.f32 1.0, %v6830_v42  ;;  %6845 = vtanh.f32 %v8567_v50  ;;  %v8581_v47 = vmul.f32 0.5, %v1395_v28  ;;  %v1288_v38 = vadd.f32 %v8219_v17, %v8975_v39 }
 0x322   :  { %6847 = vtanh.f32 %v8569_v7  ;;  %v8586_v55 = vmul.f32 0.5, %v1286_v13  ;;  %v1401_v11 = vadd.f32 %v9028_v40, %v8976_v20  ;;  %v8594_v3 = vmul.f32 0.5, %v1399_v10 }
 0x323   :  { %v6832_v12 = vpop.eup %6831  ;;  %v2107_v63 = vmul.f32 %v1947_v45, %v8497_v22  ;;  %6849 = vtanh.f32 %v8574_v16  ;;  %v1290_v4 = vadd.f32 %v8227_v57, %v8967_v51  ;;  %v8599_v30 = vmul.f32 0.5, %v1288_v38  ;;  %v9029_v57 = vld [vmem:[#allocation50_spill] sm:$0xff] }
 0x324   :  { %v6834_v28 = vpop.eup %6833  ;;  %v1954_v42 = vadd.f32 1.0, %v6832_v12  ;;  %6851 = vtanh.f32 %v8576_v25  ;;  %v8601_v17 = vmul.f32 0.5, %v1401_v11  ;;  %v1403_v38 = vadd.f32 %v9029_v57, %v8973_v44 }
 0x325   :  { %v6836_v13 = vpop.eup %6835  ;;  %v2385_v31 = vadd.f32 %v8499_v36, %v2107_v63  ;;  %v1956_v40 = vadd.f32 1.0, %v6834_v28  ;;  %6853 = vtanh.f32 %v8581_v47  ;;  %v8605_v22 = vmul.f32 0.5, %v1290_v4 }
 0x326   :  { %v6838_v45 = vpop.eup %6837  ;;  %v2114_v10 = vmul.f32 %v1954_v42, %v8509_v62  ;;  %v1955_v51 = vadd.f32 1.0, %v6836_v13  ;;  %6855 = vtanh.f32 %v8586_v55  ;;  %v1292_v36 = vadd.f32 %v8234_v2, %v8975_v39 }
 0x327   :  { %v6840_v12 = vpop.eup %6839  ;;  %v2116_v11 = vmul.f32 %v1956_v40, %v8511_v61  ;;  %v1957_v9 = vadd.f32 1.0, %v6838_v45  ;;  %6857 = vtanh.f32 %v8594_v3  ;;  %v8621_v61 = vmul.f32 0.5, %v1403_v38 }
 0x328   :  { %v2347_v63 = vadd.f32 %v8515_v21, %v2114_v10  ;;  %v2115_v4 = vmul.f32 %v1955_v51, %v8517_v35  ;;  %v1964_v62 = vadd.f32 1.0, %v6840_v12  ;;  %6859 = vtanh.f32 %v8599_v30  ;;  %v2566_v21 = vld [vmem:[#allocation2] sm:$0xff] }
 0x329   :  { %v6842_v28 = vpop.eup %6841  ;;  %v2373_v42 = vadd.f32 %v8540_v37, %v2116_v11  ;;  %v2117_v44 = vmul.f32 %v1957_v9, %v8536_v1  ;;  %6861 = vtanh.f32 %v8601_v17  ;;  %v8626_v37 = vmul.f32 0.5, %v1292_v36 }
 0x32a   :  { %v6844_v13 = vpop.eup %6843  ;;  %v2360_v40 = vadd.f32 %v2359_v15, %v2115_v4  ;;  %v2124_v39 = vmul.f32 %v1964_v62, %v8543_v26  ;;  %v1966_v2 = vadd.f32 1.0, %v6842_v28  ;;  %6863 = vtanh.f32 %v8605_v22 }
 0x32b   :  { %v6846_v35 = vpop.eup %6845  ;;  %v2386_v45 = vadd.f32 %v2385_v31, %v2117_v44  ;;  %v1965_v10 = vadd.f32 1.0, %v6844_v13  ;;  %6865 = vtanh.f32 %v8621_v61  ;;  %v1405_v15 = vadd.f32 %v8236_v34, %v8976_v20 }
 0x32c   :  { %v6848_v1 = vpop.eup %6847  ;;  %v2348_v9 = vadd.f32 %v2347_v63, %v2124_v39  ;;  %v2126_v51 = vmul.f32 %v1966_v2, %v8554_v18  ;;  %v1967_v57 = vadd.f32 1.0, %v6846_v35  ;;  %6867 = vtanh.f32 %v8626_v37 }
 0x32d   :  { %v6850_v26 = vpop.eup %6849  ;;  %v2125_v38 = vmul.f32 %v1965_v10, %v8560_v0  ;;  %v1974_v12 = vadd.f32 1.0, %v6848_v1  ;;  %v2569_v31 = vmul.f32 0.015625, %v2566_v21  ;;  %v8634_v28 = vmul.f32 0.5, %v1405_v15  ;;  %v502_v15 = vld [vmem:[#allocation9 + $0x8] sm:$0x3] }
 0x32e   :  { %v6852_v11 = vpop.eup %6851  ;;  %v2374_v4 = vadd.f32 %v2373_v42, %v2126_v51  ;;  %v2127_v36 = vmul.f32 %v1967_v57, %v8567_v50  ;;  %v1976_v62 = vadd.f32 1.0, %v6850_v26 }
 0x32f   :  { %v6854_v63 = vpop.eup %6853  ;;  %v2361_v18 = vadd.f32 %v2360_v40, %v2125_v38  ;;  %v2134_v44 = vmul.f32 %v1974_v12, %v8569_v7  ;;  %v1975_v13 = vadd.f32 1.0, %v6852_v11  ;;  %v2582_v20 = vrot.slane %v2569_v31, %v7606_v52  ;;  %v6167_v11 = vld [vmem:[#allocation11 + $0x200] ss:$16 sps:$4 sm:$0xff]  }
 0x330   :  { %v6856_v34 = vpop.eup %6855  ;;  %v2387_v0 = vadd.f32 %v2386_v45, %v2127_v36  ;;  %v2136_v39 = vmul.f32 %v1976_v62, %v8574_v16  ;;  %v1977_v2 = vadd.f32 1.0, %v6854_v63  ;;  %6869 = vtanh.f32 %v8634_v28  ;;  %v6170_v36 = vld [vmem:[#allocation11 + $0x208] ss:$16 sps:$4 sm:$0xff]  }
 0x331   :  { %v6858_v42 = vpop.eup %6857  ;;  %v2349_v21 = vadd.f32 %v2348_v9, %v2134_v44  ;;  %v2135_v50 = vmul.f32 %v1975_v13, %v8576_v25  ;;  %v1984_v35 = vadd.f32 1.0, %v6856_v34  ;;  %v2590_v10 = vcombine.high %v2582_v20, %v2582_v20  ;;  %v6178_v13 = vld [vmem:[#allocation11 + $0x22c] ss:$16 sps:$4 sm:$0xff]  }
 0x332   :  { %v6860_v1 = vpop.eup %6859  ;;  %v2375_v40 = vadd.f32 %v2374_v4, %v2136_v39  ;;  %v2137_v7 = vmul.f32 %v1977_v2, %v8581_v47  ;;  %v1986_v51 = vadd.f32 1.0, %v6858_v42  ;;  %v2627_v57 = vpack.c.bf16 %v2582_v20, %v2582_v20  ;;  %v6175_v4 = vld [vmem:[#allocation11 + $0x224] ss:$16 sps:$4 sm:$0xff]  }
 0x333   :  { %v6862_v26 = vpop.eup %6861  ;;  %v2362_v45 = vadd.f32 %v2361_v18, %v2135_v50  ;;  %v2144_v16 = vmul.f32 %v1984_v35, %v8586_v55  ;;  %v1985_v38 = vadd.f32 1.0, %v6860_v1  ;;  %v2628_v12 = vpack.c.bf16 %v2590_v10, %v2590_v10  ;;  %v9030_v55 = vld [vmem:[#allocation25_spill] sm:$0xff]  ;;  %v6176_v35 = vld [vmem:[#allocation11 + $0x228] ss:$16 sps:$4 sm:$0xff]  }
 0x334   :  { %v6864_v9 = vpop.eup %6863  ;;  %v2388_v62 = vadd.f32 %v2387_v0, %v2137_v7  ;;  %v2146_v25 = vmul.f32 %v1986_v51, %v8594_v3  ;;  %v1987_v63 = vadd.f32 1.0, %v6862_v26  ;;  %v2575_v44 = vcombine.high %v2569_v31, %v2569_v31 }
 0x335   :  { %v6866_v47 = vpop.eup %6865  ;;  %v2350_v34 = vadd.f32 %v2349_v21, %v2144_v16  ;;  %v2145_v20 = vmul.f32 %v1985_v38, %v8599_v30  ;;  %v1994_v39 = vadd.f32 1.0, %v6864_v9  ;;  %4611 = vmatprep.mubr.bf16.mxu0 %v2628_v12  ;;  %4816 = vmatprep.mubr.bf16.mxu1 %v2628_v12  ;;  %v8646_v18 = vrot.slane %v502_v15, %v9030_v55  ;;  %v6173_v30 = vld [vmem:[#allocation11 + $0x220] ss:$16 sps:$4 sm:$0xff]   ;;  %v6181_v16 = vld [vmem:[#allocation11 + $0x244] ss:$16 sps:$4 sm:$0xff]  }
 0x336   :  { %v2376_v2 = vadd.f32 %v2375_v40, %v2146_v25  ;;  %v2147_v42 = vmul.f32 %v1987_v63, %v8601_v17  ;;  %v1996_v0 = vadd.f32 1.0, %v6866_v47  ;;  %4612 = vmatmul.mubr.bf16.vlgmr.msra.gmra.mrb[80].mxu0 %v2627_v57  ;;  %4817 = vmatmul.mubr.bf16.vlgmr.msra.gmra.mrb[96].mxu1 %v2627_v57  ;;  %v8650_v3 = vrot.slane %v2575_v44, %v7606_v52  ;;  %v6868_v31 = vpop.eup %6867  ;;  %v6182_v25 = vld [vmem:[#allocation11 + $0x248] ss:$16 sps:$4 sm:$0xff]  }
 0x337   :  { %v2363_v50 = vadd.f32 %v2362_v45, %v2145_v20  ;;  %v2154_v21 = vmul.f32 %v1994_v39, %v8605_v22  ;;  %4621 = vmatpush1.bf16.msra.mxu0 %v6167_v11  ;;  %4826 = vmatpush1.bf16.msra.mxu1 %v6170_v36  ;;  %v1442_v10 = vadd.f32 %v8256_v41, %v8646_v18  ;;  %v1995_v40 = vadd.f32 1.0, %v6868_v31  ;;  %v9031_v22 = vld [vmem:[#allocation26_spill] sm:$0xff] }
 0x338   :  { %v2389_v1 = vadd.f32 %v2388_v62, %v2147_v42  ;;  %v2156_v17 = vmul.f32 %v1996_v0, %v8621_v61  ;;  %v2591_v7 = vcombine.high %v8650_v3, %v8650_v3  ;;  %4622 = vmatprep.subr.bf16.mxu0 %v6175_v4  ;;  %4827 = vmatprep.subr.bf16.mxu1 %v6178_v13  ;;  %v6184_v41 = vld [vmem:[#allocation11 + $0x24c] ss:$16 sps:$4 sm:$0xff]   ;;  %v6187_v4 = vld [vmem:[#allocation11 + $0x264] ss:$16 sps:$4 sm:$0xff]  }
 0x339   :  { %v2351_v51 = vadd.f32 %v2350_v34, %v2154_v21  ;;  %v8658_v57 = vmul.f32 0.5, %v1442_v10  ;;  %v8661_v26 = vrot.slane %v502_v15, %v9031_v22  ;;  %v1446_v45 = vadd.f32 %v8271_v6, %v8646_v18  ;;  %v6179_v6 = vld [vmem:[#allocation11 + $0x240] ss:$16 sps:$4 sm:$0xff]   ;;  %v6190_v13 = vld [vmem:[#allocation11 + $0x26c] ss:$16 sps:$4 sm:$0xff]  }
 0x33a   :  { %v6870_v38 = vpop.eup %6869  ;;  %v2377_v12 = vadd.f32 %v2376_v2, %v2156_v17  ;;  %v2155_v61 = vmul.f32 %v1995_v40, %v8626_v37  ;;  %v2630_v11 = vpack.c.bf16 %v2591_v7, %v2591_v7  ;;  %v1452_v36 = vadd.f32 %v8302_v60, %v8646_v18  ;;  %v6193_v10 = vld [vmem:[#allocation11 + $0x284] ss:$16 sps:$4 sm:$0xff]  }
 0x33b   :  { %v2352_v9 = vrot.slane %v2351_v51, 4  ;;  %v1997_v62 = vadd.f32 1.0, %v6870_v38  ;;  %6871 = vtanh.f32 %v8658_v57  ;;  %4623 = vmatpush1.bf16.msra.mxu0 %v6173_v30  ;;  %4828 = vmatpush1.bf16.msra.mxu1 %v6176_v35  ;;  %v1444_v15 = vadd.f32 %v8263_v23, %v8661_v26 }
 0x33c   :  { %v2378_v63 = vrot.slane %v2377_v12, 4  ;;  %v2364_v44 = vadd.f32 %v2363_v50, %v2155_v61  ;;  %4652 = vmatprep.mubr.bf16.mxu0 %v2630_v11  ;;  %4857 = vmatprep.mubr.bf16.mxu1 %v2630_v11  ;;  %v8671_v37 = vmul.f32 0.5, %v1446_v45  ;;  %v1448_v60 = vadd.f32 %v8277_v14, %v8661_v26  ;;  %v6185_v14 = vld [vmem:[#allocation11 + $0x260] ss:$16 sps:$4 sm:$0xff]  }
 0x33d   :  { %v2353_v47 = vadd.f32 %v2352_v9, %v2351_v51  ;;  %v2157_v34 = vmul.f32 %v1997_v62, %v8634_v28  ;;  %v8676_v20 = vmul.f32 0.5, %v1444_v15  ;;  %4624 = vmatprep.subr.bf16.mxu0 %v6181_v16  ;;  %4829 = vmatprep.subr.bf16.mxu1 %v6184_v41  ;;  %v8678_v23 = vmul.f32 0.5, %v1452_v36  ;;  %v6188_v28 = vld [vmem:[#allocation11 + $0x268] ss:$16 sps:$4 sm:$0xff]   ;;  %v6202_v62 = vld [vmem:[#allocation11 + $0x2ac] ss:$16 sps:$4 sm:$0xff]  }
 0x33e   :  { %v2379_v39 = vadd.f32 %v2378_v63, %v2377_v12  ;;  %v2365_v2 = vrot.slane %v2364_v44, 4  ;;  %6873 = vtanh.f32 %v8671_v37  ;;  %v8681_v42 = vmul.f32 0.5, %v1448_v60  ;;  %v6194_v12 = vld [vmem:[#allocation11 + $0x288] ss:$16 sps:$4 sm:$0xff]  }
 0x33f   :  { %v2354_v0 = vrot.slane %v2353_v47, 2  ;;  %v2390_v31 = vadd.f32 %v2389_v1, %v2157_v34  ;;  %6875 = vtanh.f32 %v8676_v20  ;;  %4625 = vmatpush1.bf16.msra.mxu0 %v6179_v6  ;;  %4830 = vmatpush1.bf16.msra.mxu1 %v6182_v25  ;;  %v1454_v50 = vadd.f32 %v8309_v54, %v8661_v26  ;;  %v6196_v1 = vld [vmem:[#allocation11 + $0x28c] ss:$16 sps:$4 sm:$0xff]   ;;  %v6200_v34 = vld [vmem:[#allocation11 + $0x2a8] ss:$16 sps:$4 sm:$0xff]  }
 0x340   :  { %v2380_v21 = vrot.slane %v2379_v39, 2  ;;  %v2366_v30 = vadd.f32 %v2365_v2, %v2364_v44  ;;  %6877 = vtanh.f32 %v8681_v42  ;;  %4626 = vmatprep.subr.bf16.mxu0 %v6187_v4  ;;  %4831 = vmatprep.subr.bf16.mxu1 %v6190_v13  ;;  %v1456_v35 = vadd.f32 %v8314_v46, %v8646_v18  ;;  %v6191_v46 = vld [vmem:[#allocation11 + $0x280] ss:$16 sps:$4 sm:$0xff]  }
 0x341   :  { %v2355_v17 = vadd.f32 %v2354_v0, %v2353_v47  ;;  %v2391_v40 = vrot.slane %v2390_v31, 4  ;;  %6879 = vtanh.f32 %v8678_v23  ;;  %v8690_v7 = vmul.f32 0.5, %v1454_v50  ;;  %v6197_v47 = vld [vmem:[#allocation11 + $0x2a0] ss:$16 sps:$4 sm:$0xff]   ;;  %v6208_v50 = vld [vmem:[#allocation11 + $0x2cc] ss:$16 sps:$4 sm:$0xff]  }
 0x342   :  { %v2381_v51 = vadd.f32 %v2380_v21, %v2379_v39  ;;  %v2367_v45 = vrot.slane %v2366_v30, 2  ;;  %v8692_v54 = vmul.f32 0.5, %v1456_v35  ;;  %v1458_v16 = vadd.f32 %v8319_v48, %v8661_v26  ;;  %v6199_v48 = vld [vmem:[#allocation11 + $0x2a4] ss:$16 sps:$4 sm:$0xff]  }
 0x343   :  { %v2356_v41 = vrot.slane %v2355_v17, 1  ;;  %v2392_v38 = vadd.f32 %v2391_v40, %v2390_v31  ;;  %4627 = vmatpush1.bf16.msra.mxu0 %v6185_v14  ;;  %4832 = vmatpush1.bf16.msra.mxu1 %v6188_v28  ;;  %6881 = vtanh.f32 %v8690_v7  ;;  %v1462_v61 = vadd.f32 %v8344_v32, %v8646_v18  ;;  %v6205_v28 = vld [vmem:[#allocation11 + $0x2c4] ss:$16 sps:$4 sm:$0xff]  }
 0x344   :  { %v2382_v11 = vrot.slane %v2381_v51, 1  ;;  %v2368_v36 = vadd.f32 %v2367_v45, %v2366_v30  ;;  %6883 = vtanh.f32 %v8692_v54  ;;  %v8700_v9 = vmul.f32 0.5, %v1458_v16  ;;  %4628 = vmatprep.subr.bf16.mxu0 %v6193_v10  ;;  %4833 = vmatprep.subr.bf16.mxu1 %v6196_v1 }
 0x345   :  { %v6872_v15 = vpop.eup %6871  ;;  %v2357_v6 = vadd.f32 %v2356_v41, %v2355_v17  ;;  %v2393_v25 = vrot.slane %v2392_v38, 2  ;;  %v8702_v63 = vmul.f32 0.5, %v1462_v61  ;;  %v1464_v44 = vadd.f32 %v8348_v53, %v8661_v26  ;;  %v6203_v41 = vld [vmem:[#allocation11 + $0x2c0] ss:$16 sps:$4 sm:$0xff]  }
 0x346   :  { %v2383_v60 = vadd.f32 %v2382_v11, %v2381_v51  ;;  %v2369_v32 = vrot.slane %v2368_v36, 1  ;;  %v1848_v4 = vadd.f32 1.0, %v6872_v15  ;;  %6885 = vtanh.f32 %v8700_v9  ;;  %v6214_v11 = vld [vmem:[#allocation11 + $0x2ec] ss:$16 sps:$4 sm:$0xff]  }
 0x347   :  { %v2394_v13 = vadd.f32 %v2393_v25, %v2392_v38  ;;  %4629 = vmatpush1.bf16.msra.mxu0 %v6191_v46  ;;  %4834 = vmatpush1.bf16.msra.mxu1 %v6194_v12  ;;  %6887 = vtanh.f32 %v8702_v63  ;;  %v8708_v39 = vmul.f32 0.5, %v1464_v44  ;;  %v1466_v2 = vadd.f32 %v8354_v19, %v8646_v18  ;;  %v6206_v38 = vld [vmem:[#allocation11 + $0x2c8] ss:$16 sps:$4 sm:$0xff]  }
 0x348   :  { %v6874_v0 = vpop.eup %6873  ;;  %v2370_v31 = vadd.f32 %v2369_v32, %v2368_v36  ;;  %v2008_v53 = vmul.f32 %v1848_v4, %v8658_v57  ;;  %4630 = vmatprep.subr.bf16.mxu0 %v6199_v48  ;;  %4835 = vmatprep.subr.bf16.mxu1 %v6202_v62  ;;  %v1468_v14 = vadd.f32 %v8360_v59, %v8661_v26  ;;  %v9033_v4 = vld [vmem:[#allocation36_spill] sm:$0xff] }
 0x349   :  { %v6876_v21 = vpop.eup %6875  ;;  %v2395_v30 = vrot.slane %v2394_v13, 1  ;;  %v1858_v35 = vadd.f32 1.0, %v6874_v0  ;;  %6889 = vtanh.f32 %v8708_v39  ;;  %v8716_v10 = vmul.f32 0.5, %v1466_v2 }
 0x34a   :  { %v6878_v1 = vpop.eup %6877  ;;  %v2502_v19 = vcombine.low %v2357_v6, %v2370_v31  ;;  %v1849_v17 = vadd.f32 1.0, %v6876_v21  ;;  %v8718_v40 = vmul.f32 0.5, %v1468_v14  ;;  %v1472_v57 = vadd.f32 %v8382_v56, %v8646_v18  ;;  %v6211_v56 = vld [vmem:[#allocation11 + $0x2e4] ss:$16 sps:$4 sm:$0xff]  }
 0x34b   :  { %v6880_v51 = vpop.eup %6879  ;;  %v2396_v45 = vadd.f32 %v2395_v30, %v2394_v13  ;;  %v2018_v59 = vmul.f32 %v1858_v35, %v8671_v37  ;;  %v1859_v16 = vadd.f32 1.0, %v6878_v1  ;;  %4631 = vmatpush1.bf16.msra.mxu0 %v6197_v47  ;;  %4836 = vmatpush1.bf16.msra.mxu1 %v6200_v34  ;;  %6891 = vtanh.f32 %v8716_v10 }
 0x34c   :  { %v2510_v46 = vrot.slane %v2502_v19, %v7606_v52  ;;  %v2009_v12 = vmul.f32 %v1849_v17, %v8676_v20  ;;  %v1868_v61 = vadd.f32 1.0, %v6880_v51  ;;  %6893 = vtanh.f32 %v8718_v40  ;;  %4632 = vmatprep.subr.bf16.mxu0 %v6205_v28  ;;  %4837 = vmatprep.subr.bf16.mxu1 %v6208_v50  ;;  %v9032_v20 = vld [vmem:[#allocation31_spill] sm:$0xff]  ;;  %v6220_v50 = vld [vmem:[#allocation11 + $0x30c] ss:$16 sps:$4 sm:$0xff]   ;;  %v9034_v51 = vld [vmem:[#allocation37_spill] sm:$0xff] }
 0x34d   :  { %v6882_v36 = vpop.eup %6881  ;;  %v2503_v37 = vcombine.low %v2383_v60, %v2396_v45  ;;  %v2267_v48 = vadd.f32 %v2018_v59, %v2008_v53  ;;  %v2019_v62 = vmul.f32 %v1859_v16, %v8681_v42  ;;  %v8728_v15 = vmul.f32 0.5, %v1472_v57  ;;  %v6209_v60 = vld [vmem:[#allocation11 + $0x2e0] ss:$16 sps:$4 sm:$0xff]   ;;  %v6212_v42 = vld [vmem:[#allocation11 + $0x2e8] ss:$16 sps:$4 sm:$0xff]  }
 0x34e   :  { %v6884_v6 = vpop.eup %6883  ;;  %v2028_v25 = vmul.f32 %v1868_v61, %v8678_v23  ;;  %v1869_v44 = vadd.f32 1.0, %v6882_v36  ;;  %v1474_v32 = vadd.f32 %v9032_v20, %v8661_v26  ;;  %v1476_v13 = vadd.f32 %v9033_v4, %v8646_v18  ;;  %v6217_v28 = vld [vmem:[#allocation11 + $0x304] ss:$16 sps:$4 sm:$0xff]  }
 0x34f   :  { %v2517_v47 = vrot.slane %v2503_v37, %v7606_v52  ;;  %v2280_v34 = vadd.f32 %v2019_v62, %v2009_v12  ;;  %v1878_v2 = vadd.f32 1.0, %v6884_v6  ;;  %4633 = vmatpush1.bf16.msra.mxu0 %v6203_v41  ;;  %4838 = vmatpush1.bf16.msra.mxu1 %v6206_v38  ;;  %6895 = vtanh.f32 %v8728_v15  ;;  %v9036_v62 = vld [vmem:[#allocation38_spill] sm:$0xff] }
 0x350   :  { %v6886_v0 = vpop.eup %6885  ;;  %v2268_v31 = vadd.f32 %v2267_v48, %v2028_v25  ;;  %v2029_v23 = vmul.f32 %v1869_v44, %v8690_v7  ;;  %4634 = vmatprep.subr.bf16.mxu0 %v6211_v56  ;;  %4839 = vmatprep.subr.bf16.mxu1 %v6214_v11  ;;  %v8738_v53 = vmul.f32 0.5, %v1474_v32  ;;  %v8740_v14 = vmul.f32 0.5, %v1476_v13  ;;  %v6215_v7 = vld [vmem:[#allocation11 + $0x300] ss:$16 sps:$4 sm:$0xff]   ;;  %v6226_v56 = vld [vmem:[#allocation11 + $0x32c] ss:$16 sps:$4 sm:$0xff]  }
 0x351   :  { %v6888_v21 = vpop.eup %6887  ;;  %v2518_v30 = vcombine.low %v2510_v46, %v2517_v47  ;;  %v2038_v35 = vmul.f32 %v1878_v2, %v8692_v54  ;;  %v1879_v1 = vadd.f32 1.0, %v6886_v0  ;;  %v1478_v19 = vadd.f32 %v8403_v5, %v8661_v26  ;;  %v6218_v54 = vld [vmem:[#allocation11 + $0x308] ss:$16 sps:$4 sm:$0xff]   ;;  %v6223_v46 = vld [vmem:[#allocation11 + $0x324] ss:$16 sps:$4 sm:$0xff]  }
 0x352   :  { %v2281_v17 = vadd.f32 %v2280_v34, %v2029_v23  ;;  %v1888_v57 = vadd.f32 1.0, %v6888_v21  ;;  %6897 = vtanh.f32 %v8738_v53  ;;  %v1482_v45 = vadd.f32 %v9034_v51, %v8646_v18 }
 0x353   :  { %v6890_v59 = vpop.eup %6889  ;;  %v2542_v16 = vrot.slane %v2518_v30, 7  ;;  %v2269_v41 = vadd.f32 %v2268_v31, %v2038_v35  ;;  %v2039_v38 = vmul.f32 %v1879_v1, %v8700_v9  ;;  %4635 = vmatpush1.bf16.msra.mxu0 %v6209_v60  ;;  %4840 = vmatpush1.bf16.msra.mxu1 %v6212_v42  ;;  %6899 = vtanh.f32 %v8740_v14  ;;  %v6232_v31 = vld [vmem:[#allocation11 + $0x34c] ss:$16 sps:$4 sm:$0xff]  }
 0x354   :  { %v2048_v5 = vmul.f32 %v1888_v57, %v8702_v63  ;;  %v1889_v12 = vadd.f32 1.0, %v6890_v59  ;;  %v8751_v61 = vmul.f32 0.5, %v1478_v19  ;;  %4636 = vmatprep.subr.bf16.mxu0 %v6217_v28  ;;  %4841 = vmatprep.subr.bf16.mxu1 %v6220_v50  ;;  %v8753_v11 = vmul.f32 0.5, %v1482_v45  ;;  %v9037_v63 = vld [vmem:[#allocation39_spill] sm:$0xff]  ;;  %v9038_v35 = vld [vmem:[#allocation40_spill] sm:$0xff]  ;;  %v9041_v45 = vld [vmem:[#allocation42_spill] sm:$0xff] }
 0x355   :  { %v6892_v36 = vpop.eup %6891  ;;  %v9035_v9 = vcombine.low %v8524_v49, %v8533_v27  ;;  %v2282_v48 = vadd.f32 %v2281_v17, %v2039_v38  ;;  %v1484_v6 = vadd.f32 %v9036_v62, %v8661_v26  ;;  %v1486_v25 = vadd.f32 %v9037_v63, %v8646_v18  ;;  %v6221_v49 = vld [vmem:[#allocation11 + $0x320] ss:$16 sps:$4 sm:$0xff]   ;;  %v6224_v27 = vld [vmem:[#allocation11 + $0x328] ss:$16 sps:$4 sm:$0xff]  }
 0x356   :  { %v6894_v44 = vpop.eup %6893  ;;  %v2270_v32 = vadd.f32 %v2269_v41, %v2048_v5  ;;  %v2049_v4 = vmul.f32 %v1889_v12, %v8708_v39  ;;  %v1898_v13 = vadd.f32 1.0, %v6892_v36  ;;  %6901 = vtanh.f32 %v8751_v61  ;;  %v6229_v39 = vld [vmem:[#allocation11 + $0x344] ss:$16 sps:$4 sm:$0xff]   ;;  %v6227_v57 = vld [vmem:[#allocation11 + $0x340] ss:$16 sps:$4 sm:$0xff]   ;;  %v9043_v62 = vld [vmem:[#allocation44_spill] sm:$0xff] }
 0x357   :  { %v2543_v37 = vsel %vm2532_vm3, %v2542_v16, %v9035_v9  ;;  %v1899_v34 = vadd.f32 1.0, %v6894_v44  ;;  %4637 = vmatpush1.bf16.msra.mxu0 %v6215_v7  ;;  %4842 = vmatpush1.bf16.msra.mxu1 %v6218_v54  ;;  %v8767_v2 = vmul.f32 0.5, %v1484_v6  ;;  %6903 = vtanh.f32 %v8753_v11  ;;  %v6230_v7 = vld [vmem:[#allocation11 + $0x348] ss:$16 sps:$4 sm:$0xff]   ;;  %v6235_v54 = vld [vmem:[#allocation11 + $0x364] ss:$16 sps:$4 sm:$0xff]  }
 0x358   :  { %v2544_v20 = vsel %vm2534_vm4, %v2542_v16, %v2543_v37  ;;  %v2283_v42 = vadd.f32 %v2282_v48, %v2049_v4  ;;  %v2058_v0 = vmul.f32 %v1898_v13, %v8716_v10  ;;  %4638 = vmatprep.subr.bf16.mxu0 %v6223_v46  ;;  %4843 = vmatprep.subr.bf16.mxu1 %v6226_v56  ;;  %v8776_v50 = vmul.f32 0.5, %v1486_v25  ;;  %v9039_v10 = vld [vmem:[#allocation27_spill] sm:$0xff]  ;;  %v6238_v46 = vld [vmem:[#allocation11 + $0x36c] ss:$16 sps:$4 sm:$0xff]  }
 0x359   :  { %v2545_v47 = vsel %vm2536_vm5, %v2542_v16, %v2544_v20  ;;  %v6896_v23 = vpop.eup %6895  ;;  %v2059_v28 = vmul.f32 %v1899_v34, %v8718_v40  ;;  %6905 = vtanh.f32 %v8767_v2  ;;  %v1488_v1 = vadd.f32 %v9038_v35, %v8661_v26  ;;  %v9040_v40 = vld [vmem:[#allocation41_spill] sm:$0xff]  ;;  %v9042_v12 = vld [vmem:[#allocation43_spill] sm:$0xff] }
 0x35a   :  { %v8770_v60 = vsel %vm2538_vm6, %v2542_v16, %v2545_v47  ;;  %v2271_v21 = vadd.f32 %v2270_v32, %v2058_v0  ;;  %v1908_v30 = vadd.f32 1.0, %v6896_v23  ;;  %v1492_v19 = vadd.f32 %v9039_v10, %v8646_v18  ;;  %v6233_v20 = vld [vmem:[#allocation11 + $0x360] ss:$16 sps:$4 sm:$0xff]   ;;  %v6236_v32 = vld [vmem:[#allocation11 + $0x368] ss:$16 sps:$4 sm:$0xff]  }
 0x35b   :  { %v2284_v17 = vadd.f32 %v2283_v42, %v2059_v28  ;;  %4639 = vmatpush1.bf16.msra.mxu0 %v6221_v49  ;;  %4844 = vmatpush1.bf16.msra.mxu1 %v6224_v27  ;;  %6907 = vtanh.f32 %v8776_v50  ;;  %v1494_v51 = vadd.f32 %v9040_v40, %v8661_v26  ;;  %v1496_v59 = vadd.f32 %v9041_v45, %v8646_v18  ;;  %v9044_v13 = vld [vmem:[#allocation51_spill] sm:$0xff]  ;;  %v6244_v27 = vld [vmem:[#allocation11 + $0x38c] ss:$16 sps:$4 sm:$0xff]  }
 0x35c   :  { %v6898_v16 = vpop.eup %6897  ;;  %v2068_v41 = vmul.f32 %v1908_v30, %v8728_v15  ;;  %v8788_v38 = vmul.f32 0.5, %v1488_v1  ;;  %4640 = vmatprep.subr.bf16.mxu0 %v6229_v39  ;;  %4845 = vmatprep.subr.bf16.mxu1 %v6232_v31  ;;  %v8790_v5 = vmul.f32 0.5, %v1492_v19  ;;  %v1498_v56 = vadd.f32 %v9042_v12, %v8661_v26  ;;  %v6241_v49 = vld [vmem:[#allocation11 + $0x384] ss:$16 sps:$4 sm:$0xff]   ;;  %v6242_v1 = vld [vmem:[#allocation11 + $0x388] ss:$16 sps:$4 sm:$0xff]  }
 0x35d   :  { %v6900_v36 = vpop.eup %6899  ;;  %v1909_v9 = vadd.f32 1.0, %v6898_v16  ;;  %v8794_v37 = vmul.f32 0.5, %v1494_v51  ;;  %v8796_v48 = vmul.f32 0.5, %v1496_v59  ;;  %v1502_v15 = vadd.f32 %v9043_v62, %v8646_v18  ;;  %v6248_v12 = vld [vmem:[#allocation11 + $0x3a8] ss:$16 sps:$4 sm:$0xff]  }
 0x35e   :  { %v2272_v6 = vadd.f32 %v2271_v21, %v2068_v41  ;;  %v1918_v63 = vadd.f32 1.0, %v6900_v36  ;;  %6909 = vtanh.f32 %v8788_v38  ;;  %v8801_v25 = vmul.f32 0.5, %v1498_v56 }
 0x35f   :  { %v2069_v44 = vmul.f32 %v1909_v9, %v8738_v53  ;;  %4641 = vmatpush1.bf16.msra.mxu0 %v6227_v57  ;;  %4846 = vmatpush1.bf16.msra.mxu1 %v6230_v7  ;;  %6911 = vtanh.f32 %v8790_v5  ;;  %v8805_v4 = vmul.f32 0.5, %v1502_v15  ;;  %v1504_v47 = vadd.f32 %v9044_v13, %v8661_v26  ;;  %v6250_v57 = vld [vmem:[#allocation11 + $0x3ac] ss:$16 sps:$4 sm:$0xff]  }
 0x360   :  { %v2078_v34 = vmul.f32 %v1918_v63, %v8740_v14  ;;  %4642 = vmatprep.subr.bf16.mxu0 %v6235_v54  ;;  %4847 = vmatprep.subr.bf16.mxu1 %v6238_v46  ;;  %6913 = vtanh.f32 %v8794_v37  ;;  %v1506_v53 = vadd.f32 %v8491_v24, %v8646_v18  ;;  %v1508_v42 = vadd.f32 %v8494_v33, %v8661_v26  ;;  %v6902_v0 = vpop.eup %6901  ;;  %v6239_v33 = vld [vmem:[#allocation11 + $0x380] ss:$16 sps:$4 sm:$0xff]   ;;  %v6256_v15 = vld [vmem:[#allocation11 + $0x3cc] ss:$16 sps:$4 sm:$0xff]  }
 0x361   :  { %v2285_v39 = vadd.f32 %v2284_v17, %v2069_v44  ;;  %6915 = vtanh.f32 %v8796_v48  ;;  %v8816_v31 = vmul.f32 0.5, %v1504_v47  ;;  %v1512_v14 = vadd.f32 %v8513_v43, %v8646_v18  ;;  %v6904_v23 = vpop.eup %6903  ;;  %v6247_v17 = vld [vmem:[#allocation11 + $0x3a4] ss:$16 sps:$4 sm:$0xff]   ;;  %v6245_v46 = vld [vmem:[#allocation11 + $0x3a0] ss:$16 sps:$4 sm:$0xff]  }
 0x362   :  { %v2273_v28 = vadd.f32 %v2272_v6, %v2078_v34  ;;  %v1919_v21 = vadd.f32 1.0, %v6902_v0  ;;  %6917 = vtanh.f32 %v8801_v25  ;;  %v8821_v30 = vmul.f32 0.5, %v1506_v53  ;;  %v6254_v53 = vld [vmem:[#allocation11 + $0x3c8] ss:$16 sps:$4 sm:$0xff]  }
 0x363   :  { %v6906_v24 = vpop.eup %6905  ;;  %v1928_v35 = vadd.f32 1.0, %v6904_v23  ;;  %4643 = vmatpush1.bf16.msra.mxu0 %v6233_v20  ;;  %4848 = vmatpush1.bf16.msra.mxu1 %v6236_v32  ;;  %6919 = vtanh.f32 %v8805_v4  ;;  %v8824_v10 = vmul.f32 0.5, %v1508_v42  ;;  %v8828_v7 = vmul.f32 0.5, %v1512_v14  ;;  %v6259_v42 = vld [vmem:[#allocation11 + $0x3e4] ss:$16 sps:$4 sm:$0xff]  }
 0x364   :  { %v2274_v19 = vrot.slane %v2273_v28, 4  ;;  %v2079_v43 = vmul.f32 %v1919_v21, %v8751_v61  ;;  %4644 = vmatprep.subr.bf16.mxu0 %v6241_v49  ;;  %4849 = vmatprep.subr.bf16.mxu1 %v6244_v27  ;;  %6921 = vtanh.f32 %v8816_v31  ;;  %v1929_v51 = vadd.f32 1.0, %v6906_v24  ;;  %v6262_v21 = vld [vmem:[#allocation11 + $0x3ec] ss:$16 sps:$4 sm:$0xff]  }
 0x365   :  { %v6908_v40 = vpop.eup %6907  ;;  %6923 = vtanh.f32 %v8821_v30  ;;  %v1514_v45 = vadd.f32 %v8521_v8, %v8661_v26  ;;  %v1516_v59 = vadd.f32 %v8530_v58, %v8646_v18  ;;  %v2088_v41 = vmul.f32 %v1928_v35, %v8753_v11  ;;  %v6253_v11 = vld [vmem:[#allocation11 + $0x3c4] ss:$16 sps:$4 sm:$0xff]  }
 0x366   :  { %v2275_v16 = vadd.f32 %v2274_v19, %v2273_v28  ;;  %v2286_v61 = vadd.f32 %v2285_v39, %v2079_v43  ;;  %v1938_v54 = vadd.f32 1.0, %v6908_v40  ;;  %6925 = vtanh.f32 %v8824_v10 }
 0x367   :  { %4645 = vmatpush1.bf16.msra.mxu0 %v6239_v33  ;;  %4850 = vmatpush1.bf16.msra.mxu1 %v6242_v1  ;;  %v8837_v56 = vmul.f32 0.5, %v1514_v45  ;;  %v8839_v36 = vmul.f32 0.5, %v1516_v59  ;;  %v1518_v8 = vadd.f32 %v8538_v29, %v8661_v26  ;;  %6927 = vtanh.f32 %v8828_v7  ;;  %v6257_v59 = vld [vmem:[#allocation11 + $0x3e0] ss:$16 sps:$4 sm:$0xff]  }
 0x368   :  { %v6910_v9 = vpop.eup %6909  ;;  %v2276_v58 = vrot.slane %v2275_v16, 2  ;;  %v2287_v18 = vrot.slane %v2286_v61, 4  ;;  %v2098_v62 = vmul.f32 %v1938_v54, %v8776_v50  ;;  %4646 = vmatprep.subr.bf16.mxu0 %v6247_v17  ;;  %4851 = vmatprep.subr.bf16.mxu1 %v6250_v57  ;;  %v2089_v63 = vmul.f32 %v1929_v51, %v8767_v2  ;;  %v6251_v50 = vld [vmem:[#allocation11 + $0x3c0] ss:$16 sps:$4 sm:$0xff]   ;;  %v6265_v54 = vld [vmem:[#allocation11 + $0x404] ss:$16 sps:$4 sm:$0xff]  }
 0x369   :  { %v6912_v6 = vpop.eup %6911  ;;  %v1939_v44 = vadd.f32 1.0, %v6910_v9  ;;  %6929 = vtanh.f32 %v8837_v56  ;;  %v8847_v20 = vmul.f32 0.5, %v1518_v8  ;;  %v8852_v2 = vmul.f32 0.015625, %v8770_v60 }
 0x36a   :  { %v6914_v29 = vpop.eup %6913  ;;  %v2277_v26 = vadd.f32 %v2276_v58, %v2275_v16  ;;  %v2288_v32 = vadd.f32 %v2287_v18, %v2286_v61  ;;  %v2397_v13 = vadd.f32 %v2098_v62, %v2088_v41  ;;  %v1948_v47 = vadd.f32 1.0, %v6912_v6 }
 0x36b   :  { %v6916_v34 = vpop.eup %6915  ;;  %v2099_v49 = vmul.f32 %v1939_v44, %v8788_v38  ;;  %v1949_v27 = vadd.f32 1.0, %v6914_v29  ;;  %4647 = vmatpush1.bf16.msra.mxu0 %v6245_v46  ;;  %4852 = vmatpush1.bf16.msra.mxu1 %v6248_v12  ;;  %6931 = vtanh.f32 %v8839_v36  ;;  %v6268_v46 = vld [vmem:[#allocation11 + $0x40c] ss:$16 sps:$4 sm:$0xff]  }
 0x36c   :  { %v6918_v0 = vpop.eup %6917  ;;  %v2278_v39 = vrot.slane %v2277_v26, 1  ;;  %v2289_v14 = vrot.slane %v2288_v32, 2  ;;  %v2108_v23 = vmul.f32 %v1948_v47, %v8790_v5  ;;  %v1958_v28 = vadd.f32 1.0, %v6916_v34  ;;  %4648 = vmatprep.subr.bf16.mxu0 %v6253_v11  ;;  %4853 = vmatprep.subr.bf16.mxu1 %v6256_v15 }
 0x36d   :  { %v6920_v38 = vpop.eup %6919  ;;  %v2410_v24 = vadd.f32 %v2099_v49, %v2089_v63  ;;  %v2109_v35 = vmul.f32 %v1949_v27, %v8794_v37  ;;  %v1959_v33 = vadd.f32 1.0, %v6918_v0  ;;  %6933 = vtanh.f32 %v8847_v20  ;;  %v6260_v37 = vld [vmem:[#allocation11 + $0x3e8] ss:$16 sps:$4 sm:$0xff]   ;;  %v6271_v27 = vld [vmem:[#allocation11 + $0x424] ss:$16 sps:$4 sm:$0xff]  }
 0x36e   :  { %v6922_v1 = vpop.eup %6921  ;;  %v8857_v19 = vadd.f32 %v2278_v39, %v2277_v26  ;;  %v2290_v60 = vadd.f32 %v2289_v14, %v2288_v32  ;;  %v2398_v43 = vadd.f32 %v2397_v13, %v2108_v23  ;;  %v2118_v17 = vmul.f32 %v1958_v28, %v8796_v48  ;;  %v6263_v26 = vld [vmem:[#allocation11 + $0x400] ss:$16 sps:$4 sm:$0xff]   ;;  %v6266_v13 = vld [vmem:[#allocation11 + $0x408] ss:$16 sps:$4 sm:$0xff]  }
 0x36f   :  { %v6924_v57 = vpop.eup %6923  ;;  %v2411_v5 = vadd.f32 %v2410_v24, %v2109_v35  ;;  %v2119_v40 = vmul.f32 %v1959_v33, %v8801_v25  ;;  %v1968_v51 = vadd.f32 1.0, %v6920_v38  ;;  %v1969_v45 = vadd.f32 1.0, %v6922_v1  ;;  %4649 = vmatpush1.bf16.msra.mxu0 %v6251_v50  ;;  %4854 = vmatpush1.bf16.msra.mxu1 %v6254_v53  ;;  %v6274_v53 = vld [vmem:[#allocation11 + $0x42c] ss:$16 sps:$4 sm:$0xff]   ;;  %v6277_v38 = vld [vmem:[#allocation11 + $0x444] ss:$16 sps:$4 sm:$0xff]  }
 0x370   :  { %v2291_v16 = vrot.slane %v2290_v60, 1  ;;  %v2399_v61 = vadd.f32 %v2398_v43, %v2118_v17  ;;  %v1978_v41 = vadd.f32 1.0, %v6924_v57  ;;  %4650 = vmatprep.subr.bf16.mxu0 %v6259_v42  ;;  %4855 = vmatprep.subr.bf16.mxu1 %v6262_v21  ;;  %v8863_v48 = vrot.slane %v8852_v2, %v7606_v52  ;;  %v6926_v12 = vpop.eup %6925  ;;  %v6280_v24 = vld [vmem:[#allocation11 + $0x44c] ss:$16 sps:$4 sm:$0xff]   ;;  %v6275_v33 = vld [vmem:[#allocation11 + $0x440] ss:$16 sps:$4 sm:$0xff]  }
 0x371   :  { %v2412_v8 = vadd.f32 %v2411_v5, %v2119_v40  ;;  %v2128_v25 = vmul.f32 %v1968_v51, %v8805_v4  ;;  %v2129_v9 = vmul.f32 %v1969_v45, %v8816_v31  ;;  %v6928_v58 = vpop.eup %6927  ;;  %v1979_v11 = vadd.f32 1.0, %v6926_v12  ;;  %v6278_v43 = vld [vmem:[#allocation11 + $0x448] ss:$16 sps:$4 sm:$0xff]   ;;  %v6283_v17 = vld [vmem:[#allocation11 + $0x464] ss:$16 sps:$4 sm:$0xff]  }
 0x372   :  { %v8867_v18 = vadd.f32 %v2291_v16, %v2290_v60  ;;  %v2138_v62 = vmul.f32 %v1978_v41, %v8821_v30  ;;  %v2607_v15 = vcombine.high %v8863_v48, %v8863_v48  ;;  %v1988_v29 = vadd.f32 1.0, %v6928_v58  ;;  %v6281_v40 = vld [vmem:[#allocation11 + $0x460] ss:$16 sps:$4 sm:$0xff]   ;;  %v6290_v12 = vld [vmem:[#allocation11 + $0x488] ss:$16 sps:$4 sm:$0xff]  }
 0x373   :  { %v6930_v6 = vpop.eup %6929  ;;  %v2400_v63 = vadd.f32 %v2399_v61, %v2128_v25  ;;  %v2413_v44 = vadd.f32 %v2412_v8, %v2129_v9  ;;  %4651 = vmatpush1.bf16.msra.mxu0 %v6257_v59  ;;  %4856 = vmatpush1.bf16.msra.mxu1 %v6260_v37  ;;  %v2139_v31 = vmul.f32 %v1979_v11, %v8824_v10  ;;  %v6284_v59 = vld [vmem:[#allocation11 + $0x468] ss:$16 sps:$4 sm:$0xff]   ;;  %v6292_v37 = vld [vmem:[#allocation11 + $0x48c] ss:$16 sps:$4 sm:$0xff]   ;;  %v6287_v41 = vld [vmem:[#allocation11 + $0x480] ss:$16 sps:$4 sm:$0xff]  }
 0x374   :  { %v2477_v4 = vcombine.low %v8857_v19, %v8867_v18  ;;  %v1989_v32 = vadd.f32 1.0, %v6930_v6  ;;  %v2629_v30 = vpack.c.bf16 %v8650_v3, %v8650_v3  ;;  %4661 = vmatprep.subr.bf16.mxu0 %v6265_v54  ;;  %4866 = vmatprep.subr.bf16.mxu1 %v6268_v46  ;;  %v2148_v34 = vmul.f32 %v1988_v29, %v8828_v7  ;;  %v6269_v3 = vld [vmem:[#allocation11 + $0x420] ss:$16 sps:$4 sm:$0xff]   ;;  %v6272_v7 = vld [vmem:[#allocation11 + $0x428] ss:$16 sps:$4 sm:$0xff]  }
 0x375   :  { %v6932_v47 = vpop.eup %6931  ;;  %v2401_v50 = vadd.f32 %v2400_v63, %v2138_v62  ;;  %v2632_v49 = vpack.c.bf16 %v2607_v15, %v2607_v15  ;;  %v2414_v42 = vadd.f32 %v2413_v44, %v2139_v31  ;;  %v6295_v8 = vld [vmem:[#allocation11 + $0x4a4] ss:$16 sps:$4 sm:$0xff]   ;;  %v6298_v25 = vld [vmem:[#allocation11 + $0x4ac] ss:$16 sps:$4 sm:$0xff]   ;;  %v6293_v62 = vld [vmem:[#allocation11 + $0x4a0] ss:$16 sps:$4 sm:$0xff]  }
 0x376   :  { %v2149_v0 = vmul.f32 %v1989_v32, %v8837_v56  ;;  %v1998_v39 = vadd.f32 1.0, %v6932_v47  ;;  %4653 = vmatmul.mubr.bf16.vlgmr.msra.gmra.mrb[80].mxu0 %v2629_v30  ;;  %4858 = vmatmul.mubr.bf16.vlgmr.msra.gmra.mrb[96].mxu1 %v2629_v30  ;;  %v6296_v15 = vld [vmem:[#allocation11 + $0x4a8] ss:$16 sps:$4 sm:$0xff]   ;;  %v6301_v6 = vld [vmem:[#allocation11 + $0x4c4] ss:$16 sps:$4 sm:$0xff]  }
 0x377   :  { %v6934_v10 = vpop.eup %6933  ;;  %v2402_v14 = vadd.f32 %v2401_v50, %v2148_v34  ;;  %4662 = vmatpush1.bf16.msra.mxu0 %v6263_v26  ;;  %4693 = vmatprep.mubr.bf16.mxu0 %v2632_v49  ;;  %v6304_v63 = vld [vmem:[#allocation11 + $0x4cc] ss:$16 sps:$4 sm:$0xff]   ;;  %v6299_v29 = vld [vmem:[#allocation11 + $0x4c0] ss:$16 sps:$4 sm:$0xff]   ;;  %v6302_v31 = vld [vmem:[#allocation11 + $0x4c8] ss:$16 sps:$4 sm:$0xff]  }
 0x378   :  { %v2415_v23 = vadd.f32 %v2414_v42, %v2149_v0  ;;  %v2158_v28 = vmul.f32 %v1998_v39, %v8839_v36  ;;  %v1999_v21 = vadd.f32 1.0, %v6934_v10  ;;  %4867 = vmatpush1.bf16.msra.mxu1 %v6266_v13  ;;  %4898 = vmatprep.mubr.bf16.mxu1 %v2632_v49  ;;  %v6286_v36 = vld [vmem:[#allocation11 + $0x46c] ss:$16 sps:$4 sm:$0xff]   ;;  %v6307_v32 = vld [vmem:[#allocation11 + $0x4e4] ss:$16 sps:$4 sm:$0xff]   ;;  %v2484_v13 = vrot.slane %v2477_v4, %v7606_v52 }
 0x379   :  { %4663 = vmatprep.subr.bf16.mxu0 %v6271_v27  ;;  %4868 = vmatprep.subr.bf16.mxu1 %v6274_v53  ;;  %v6310_v30 = vld [vmem:[#allocation11 + $0x4ec] ss:$16 sps:$4 sm:$0xff]   ;;  %v6305_v50 = vld [vmem:[#allocation11 + $0x4e0] ss:$16 sps:$4 sm:$0xff]   ;;  %v6308_v49 = vld [vmem:[#allocation11 + $0x4e8] ss:$16 sps:$4 sm:$0xff]  }
 0x37a   :  { %v2403_v56 = vadd.f32 %v2402_v14, %v2158_v28  ;;  %v2159_v35 = vmul.f32 %v1999_v21, %v8847_v20  ;;  %v6289_v20 = vld [vmem:[#allocation11 + $0x484] ss:$16 sps:$4 sm:$0xff]   ;;  %v2162_v53 = vld [vmem:[#allocation2 + $0x10] sm:$0xf]  ;;  %v6316_v0 = vld [vmem:[#allocation11 + $0x50c] ss:$16 sps:$4 sm:$0xff]  }
 0x37b   :  { %4664 = vmatpush1.bf16.msra.mxu0 %v6269_v3  ;;  %v6313_v27 = vld [vmem:[#allocation11 + $0x504] ss:$16 sps:$4 sm:$0xff]   ;;  %v6311_v19 = vld [vmem:[#allocation11 + $0x500] ss:$16 sps:$4 sm:$0xff]   ;;  %v6314_v4 = vld [vmem:[#allocation11 + $0x508] ss:$16 sps:$4 sm:$0xff]  }
 0x37c   :  { %v2404_v1 = vrot.slane %v2403_v56, 4  ;;  %v2416_v60 = vadd.f32 %v2415_v23, %v2159_v35  ;;  %4869 = vmatpush1.bf16.msra.mxu1 %v6272_v7  ;;  %4665 = vmatprep.subr.bf16.mxu0 %v6277_v38  ;;  %v6319_v14 = vld [vmem:[#allocation11 + $0x524] ss:$16 sps:$4 sm:$0xff]   ;;  %v6322_v3 = vld [vmem:[#allocation11 + $0x52c] ss:$16 sps:$4 sm:$0xff]  }
 0x37d   :  { %4870 = vmatprep.subr.bf16.mxu1 %v6280_v24  ;;  %v6317_v23 = vld [vmem:[#allocation11 + $0x520] ss:$16 sps:$4 sm:$0xff]   ;;  %v6320_v28 = vld [vmem:[#allocation11 + $0x528] ss:$16 sps:$4 sm:$0xff]   ;;  %v6325_v21 = vld [vmem:[#allocation11 + $0x544] ss:$16 sps:$4 sm:$0xff]  }
 0x37e   :  { %v2405_v57 = vadd.f32 %v2404_v1, %v2403_v56  ;;  %v2417_v5 = vrot.slane %v2416_v60, 4  ;;  %v6328_v7 = vld [vmem:[#allocation11 + $0x54c] ss:$16 sps:$4 sm:$0xff]   ;;  %v6323_v38 = vld [vmem:[#allocation11 + $0x540] ss:$16 sps:$4 sm:$0xff]  }
 0x37f   :  { %4666 = vmatpush1.bf16.msra.mxu0 %v6275_v33  ;;  %v6326_v24 = vld [vmem:[#allocation11 + $0x548] ss:$16 sps:$4 sm:$0xff]   ;;  %v6331_v56 = vld [vmem:[#allocation11 + $0x564] ss:$16 sps:$4 sm:$0xff]   ;;  %v6334_v35 = vld [vmem:[#allocation11 + $0x56c] ss:$16 sps:$4 sm:$0xff]  }
 0x380   :  { %v2406_v51 = vrot.slane %v2405_v57, 2  ;;  %v2418_v45 = vadd.f32 %v2417_v5, %v2416_v60  ;;  %4871 = vmatpush1.bf16.msra.mxu1 %v6278_v43  ;;  %4667 = vmatprep.subr.bf16.mxu0 %v6283_v17  ;;  %v6329_v33 = vld [vmem:[#allocation11 + $0x560] ss:$16 sps:$4 sm:$0xff]   ;;  %v6332_v1 = vld [vmem:[#allocation11 + $0x568] ss:$16 sps:$4 sm:$0xff]  }
 0x381   :  { %4872 = vmatprep.subr.bf16.mxu1 %v6286_v36  ;;  %v6337_v60 = vld [vmem:[#allocation11 + $0x584] ss:$16 sps:$4 sm:$0xff]   ;;  %v6340_v43 = vld [vmem:[#allocation11 + $0x58c] ss:$16 sps:$4 sm:$0xff]   ;;  %v6335_v17 = vld [vmem:[#allocation11 + $0x580] ss:$16 sps:$4 sm:$0xff]  }
 0x382   :  { %v2407_v16 = vadd.f32 %v2406_v51, %v2405_v57  ;;  %v2419_v61 = vrot.slane %v2418_v45, 2  ;;  %v6338_v36 = vld [vmem:[#allocation11 + $0x588] ss:$16 sps:$4 sm:$0xff]   ;;  %v6343_v57 = vld [vmem:[#allocation11 + $0x5a4] ss:$16 sps:$4 sm:$0xff]  }
 0x383   :  { %4668 = vmatpush1.bf16.msra.mxu0 %v6281_v40  ;;  %v6346_v5 = vld [vmem:[#allocation11 + $0x5ac] ss:$16 sps:$4 sm:$0xff]   ;;  %v6341_v40 = vld [vmem:[#allocation11 + $0x5a0] ss:$16 sps:$4 sm:$0xff]   ;;  %v6344_v51 = vld [vmem:[#allocation11 + $0x5a8] ss:$16 sps:$4 sm:$0xff]  }
 0x384   :  { %v2408_v54 = vrot.slane %v2407_v16, 1  ;;  %v2420_v46 = vadd.f32 %v2419_v61, %v2418_v45  ;;  %4873 = vmatpush1.bf16.msra.mxu1 %v6284_v59  ;;  %4669 = vmatprep.subr.bf16.mxu0 %v6289_v20  ;;  %v6349_v45 = vld [vmem:[#allocation11 + $0x5c4] ss:$16 sps:$4 sm:$0xff]   ;;  %v6352_v59 = vld [vmem:[#allocation11 + $0x5cc] ss:$16 sps:$4 sm:$0xff]   ;;  %v2592_v20 = vcombine.high %v8852_v2, %v8852_v2 }
 0x385   :  { %4874 = vmatprep.subr.bf16.mxu1 %v6292_v37  ;;  %v6347_v37 = vld [vmem:[#allocation11 + $0x5c0] ss:$16 sps:$4 sm:$0xff]   ;;  %v6355_v61 = vld [vmem:[#allocation11 + $0x5e4] ss:$16 sps:$4 sm:$0xff]  }
 0x386   :  { %v2409_v9 = vadd.f32 %v2408_v54, %v2407_v16  ;;  %v2421_v58 = vrot.slane %v2420_v46, 1  ;;  %v6350_v16 = vld [vmem:[#allocation11 + $0x5c8] ss:$16 sps:$4 sm:$0xff]   ;;  %v8893_v54 = vrot.slane %v2592_v20, %v7606_v52  ;;  %v6431_v20 = vld [vmem:[#allocation11 + $0x780] ss:$16 sps:$4 sm:$0xff]  }
 0x387   :  { %4670 = vmatpush1.bf16.msra.mxu0 %v6287_v41  ;;  %v6358_v41 = vld [vmem:[#allocation11 + $0x5ec] ss:$16 sps:$4 sm:$0xff]  }
 0x388   :  { %v2422_v11 = vadd.f32 %v2421_v58, %v2420_v46  ;;  %4875 = vmatpush1.bf16.msra.mxu1 %v6290_v12  ;;  %4671 = vmatprep.subr.bf16.mxu0 %v6295_v8  ;;  %v6353_v46 = vld [vmem:[#allocation11 + $0x5e0] ss:$16 sps:$4 sm:$0xff]   ;;  %v6356_v12 = vld [vmem:[#allocation11 + $0x5e8] ss:$16 sps:$4 sm:$0xff]   ;;  %v6361_v8 = vld [vmem:[#allocation11 + $0x604] ss:$16 sps:$4 sm:$0xff]   ;;  %v2608_v2 = vcombine.high %v8893_v54, %v8893_v54  ;;  %v2631_v58 = vpack.c.bf16 %v8863_v48, %v8863_v48 }
 0x389   :  { %4876 = vmatprep.subr.bf16.mxu1 %v6298_v25  ;;  %v6364_v25 = vld [vmem:[#allocation11 + $0x60c] ss:$16 sps:$4 sm:$0xff]   ;;  %v6371_v48 = vld [vmem:[#allocation11 + $0x640] ss:$16 sps:$4 sm:$0xff]  }
 0x38a   :  { %v2519_v44 = vcombine.low %v2409_v9, %v2422_v11  ;;  %v6359_v9 = vld [vmem:[#allocation11 + $0x600] ss:$16 sps:$4 sm:$0xff]   ;;  %v6367_v11 = vld [vmem:[#allocation11 + $0x624] ss:$16 sps:$4 sm:$0xff]  }
 0x38b   :  { %4672 = vmatpush1.bf16.msra.mxu0 %v6293_v62  ;;  %v6362_v62 = vld [vmem:[#allocation11 + $0x608] ss:$16 sps:$4 sm:$0xff]  }
 0x38c   :  { %v2526_v26 = vrot.slane %v2519_v44, %v7606_v52  ;;  %4877 = vmatpush1.bf16.msra.mxu1 %v6296_v15  ;;  %4673 = vmatprep.subr.bf16.mxu0 %v6301_v6  ;;  %v2634_v15 = vpack.c.bf16 %v2608_v2, %v2608_v2  ;;  %v6370_v6 = vld [vmem:[#allocation11 + $0x62c] ss:$16 sps:$4 sm:$0xff]   ;;  %v6368_v44 = vld [vmem:[#allocation11 + $0x628] ss:$16 sps:$4 sm:$0xff]  }
 0x38d   :  { %4878 = vmatprep.subr.bf16.mxu1 %v6304_v63  ;;  %v6365_v63 = vld [vmem:[#allocation11 + $0x620] ss:$16 sps:$4 sm:$0xff]  }
 0x38e   :  { %v2549_v47 = vrot.slane %v2526_v26, 7  ;;  %v6376_v26 = vld [vmem:[#allocation11 + $0x64c] ss:$16 sps:$4 sm:$0xff]  }
 0x38f   :  { %4674 = vmatpush1.bf16.msra.mxu0 %v6299_v29  ;;  %v6373_v29 = vld [vmem:[#allocation11 + $0x644] ss:$16 sps:$4 sm:$0xff]  }
 0x390   :  { %v2550_v34 = vsel %vm2532_vm3, %v2549_v47, %v2484_v13  ;;  %4879 = vmatpush1.bf16.msra.mxu1 %v6302_v31  ;;  %4675 = vmatprep.subr.bf16.mxu0 %v6307_v32  ;;  %v6374_v31 = vld [vmem:[#allocation11 + $0x648] ss:$16 sps:$4 sm:$0xff]   ;;  %v6379_v32 = vld [vmem:[#allocation11 + $0x664] ss:$16 sps:$4 sm:$0xff]   ;;  %v6377_v13 = vld [vmem:[#allocation11 + $0x660] ss:$16 sps:$4 sm:$0xff]  }
 0x391   :  { %v2551_v42 = vsel %vm2534_vm4, %v2549_v47, %v2550_v34  ;;  %4880 = vmatprep.subr.bf16.mxu1 %v6310_v30  ;;  %v6382_v30 = vld [vmem:[#allocation11 + $0x66c] ss:$16 sps:$4 sm:$0xff]  }
 0x392   :  { %v2552_v39 = vsel %vm2536_vm5, %v2549_v47, %v2551_v42  ;;  %v6388_v34 = vld [vmem:[#allocation11 + $0x68c] ss:$16 sps:$4 sm:$0xff]  }
 0x393   :  { %v2553_v10 = vsel %vm2538_vm6, %v2549_v47, %v2552_v39  ;;  %4676 = vmatpush1.bf16.msra.mxu0 %v6305_v50  ;;  %v6380_v47 = vld [vmem:[#allocation11 + $0x668] ss:$16 sps:$4 sm:$0xff]   ;;  %v6385_v50 = vld [vmem:[#allocation11 + $0x684] ss:$16 sps:$4 sm:$0xff]   ;;  %v6394_v42 = vld [vmem:[#allocation11 + $0x6ac] ss:$16 sps:$4 sm:$0xff]  }
 0x394   :  { %v2559_v18 = vadd.f32 %v2553_v10, %v2162_v53  ;;  %4881 = vmatpush1.bf16.msra.mxu1 %v6308_v49  ;;  %4677 = vmatprep.subr.bf16.mxu0 %v6313_v27  ;;  %v6383_v49 = vld [vmem:[#allocation11 + $0x680] ss:$16 sps:$4 sm:$0xff]   ;;  %v6386_v27 = vld [vmem:[#allocation11 + $0x688] ss:$16 sps:$4 sm:$0xff]   ;;  %v6391_v53 = vld [vmem:[#allocation11 + $0x6a4] ss:$16 sps:$4 sm:$0xff]  }
 0x395   :  { %4882 = vmatprep.subr.bf16.mxu1 %v6316_v0  ;;  %v6389_v0 = vld [vmem:[#allocation11 + $0x6a0] ss:$16 sps:$4 sm:$0xff]   ;;  %v6392_v39 = vld [vmem:[#allocation11 + $0x6a8] ss:$16 sps:$4 sm:$0xff]   ;;  %v6397_v10 = vld [vmem:[#allocation11 + $0x6c4] ss:$16 sps:$4 sm:$0xff]  }
 0x396   :  { %2562 = vst [vmem:[#allocation2 + $0x10] sm:$0xf] %v2559_v18  ;;  %v6395_v18 = vld [vmem:[#allocation11 + $0x6c0] ss:$16 sps:$4 sm:$0xff]  }
 0x397   :  { %4678 = vmatpush1.bf16.msra.mxu0 %v6311_v19  ;;  %v6400_v19 = vld [vmem:[#allocation11 + $0x6cc] ss:$16 sps:$4 sm:$0xff]  }
 0x398   :  { %4883 = vmatpush1.bf16.msra.mxu1 %v6314_v4  ;;  %4679 = vmatprep.subr.bf16.mxu0 %v6319_v14  ;;  %v6398_v4 = vld [vmem:[#allocation11 + $0x6c8] ss:$16 sps:$4 sm:$0xff]   ;;  %v6403_v14 = vld [vmem:[#allocation11 + $0x6e4] ss:$16 sps:$4 sm:$0xff]  }
 0x399   :  { %4884 = vmatprep.subr.bf16.mxu1 %v6322_v3  ;;  %v6406_v3 = vld [vmem:[#allocation11 + $0x6ec] ss:$16 sps:$4 sm:$0xff]  }
 0x39b   :  { %4680 = vmatpush1.bf16.msra.mxu0 %v6317_v23  ;;  %v6401_v23 = vld [vmem:[#allocation11 + $0x6e0] ss:$16 sps:$4 sm:$0xff]  }
 0x39c   :  { %4885 = vmatpush1.bf16.msra.mxu1 %v6320_v28  ;;  %4681 = vmatprep.subr.bf16.mxu0 %v6325_v21  ;;  %v6404_v28 = vld [vmem:[#allocation11 + $0x6e8] ss:$16 sps:$4 sm:$0xff]   ;;  %v6409_v21 = vld [vmem:[#allocation11 + $0x704] ss:$16 sps:$4 sm:$0xff]  }
 0x39d   :  { %4886 = vmatprep.subr.bf16.mxu1 %v6328_v7  ;;  %v6412_v7 = vld [vmem:[#allocation11 + $0x70c] ss:$16 sps:$4 sm:$0xff]  }
 0x39f   :  { %4682 = vmatpush1.bf16.msra.mxu0 %v6323_v38  ;;  %v6407_v38 = vld [vmem:[#allocation11 + $0x700] ss:$16 sps:$4 sm:$0xff]  }
 0x3a0   :  { %4887 = vmatpush1.bf16.msra.mxu1 %v6326_v24  ;;  %4683 = vmatprep.subr.bf16.mxu0 %v6331_v56  ;;  %v6410_v24 = vld [vmem:[#allocation11 + $0x708] ss:$16 sps:$4 sm:$0xff]   ;;  %v6415_v56 = vld [vmem:[#allocation11 + $0x724] ss:$16 sps:$4 sm:$0xff]  }
 0x3a1   :  { %4888 = vmatprep.subr.bf16.mxu1 %v6334_v35  ;;  %v6418_v35 = vld [vmem:[#allocation11 + $0x72c] ss:$16 sps:$4 sm:$0xff]  }
 0x3a3   :  { %4684 = vmatpush1.bf16.msra.mxu0 %v6329_v33  ;;  %v6413_v33 = vld [vmem:[#allocation11 + $0x720] ss:$16 sps:$4 sm:$0xff]  }
 0x3a4   :  { %4889 = vmatpush1.bf16.msra.mxu1 %v6332_v1  ;;  %4685 = vmatprep.subr.bf16.mxu0 %v6337_v60  ;;  %v6416_v1 = vld [vmem:[#allocation11 + $0x728] ss:$16 sps:$4 sm:$0xff]   ;;  %v6421_v60 = vld [vmem:[#allocation11 + $0x744] ss:$16 sps:$4 sm:$0xff]  }
 0x3a5   :  { %4890 = vmatprep.subr.bf16.mxu1 %v6340_v43  ;;  %v6424_v43 = vld [vmem:[#allocation11 + $0x74c] ss:$16 sps:$4 sm:$0xff]  }
 0x3a7   :  { %4686 = vmatpush1.bf16.msra.mxu0 %v6335_v17  ;;  %v6419_v17 = vld [vmem:[#allocation11 + $0x740] ss:$16 sps:$4 sm:$0xff]  }
 0x3a8   :  { %4891 = vmatpush1.bf16.msra.mxu1 %v6338_v36  ;;  %4687 = vmatprep.subr.bf16.mxu0 %v6343_v57  ;;  %v6422_v36 = vld [vmem:[#allocation11 + $0x748] ss:$16 sps:$4 sm:$0xff]   ;;  %v6427_v57 = vld [vmem:[#allocation11 + $0x764] ss:$16 sps:$4 sm:$0xff]  }
 0x3a9   :  { %4892 = vmatprep.subr.bf16.mxu1 %v6346_v5  ;;  %v6430_v5 = vld [vmem:[#allocation11 + $0x76c] ss:$16 sps:$4 sm:$0xff]  }
 0x3ab   :  { %4688 = vmatpush1.bf16.msra.mxu0 %v6341_v40  ;;  %v6425_v40 = vld [vmem:[#allocation11 + $0x760] ss:$16 sps:$4 sm:$0xff]  }
 0x3ac   :  { %4893 = vmatpush1.bf16.msra.mxu1 %v6344_v51  ;;  %4689 = vmatprep.subr.bf16.mxu0 %v6349_v45  ;;  %v6428_v51 = vld [vmem:[#allocation11 + $0x768] ss:$16 sps:$4 sm:$0xff]   ;;  %v6433_v45 = vld [vmem:[#allocation11 + $0x784] ss:$16 sps:$4 sm:$0xff]  }
 0x3ad   :  { %4894 = vmatprep.subr.bf16.mxu1 %v6352_v59  ;;  %v6436_v59 = vld [vmem:[#allocation11 + $0x78c] ss:$16 sps:$4 sm:$0xff]  }
 0x3af   :  { %4690 = vmatpush1.bf16.msra.mxu0 %v6347_v37  ;;  %v6434_v37 = vld [vmem:[#allocation11 + $0x788] ss:$16 sps:$4 sm:$0xff]  }
 0x3b0   :  { %4895 = vmatpush1.bf16.msra.mxu1 %v6350_v16  ;;  %4691 = vmatprep.subr.bf16.mxu0 %v6355_v61  ;;  %v6439_v16 = vld [vmem:[#allocation11 + $0x7a4] ss:$16 sps:$4 sm:$0xff]   ;;  %v6442_v61 = vld [vmem:[#allocation11 + $0x7ac] ss:$16 sps:$4 sm:$0xff]  }
 0x3b1   :  { %4896 = vmatprep.subr.bf16.mxu1 %v6358_v41  ;;  %v6437_v41 = vld [vmem:[#allocation11 + $0x7a0] ss:$16 sps:$4 sm:$0xff]  }
 0x3b3   :  { %4692 = vmatpush1.bf16.msra.mxu0 %v6353_v46  ;;  %v2568_v46 = vld [vmem:[#allocation2 + $0x10] sm:$0xf] }
 0x3b4   :  { %4897 = vmatpush1.bf16.msra.mxu1 %v6356_v12  ;;  %4702 = vmatprep.subr.bf16.mxu0 %v6361_v8  ;;  %v6440_v12 = vld [vmem:[#allocation11 + $0x7a8] ss:$16 sps:$4 sm:$0xff]   ;;  %v6445_v8 = vld [vmem:[#allocation11 + $0x7c4] ss:$16 sps:$4 sm:$0xff]   ;;  %v2571_v2 = vmul.f32 0.015625, %v2568_v46 }
 0x3b5   :  { %4907 = vmatprep.subr.bf16.mxu1 %v6364_v25  ;;  %v6448_v25 = vld [vmem:[#allocation11 + $0x7cc] ss:$16 sps:$4 sm:$0xff]   ;;  %v6524_v46 = vld [vmem:[#allocation11 + $0x968] ss:$16 sps:$4 sm:$0xff]  }
 0x3b6   :  { %4694 = vmatmul.mubr.bf16.vlgmr.msra.gmra.mrb[80].mxu0 %v2631_v58 }
 0x3b7   :  { %4899 = vmatmul.mubr.bf16.vlgmr.msra.gmra.mrb[96].mxu1 %v2631_v58  ;;  %4703 = vmatpush1.bf16.msra.mxu0 %v6359_v9  ;;  %v6443_v9 = vld [vmem:[#allocation11 + $0x7c0] ss:$16 sps:$4 sm:$0xff]   ;;  %v6446_v58 = vld [vmem:[#allocation11 + $0x7c8] ss:$16 sps:$4 sm:$0xff]  }
 0x3b8   :  { %4734 = vmatprep.mubr.bf16.mxu0 %v2634_v15  ;;  %4908 = vmatpush1.bf16.msra.mxu1 %v6362_v62  ;;  %v6451_v62 = vld [vmem:[#allocation11 + $0x7e4] ss:$16 sps:$4 sm:$0xff]  }
 0x3b9   :  { %4939 = vmatprep.mubr.bf16.mxu1 %v2634_v15  ;;  %4704 = vmatprep.subr.bf16.mxu0 %v6367_v11  ;;  %v6454_v11 = vld [vmem:[#allocation11 + $0x7ec] ss:$16 sps:$4 sm:$0xff]   ;;  %v8900_v15 = vrot.slane %v2571_v2, %v7606_v52  ;;  %v6458_v52 = vld [vmem:[#allocation11 + $0x808] ss:$16 sps:$4 sm:$0xff]  }
 0x3ba   :  { %4909 = vmatprep.subr.bf16.mxu1 %v6370_v6  ;;  %v6449_v6 = vld [vmem:[#allocation11 + $0x7e0] ss:$16 sps:$4 sm:$0xff]   ;;  %v6530_v2 = vld [vmem:[#allocation11 + $0x988] ss:$16 sps:$4 sm:$0xff]  }
 0x3bb   :  { %4705 = vmatpush1.bf16.msra.mxu0 %v6365_v63  ;;  %v6452_v63 = vld [vmem:[#allocation11 + $0x7e8] ss:$16 sps:$4 sm:$0xff]  }
 0x3bc   :  { %4910 = vmatpush1.bf16.msra.mxu1 %v6368_v44  ;;  %4706 = vmatprep.subr.bf16.mxu0 %v6373_v29  ;;  %v6457_v44 = vld [vmem:[#allocation11 + $0x804] ss:$16 sps:$4 sm:$0xff]   ;;  %v6460_v29 = vld [vmem:[#allocation11 + $0x80c] ss:$16 sps:$4 sm:$0xff]  }
 0x3bd   :  { %4911 = vmatprep.subr.bf16.mxu1 %v6376_v26  ;;  %v2616_v26 = vcombine.high %v8900_v15, %v8900_v15 }
 0x3bf   :  { %4707 = vmatpush1.bf16.msra.mxu0 %v6371_v48  ;;  %v6455_v48 = vld [vmem:[#allocation11 + $0x800] ss:$16 sps:$4 sm:$0xff]  }
 0x3c0   :  { %4912 = vmatpush1.bf16.msra.mxu1 %v6374_v31  ;;  %4708 = vmatprep.subr.bf16.mxu0 %v6379_v32  ;;  %v2633_v31 = vpack.c.bf16 %v8893_v54, %v8893_v54  ;;  %v6463_v32 = vld [vmem:[#allocation11 + $0x824] ss:$16 sps:$4 sm:$0xff]   ;;  %v6467_v54 = vld [vmem:[#allocation11 + $0x840] ss:$16 sps:$4 sm:$0xff]  }
 0x3c1   :  { %4913 = vmatprep.subr.bf16.mxu1 %v6382_v30  ;;  %v2636_v30 = vpack.c.bf16 %v2616_v26, %v2616_v26  ;;  %v6547_v26 = vld [vmem:[#allocation11 + $0x9e4] ss:$16 sps:$4 sm:$0xff]  }
 0x3c3   :  { %4709 = vmatpush1.bf16.msra.mxu0 %v6377_v13  ;;  %v6466_v13 = vld [vmem:[#allocation11 + $0x82c] ss:$16 sps:$4 sm:$0xff]  }
 0x3c4   :  { %4914 = vmatpush1.bf16.msra.mxu1 %v6380_v47  ;;  %4710 = vmatprep.subr.bf16.mxu0 %v6385_v50  ;;  %v6461_v47 = vld [vmem:[#allocation11 + $0x820] ss:$16 sps:$4 sm:$0xff]   ;;  %v6464_v50 = vld [vmem:[#allocation11 + $0x828] ss:$16 sps:$4 sm:$0xff]  }
 0x3c5   :  { %4915 = vmatprep.subr.bf16.mxu1 %v6388_v34  ;;  %v6469_v34 = vld [vmem:[#allocation11 + $0x844] ss:$16 sps:$4 sm:$0xff]  }
 0x3c7   :  { %4711 = vmatpush1.bf16.msra.mxu0 %v6383_v49  ;;  %v6472_v49 = vld [vmem:[#allocation11 + $0x84c] ss:$16 sps:$4 sm:$0xff]  }
 0x3c8   :  { %4916 = vmatpush1.bf16.msra.mxu1 %v6386_v27  ;;  %4712 = vmatprep.subr.bf16.mxu0 %v6391_v53  ;;  %v6470_v27 = vld [vmem:[#allocation11 + $0x848] ss:$16 sps:$4 sm:$0xff]   ;;  %v6475_v53 = vld [vmem:[#allocation11 + $0x864] ss:$16 sps:$4 sm:$0xff]  }
 0x3c9   :  { %4917 = vmatprep.subr.bf16.mxu1 %v6394_v42  ;;  %v6478_v42 = vld [vmem:[#allocation11 + $0x86c] ss:$16 sps:$4 sm:$0xff]  }
 0x3cb   :  { %4713 = vmatpush1.bf16.msra.mxu0 %v6389_v0  ;;  %v6473_v0 = vld [vmem:[#allocation11 + $0x860] ss:$16 sps:$4 sm:$0xff]  }
 0x3cc   :  { %4918 = vmatpush1.bf16.msra.mxu1 %v6392_v39  ;;  %4714 = vmatprep.subr.bf16.mxu0 %v6397_v10  ;;  %v6476_v39 = vld [vmem:[#allocation11 + $0x868] ss:$16 sps:$4 sm:$0xff]   ;;  %v6481_v10 = vld [vmem:[#allocation11 + $0x884] ss:$16 sps:$4 sm:$0xff]  }
 0x3cd   :  { %4919 = vmatprep.subr.bf16.mxu1 %v6400_v19  ;;  %v6484_v19 = vld [vmem:[#allocation11 + $0x88c] ss:$16 sps:$4 sm:$0xff]  }
 0x3cf   :  { %4715 = vmatpush1.bf16.msra.mxu0 %v6395_v18  ;;  %v6479_v18 = vld [vmem:[#allocation11 + $0x880] ss:$16 sps:$4 sm:$0xff]  }
 0x3d0   :  { %4920 = vmatpush1.bf16.msra.mxu1 %v6398_v4  ;;  %4716 = vmatprep.subr.bf16.mxu0 %v6403_v14  ;;  %v6482_v4 = vld [vmem:[#allocation11 + $0x888] ss:$16 sps:$4 sm:$0xff]   ;;  %v6487_v14 = vld [vmem:[#allocation11 + $0x8a4] ss:$16 sps:$4 sm:$0xff]  }
 0x3d1   :  { %4921 = vmatprep.subr.bf16.mxu1 %v6406_v3  ;;  %v6490_v3 = vld [vmem:[#allocation11 + $0x8ac] ss:$16 sps:$4 sm:$0xff]  }
 0x3d3   :  { %4717 = vmatpush1.bf16.msra.mxu0 %v6401_v23  ;;  %v6485_v23 = vld [vmem:[#allocation11 + $0x8a0] ss:$16 sps:$4 sm:$0xff]  }
 0x3d4   :  { %4922 = vmatpush1.bf16.msra.mxu1 %v6404_v28  ;;  %4718 = vmatprep.subr.bf16.mxu0 %v6409_v21  ;;  %v6488_v28 = vld [vmem:[#allocation11 + $0x8a8] ss:$16 sps:$4 sm:$0xff]   ;;  %v6493_v21 = vld [vmem:[#allocation11 + $0x8c4] ss:$16 sps:$4 sm:$0xff]  }
 0x3d5   :  { %4923 = vmatprep.subr.bf16.mxu1 %v6412_v7  ;;  %v6496_v7 = vld [vmem:[#allocation11 + $0x8cc] ss:$16 sps:$4 sm:$0xff]  }
 0x3d7   :  { %4719 = vmatpush1.bf16.msra.mxu0 %v6407_v38  ;;  %v6491_v38 = vld [vmem:[#allocation11 + $0x8c0] ss:$16 sps:$4 sm:$0xff]  }
 0x3d8   :  { %4924 = vmatpush1.bf16.msra.mxu1 %v6410_v24  ;;  %4720 = vmatprep.subr.bf16.mxu0 %v6415_v56  ;;  %v6494_v24 = vld [vmem:[#allocation11 + $0x8c8] ss:$16 sps:$4 sm:$0xff]   ;;  %v6499_v56 = vld [vmem:[#allocation11 + $0x8e4] ss:$16 sps:$4 sm:$0xff]  }
 0x3d9   :  { %4925 = vmatprep.subr.bf16.mxu1 %v6418_v35  ;;  %v6502_v35 = vld [vmem:[#allocation11 + $0x8ec] ss:$16 sps:$4 sm:$0xff]  }
 0x3db   :  { %4721 = vmatpush1.bf16.msra.mxu0 %v6413_v33  ;;  %v6497_v33 = vld [vmem:[#allocation11 + $0x8e0] ss:$16 sps:$4 sm:$0xff]  }
 0x3dc   :  { %4926 = vmatpush1.bf16.msra.mxu1 %v6416_v1  ;;  %4722 = vmatprep.subr.bf16.mxu0 %v6421_v60  ;;  %v6500_v1 = vld [vmem:[#allocation11 + $0x8e8] ss:$16 sps:$4 sm:$0xff]   ;;  %v6505_v60 = vld [vmem:[#allocation11 + $0x904] ss:$16 sps:$4 sm:$0xff]  }
 0x3dd   :  { %4927 = vmatprep.subr.bf16.mxu1 %v6424_v43  ;;  %v6508_v43 = vld [vmem:[#allocation11 + $0x90c] ss:$16 sps:$4 sm:$0xff]  }
 0x3df   :  { %4723 = vmatpush1.bf16.msra.mxu0 %v6419_v17  ;;  %v6503_v17 = vld [vmem:[#allocation11 + $0x900] ss:$16 sps:$4 sm:$0xff]  }
 0x3e0   :  { %4928 = vmatpush1.bf16.msra.mxu1 %v6422_v36  ;;  %4724 = vmatprep.subr.bf16.mxu0 %v6427_v57  ;;  %v6506_v36 = vld [vmem:[#allocation11 + $0x908] ss:$16 sps:$4 sm:$0xff]   ;;  %v6511_v57 = vld [vmem:[#allocation11 + $0x924] ss:$16 sps:$4 sm:$0xff]  }
 0x3e1   :  { %4929 = vmatprep.subr.bf16.mxu1 %v6430_v5  ;;  %v6514_v5 = vld [vmem:[#allocation11 + $0x92c] ss:$16 sps:$4 sm:$0xff]  }
 0x3e3   :  { %4725 = vmatpush1.bf16.msra.mxu0 %v6425_v40  ;;  %v6509_v40 = vld [vmem:[#allocation11 + $0x920] ss:$16 sps:$4 sm:$0xff]  }
 0x3e4   :  { %4930 = vmatpush1.bf16.msra.mxu1 %v6428_v51  ;;  %4726 = vmatprep.subr.bf16.mxu0 %v6433_v45  ;;  %v6512_v51 = vld [vmem:[#allocation11 + $0x928] ss:$16 sps:$4 sm:$0xff]   ;;  %v6517_v45 = vld [vmem:[#allocation11 + $0x944] ss:$16 sps:$4 sm:$0xff]  }
 0x3e5   :  { %4931 = vmatprep.subr.bf16.mxu1 %v6436_v59  ;;  %v6520_v59 = vld [vmem:[#allocation11 + $0x94c] ss:$16 sps:$4 sm:$0xff]  }
 0x3e7   :  { %4727 = vmatpush1.bf16.msra.mxu0 %v6431_v20  ;;  %v6515_v20 = vld [vmem:[#allocation11 + $0x940] ss:$16 sps:$4 sm:$0xff]  }
 0x3e8   :  { %4932 = vmatpush1.bf16.msra.mxu1 %v6434_v37  ;;  %4728 = vmatprep.subr.bf16.mxu0 %v6439_v16  ;;  %v6518_v37 = vld [vmem:[#allocation11 + $0x948] ss:$16 sps:$4 sm:$0xff]   ;;  %v6523_v16 = vld [vmem:[#allocation11 + $0x964] ss:$16 sps:$4 sm:$0xff]  }
 0x3e9   :  { %4933 = vmatprep.subr.bf16.mxu1 %v6442_v61  ;;  %v6526_v61 = vld [vmem:[#allocation11 + $0x96c] ss:$16 sps:$4 sm:$0xff]  }
 0x3eb   :  { %4729 = vmatpush1.bf16.msra.mxu0 %v6437_v41  ;;  %v6521_v41 = vld [vmem:[#allocation11 + $0x960] ss:$16 sps:$4 sm:$0xff]  }
 0x3ec   :  { %4934 = vmatpush1.bf16.msra.mxu1 %v6440_v12  ;;  %4730 = vmatprep.subr.bf16.mxu0 %v6445_v8  ;;  %v6529_v12 = vld [vmem:[#allocation11 + $0x984] ss:$16 sps:$4 sm:$0xff]   ;;  %v6532_v8 = vld [vmem:[#allocation11 + $0x98c] ss:$16 sps:$4 sm:$0xff]  }
 0x3ed   :  { %4935 = vmatprep.subr.bf16.mxu1 %v6448_v25  ;;  %v6527_v25 = vld [vmem:[#allocation11 + $0x980] ss:$16 sps:$4 sm:$0xff]  }
 0x3ef   :  { %4731 = vmatpush1.bf16.msra.mxu0 %v6443_v9  ;;  %v6535_v9 = vld [vmem:[#allocation11 + $0x9a4] ss:$16 sps:$4 sm:$0xff]  }
 0x3f0   :  { %4936 = vmatpush1.bf16.msra.mxu1 %v6446_v58  ;;  %4732 = vmatprep.subr.bf16.mxu0 %v6451_v62  ;;  %v6538_v58 = vld [vmem:[#allocation11 + $0x9ac] ss:$16 sps:$4 sm:$0xff]   ;;  %v6533_v62 = vld [vmem:[#allocation11 + $0x9a0] ss:$16 sps:$4 sm:$0xff]  }
 0x3f1   :  { %4937 = vmatprep.subr.bf16.mxu1 %v6454_v11  ;;  %v6536_v11 = vld [vmem:[#allocation11 + $0x9a8] ss:$16 sps:$4 sm:$0xff]  }
 0x3f3   :  { %4733 = vmatpush1.bf16.msra.mxu0 %v6449_v6  ;;  %v6541_v6 = vld [vmem:[#allocation11 + $0x9c4] ss:$16 sps:$4 sm:$0xff]  }
 0x3f4   :  { %4938 = vmatpush1.bf16.msra.mxu1 %v6452_v63  ;;  %4743 = vmatprep.subr.bf16.mxu0 %v6457_v44  ;;  %v6544_v63 = vld [vmem:[#allocation11 + $0x9cc] ss:$16 sps:$4 sm:$0xff]   ;;  %v6539_v44 = vld [vmem:[#allocation11 + $0x9c0] ss:$16 sps:$4 sm:$0xff]  }
 0x3f5   :  { %4948 = vmatprep.subr.bf16.mxu1 %v6460_v29  ;;  %v6542_v29 = vld [vmem:[#allocation11 + $0x9c8] ss:$16 sps:$4 sm:$0xff]  }
 0x3f6   :  { %4735 = vmatmul.mubr.bf16.vlgmr.msra.gmra.mrb[80].mxu0 %v2633_v31 }
 0x3f7   :  { %4940 = vmatmul.mubr.bf16.vlgmr.msra.gmra.mrb[96].mxu1 %v2633_v31  ;;  %4744 = vmatpush1.bf16.msra.mxu0 %v6455_v48  ;;  %v6550_v48 = vld [vmem:[#allocation11 + $0x9ec] ss:$16 sps:$4 sm:$0xff]   ;;  %v6545_v31 = vld [vmem:[#allocation11 + $0x9e0] ss:$16 sps:$4 sm:$0xff]  }
 0x3f8   :  { %4775 = vmatprep.mubr.bf16.mxu0 %v2636_v30  ;;  %4949 = vmatpush1.bf16.msra.mxu1 %v6458_v52  ;;  %v6548_v52 = vld [vmem:[#allocation11 + $0x9e8] ss:$16 sps:$4 sm:$0xff]  }
 0x3f9   :  { %4980 = vmatprep.mubr.bf16.mxu1 %v2636_v30  ;;  %4745 = vmatprep.subr.bf16.mxu0 %v6463_v32  ;;  %v6551_v32 = vld [vmem:[#allocation14 + $0x40] sm:$0xff]  }
 0x3fa   :  { %4950 = vmatprep.subr.bf16.mxu1 %v6466_v13  ;;  %v6552_v30 = vld [vmem:[#allocation14] sm:$0xff]   ;;  %v2635_v13 = vpack.c.bf16 %v8900_v15, %v8900_v15  ;;  %v6561_v15 = vld [vmem:[#allocation14 + $0x68] sm:$0xff]  }
 0x3fb   :  { %4746 = vmatpush1.bf16.msra.mxu0 %v6461_v47  ;;  %v6553_v47 = vld [vmem:[#allocation14 + $0x48] sm:$0xff]  }
 0x3fc   :  { %4951 = vmatpush1.bf16.msra.mxu1 %v6464_v50  ;;  %4747 = vmatprep.subr.bf16.mxu0 %v6469_v34  ;;  %v6554_v50 = vld [vmem:[#allocation14 + $0x8] sm:$0xff]   ;;  %v6555_v34 = vld [vmem:[#allocation14 + $0x50] sm:$0xff]  }
 0x3fd   :  { %4952 = vmatprep.subr.bf16.mxu1 %v6472_v49  ;;  %v6556_v49 = vld [vmem:[#allocation14 + $0x10] sm:$0xff]  }
 0x3ff   :  { %4748 = vmatpush1.bf16.msra.mxu0 %v6467_v54  ;;  %v6557_v54 = vld [vmem:[#allocation14 + $0x58] sm:$0xff]  }
 0x400   :  { %4953 = vmatpush1.bf16.msra.mxu1 %v6470_v27  ;;  %4749 = vmatprep.subr.bf16.mxu0 %v6475_v53  ;;  %v6558_v27 = vld [vmem:[#allocation14 + $0x18] sm:$0xff]   ;;  %v6559_v53 = vld [vmem:[#allocation14 + $0x60] sm:$0xff]  }
 0x401   :  { %4954 = vmatprep.subr.bf16.mxu1 %v6478_v42  ;;  %v6560_v42 = vld [vmem:[#allocation14 + $0x20] sm:$0xff]  }
 0x403   :  { %4750 = vmatpush1.bf16.msra.mxu0 %v6473_v0  ;;  %v6562_v0 = vld [vmem:[#allocation14 + $0x28] sm:$0xff]  }
 0x404   :  { %4955 = vmatpush1.bf16.msra.mxu1 %v6476_v39  ;;  %4751 = vmatprep.subr.bf16.mxu0 %v6481_v10  ;;  %v6563_v39 = vld [vmem:[#allocation14 + $0x70] sm:$0xff]  }
 0x405   :  { %4956 = vmatprep.subr.bf16.mxu1 %v6484_v19  ;;  %v6564_v10 = vld [vmem:[#allocation14 + $0x30] sm:$0xff]   ;;  %v6565_v19 = vld [vmem:[#allocation14 + $0x78] sm:$0xff]  }
 0x407   :  { %4752 = vmatpush1.bf16.msra.mxu0 %v6479_v18  ;;  %v6566_v18 = vld [vmem:[#allocation14 + $0x38] sm:$0xff]  }
 0x408   :  { %4957 = vmatpush1.bf16.msra.mxu1 %v6482_v4  ;;  %4753 = vmatprep.subr.bf16.mxu0 %v6487_v14  ;;  %v6567_v4 = vld [vmem:[#allocation14 + $0xc0] sm:$0xff]   ;;  %v2957_v14 = vld [vmem:[#allocation12] sm:$0xf] }
 0x409   :  { %4958 = vmatprep.subr.bf16.mxu1 %v6490_v3  ;;  %v2962_v3 = vrot.slane %v2957_v14, %v9030_v55 }
 0x40b   :  { %4754 = vmatpush1.bf16.msra.mxu0 %v6485_v23  ;;  %v2966_v23 = vrot.slane %v2957_v14, %v9031_v22 }
 0x40c   :  { %4959 = vmatpush1.bf16.msra.mxu1 %v6488_v28  ;;  %4755 = vmatprep.subr.bf16.mxu0 %v6493_v21  ;;  %v9045_v28 = vld [vmem:[#allocation24_spill] sm:$0xff] }
 0x40d   :  { %4960 = vmatprep.subr.bf16.mxu1 %v6496_v7  ;;  %v9046_v21 = vsub.s32 3, %v9045_v28 }
 0x40f   :  { %4756 = vmatpush1.bf16.msra.mxu0 %v6491_v38  ;;  %v2974_v7 = vrot.slane %v2957_v14, %v9046_v21 }
 0x410   :  { %4961 = vmatpush1.bf16.msra.mxu1 %v6494_v24  ;;  %4757 = vmatprep.subr.bf16.mxu0 %v6499_v56 }
 0x411   :  { %4962 = vmatprep.subr.bf16.mxu1 %v6502_v35 }
 0x413   :  { %4758 = vmatpush1.bf16.msra.mxu0 %v6497_v33 }
 0x414   :  { %4963 = vmatpush1.bf16.msra.mxu1 %v6500_v1  ;;  %4759 = vmatprep.subr.bf16.mxu0 %v6505_v60 }
 0x415   :  { %4964 = vmatprep.subr.bf16.mxu1 %v6508_v43 }
 0x417   :  { %4760 = vmatpush1.bf16.msra.mxu0 %v6503_v17 }
 0x418   :  { %4965 = vmatpush1.bf16.msra.mxu1 %v6506_v36  ;;  %4761 = vmatprep.subr.bf16.mxu0 %v6511_v57 }
 0x419   :  { %4966 = vmatprep.subr.bf16.mxu1 %v6514_v5 }
 0x41b   :  { %4762 = vmatpush1.bf16.msra.mxu0 %v6509_v40 }
 0x41c   :  { %4967 = vmatpush1.bf16.msra.mxu1 %v6512_v51  ;;  %4763 = vmatprep.subr.bf16.mxu0 %v6517_v45  ;;  %v6568_v45 = vld [vmem:[#allocation14 + $0x80] sm:$0xff]  }
 0x41d   :  { %4968 = vmatprep.subr.bf16.mxu1 %v6520_v59  ;;  %v6569_v59 = vld [vmem:[#allocation14 + $0xc8] sm:$0xff]  }
 0x41f   :  { %4764 = vmatpush1.bf16.msra.mxu0 %v6515_v20 }
 0x420   :  { %4969 = vmatpush1.bf16.msra.mxu1 %v6518_v37  ;;  %4765 = vmatprep.subr.bf16.mxu0 %v6523_v16  ;;  %v6570_v37 = vld [vmem:[#allocation14 + $0x88] sm:$0xff]   ;;  %v6571_v16 = vld [vmem:[#allocation14 + $0xd0] sm:$0xff]  }
 0x421   :  { %4970 = vmatprep.subr.bf16.mxu1 %v6526_v61  ;;  %v6572_v61 = vld [vmem:[#allocation14 + $0x90] sm:$0xff]  }
 0x423   :  { %4766 = vmatpush1.bf16.msra.mxu0 %v6521_v41  ;;  %v6573_v41 = vld [vmem:[#allocation14 + $0xd8] sm:$0xff]  }
 0x424   :  { %4971 = vmatpush1.bf16.msra.mxu1 %v6524_v46  ;;  %4767 = vmatprep.subr.bf16.mxu0 %v6529_v12  ;;  %v6574_v46 = vld [vmem:[#allocation14 + $0x98] sm:$0xff]   ;;  %v6575_v12 = vld [vmem:[#allocation14 + $0xe0] sm:$0xff]  }
 0x425   :  { %4972 = vmatprep.subr.bf16.mxu1 %v6532_v8  ;;  %v6576_v8 = vld [vmem:[#allocation14 + $0xa0] sm:$0xff]  }
 0x427   :  { %4768 = vmatpush1.bf16.msra.mxu0 %v6527_v25  ;;  %v6577_v25 = vld [vmem:[#allocation14 + $0xe8] sm:$0xff]  }
 0x428   :  { %4973 = vmatpush1.bf16.msra.mxu1 %v6530_v2  ;;  %4769 = vmatprep.subr.bf16.mxu0 %v6535_v9  ;;  %v6578_v2 = vld [vmem:[#allocation14 + $0xa8] sm:$0xff]   ;;  %v9047_v9 = vsub.s32 2, %v9045_v28 }
 0x429   :  { %4974 = vmatprep.subr.bf16.mxu1 %v6538_v58 }
 0x42a   :  { %v2970_v58 = vrot.slane %v2957_v14, %v9047_v9 }
 0x42b   :  { %4770 = vmatpush1.bf16.msra.mxu0 %v6533_v62  ;;  %v6579_v62 = vld [vmem:[#allocation14 + $0xf0] sm:$0xff]  }
 0x42c   :  { %4975 = vmatpush1.bf16.msra.mxu1 %v6536_v11  ;;  %4771 = vmatprep.subr.bf16.mxu0 %v6541_v6  ;;  %v6580_v11 = vld [vmem:[#allocation14 + $0xb0] sm:$0xff]  }
 0x42d   :  { %4976 = vmatprep.subr.bf16.mxu1 %v6544_v63  ;;  %v6581_v63 = vld [vmem:[#allocation14 + $0xf8] sm:$0xff]  }
 0x42f   :  { %4772 = vmatpush1.bf16.msra.mxu0 %v6539_v44  ;;  %v6582_v44 = vld [vmem:[#allocation14 + $0xb8] sm:$0xff]  }
 0x430   :  { %4977 = vmatpush1.bf16.msra.mxu1 %v6542_v29  ;;  %4773 = vmatprep.subr.bf16.mxu0 %v6547_v26 }
 0x431   :  { %4978 = vmatprep.subr.bf16.mxu1 %v6550_v48 }
 0x433   :  { %4774 = vmatpush1.bf16.msra.mxu0 %v6545_v31 }
 0x434   :  { %4979 = vmatpush1.bf16.msra.mxu1 %v6548_v52  ;;  %5822 = vmatprep.subr.bf16.mxu0 %v6551_v32 }
 0x436   :  { %4776 = vmatmul.mubr.bf16.vlgmr.msra.gmra.mrb[80].mxu0 %v2635_v13 }
 0x437   :  { %4981 = vmatmul.mubr.bf16.vlgmr.msra.gmra.mrb[96].mxu1 %v2635_v13  ;;  %5823 = vmatpush3.bf16.msra.mxu0 %v6552_v30  ;;  %v5779_v13 = vld [vmem:[#allocation15] ss:$0 sm:$0xff] }
 0x438   :  { %5824 = vmatprep.subr.bf16.mxu0 %v6553_v47 }
 0x43b   :  { %5825 = vmatpush3.bf16.msra.mxu0 %v6554_v50 }
 0x43c   :  { %5826 = vmatprep.subr.bf16.mxu0 %v6555_v34 }
 0x43f   :  { %5827 = vmatpush3.bf16.msra.mxu0 %v6556_v49 }
 0x440   :  { %5828 = vmatprep.subr.bf16.mxu0 %v6557_v54 }
 0x443   :  { %5829 = vmatpush3.bf16.msra.mxu0 %v6558_v27 }
 0x444   :  { %5830 = vmatprep.subr.bf16.mxu0 %v6559_v53 }
 0x447   :  { %5831 = vmatpush3.bf16.msra.mxu0 %v6560_v42 }
 0x448   :  { %5832 = vmatprep.subr.bf16.mxu0 %v6561_v15 }
 0x44b   :  { %5833 = vmatpush3.bf16.msra.mxu0 %v6562_v0 }
 0x44c   :  { %5834 = vmatprep.subr.bf16.mxu0 %v6563_v39 }
 0x44f   :  { %5835 = vmatpush3.bf16.msra.mxu0 %v6564_v10 }
 0x450   :  { %5836 = vmatprep.subr.bf16.mxu0 %v6565_v19 }
 0x453   :  { %5837 = vmatpush3.bf16.msra.mxu0 %v6566_v18 }
 0x454   :  { %5844 = vmatprep.subr.bf16.mxu0 %v6567_v4 }
 0x509   :  { %v4777_v38 = vpop.f32.mrb[80].mxu0 }
 0x50a   :  { %v5886_v24 = vadd.f32 %v4777_v38, %v2962_v3  ;;  %v4982_v56 = vpop.f32.mrb[96].mxu1  ;;  %v4779_v35 = vpop.f32.mrb[81].mxu0 }
 0x50b   :  { %v5887_v33 = vadd.f32 %v4779_v35, %v2966_v23  ;;  %v4984_v1 = vpop.f32.mrb[97].mxu1  ;;  %v4781_v60 = vpop.f32.mrb[82].mxu0  ;;  %v5888_v6 = vadd.f32 %v4982_v56, %v2970_v58 }
 0x50c   :  { %v4989_v43 = vmax.f32 %v5886_v24, 0.0  ;;  %v5889_v17 = vadd.f32 %v4984_v1, %v2974_v7  ;;  %v4986_v36 = vpop.f32.mrb[98].mxu1  ;;  %v4782_v57 = vpop.f32.mrb[83].mxu0 }
 0x50d   :  { %v4990_v5 = vmax.f32 %v5887_v33, 0.0  ;;  %v4987_v40 = vpop.f32.mrb[99].mxu1  ;;  %v4991_v29 = vmax.f32 %v5888_v6, 0.0 }
 0x50e   :  { %v4992_v51 = vmax.f32 %v5889_v17, 0.0  ;;  %v4993_v22 = vpack.c.bf16 %v4989_v43, %v4989_v43 }
 0x50f   :  { %v4994_v55 = vpack.c.bf16 %v4990_v5, %v4990_v5  ;;  %v4995_v26 = vpack.c.bf16 %v4991_v29, %v4991_v29 }
 0x510   :  { %v4996_v20 = vpack.c.bf16 %v4992_v51, %v4992_v51 }
 0x511   :  { %5292 = vmatprep.mubr.bf16.mxu0 %v4994_v55 }
 0x512   :  { %5293 = vmatmul.mubr.bf16.vlgmr.msra.gmra.mrb[84].mxu0 %v4993_v22 }
 0x513   :  { %5845 = vmatpush3.bf16.msra.mxu0 %v6568_v45  ;;  %5332 = vmatprep.mubr.bf16.mxu0 %v4996_v20 }
 0x514   :  { %5846 = vmatprep.subr.bf16.mxu0 %v6569_v59 }
 0x517   :  { %5847 = vmatpush3.bf16.msra.mxu0 %v6570_v37 }
 0x518   :  { %5848 = vmatprep.subr.bf16.mxu0 %v6571_v16 }
 0x51b   :  { %5849 = vmatpush3.bf16.msra.mxu0 %v6572_v61 }
 0x51c   :  { %5850 = vmatprep.subr.bf16.mxu0 %v6573_v41 }
 0x51f   :  { %5851 = vmatpush3.bf16.msra.mxu0 %v6574_v46 }
 0x520   :  { %5852 = vmatprep.subr.bf16.mxu0 %v6575_v12 }
 0x523   :  { %5853 = vmatpush3.bf16.msra.mxu0 %v6576_v8 }
 0x524   :  { %5854 = vmatprep.subr.bf16.mxu0 %v6577_v25 }
 0x527   :  { %5855 = vmatpush3.bf16.msra.mxu0 %v6578_v2 }
 0x528   :  { %5856 = vmatprep.subr.bf16.mxu0 %v6579_v62 }
 0x52b   :  { %5857 = vmatpush3.bf16.msra.mxu0 %v6580_v11 }
 0x52c   :  { %5858 = vmatprep.subr.bf16.mxu0 %v6581_v63 }
 0x52f   :  { %5859 = vmatpush3.bf16.msra.mxu0 %v6582_v44 }
 0x532   :  { %5333 = vmatmul.mubr.bf16.vlgmr.msra.gmra.mrb[88].mxu0 %v4995_v26 }
 0x5e5   :  { %v5838_v48 = vpop.f32.mrb[84].mxu0 }
 0x5e6   :  { %v5839_v31 = vpop.f32.mrb[85].mxu0 }
 0x5e7   :  { %v5840_v52 = vadd.f32 %v5839_v31, %v5838_v48  ;;  %v5841_v32 = vpop.f32.mrb[86].mxu0 }
 0x5e8   :  { %v5842_v30 = vpop.f32.mrb[87].mxu0 }
 0x5e9   :  { %v5295_v34 = vadd.f32 %v5840_v52, %v5779_v13 }
 0x605   :  { %v5860_v47 = vpop.f32.mrb[88].mxu0 }
 0x606   :  { %v5861_v50 = vpop.f32.mrb[89].mxu0 }
 0x607   :  { %v5862_v49 = vadd.f32 %v5861_v50, %v5860_v47  ;;  %v5863_v54 = vpop.f32.mrb[90].mxu0 }
 0x608   :  { %v5864_v27 = vpop.f32.mrb[91].mxu0 }
 0x609   :  { %v5335_v53 = vadd.f32 %v5862_v49, %v5295_v34 }
 0x60b   :  { %5340 = vst [vmem:[#allocation17] sm:$0x3] %v5335_v53 }
 0x60c   :  { %7122 = shalt.err (!%p7119_p12)
}
 0x60d   :  { %s7123_s11 = scalar_lea.hbm %s8935_s9, 32 }
 0x60e   :  { %p7124_p13 = scmp.ne.s32.totalorder %s8935_s9, %s7123_s11  ;;  %p7127_p0 = scmp.lt.u32.totalorder %s7123_s11, %s8935_s9 }
 0x610   :  { %p7129_p1 = pnand %p7127_p0, %p7124_p13 }
 0x612   :  { %7132 = shalt.err (!%p7129_p1)
}
 0x613   :  { %5350 = dma.vmem_to_hbm [thread:$0]  %s5348_s27, 32, %s8935_s9, [#allocation5]  }
 0x614   :  { %7143 = dma.done.wait [#allocation5], 32  }
 0x615   :  { %7144 = vsyncadd [#allocation5], 4294967264 }
 0x616   :  { %5354 = vsyncpa [#allocation4], 1 }
 0x617   :  { %5355 = vsyncpa [#allocation7], 1 }
 0x618   :  { %5356 = vsyncpa [#allocation10], 1 }
 0x619   :  { %5357 = vsyncpa [#allocation13], 1 }
 0x61a   :  { %5358 = vsyncpa [#allocation16], 1 }
 0x61b   :  { %5359 = vsyncpa [#allocation5], 1 }

</bundles_post_ra>
